<compile_context>
chip_gen: v5e
topology: v5e:2x2
jax: 0.10.0
libtpu: 0.0.40
codegen_flags: <defaults>
</compile_context>

<pallas_src>
import functools

import jax
import jax.numpy as jnp
from jax.experimental import pallas as pl
from jax.experimental.pallas import tpu as pltpu

SQRT3 = 1.7320508075688772
SQRT5 = 2.23606797749979


def _ceil_to(n, m):
    return ((n + m - 1) // m) * m


# ----------------------------------------------------------------------------
# Pallas kernel: one covariance tile
#   K[i,j] = sum_q poly_q(r_ij) * coef_q[d_i,d_j]
#                 * exp(-(a_q * r_ij + d2_ij * inv_s_q[d_i,d_j]))
# where
#   r_ij   = |c_i - c_j| / lc_q               (Matern coregionalisation distance)
#   d2_ij  = ||x_i - x_j||^2                  (squared Euclidean, via MXU matmul)
#   coef_q[di,dj] = Lambda[di,dj]*sqrt(s_q[di] s_q[dj])*(2 l_i l_j/(l_i^2+l_j^2))^(P/2)
#   inv_s_q[di,dj] = 1/(l_q[di]^2 + l_q[dj]^2)
# coef_q / inv_s_q arrive as per-row gathered tables and are expanded to full
# [TM,TN] planes with a rows x one-hot matmul (contraction width ndp).
# ----------------------------------------------------------------------------
def tl_cov_kernel(x1_ref, x2t_ref, s1_ref, s2t_ref, dom1_ref, e2t_ref, k_ref,
                  *, ndp, inv_lc):
    # squared Euclidean distances: exact f32 norms + bf16 MXU cross term
    cross = jnp.dot(x1_ref[...], x2t_ref[...], preferred_element_type=jnp.float32)
    n1 = s1_ref[:, 0:1]                 # [TM, 1]  sum(x1^2) (f32, exact)
    c1 = s1_ref[:, 1:2]                 # [TM, 1]  drug concentration
    n2 = s2t_ref[0:1, :]                # [1, TN]
    c2 = s2t_ref[1:2, :]                # [1, TN]
    d2 = jnp.maximum(n1 + n2 - 2.0 * cross, 0.0)     # [TM, TN]
    r0 = jnp.abs(c1 - c2)                             # [TM, TN]

    e2t = e2t_ref[...]                  # [ndp, TN]  one-hot of domain idx (side 2)
    dom1 = dom1_ref[...]                # [TM, 6*ndp] per-row gathered tables

    acc = jnp.zeros_like(d2)
    for q in range(3):
        coef = jnp.dot(dom1[:, q * ndp:(q + 1) * ndp], e2t,
                       preferred_element_type=jnp.float32)       # [TM, TN]
        invs = jnp.dot(dom1[:, (3 + q) * ndp:(4 + q) * ndp], e2t,
                       preferred_element_type=jnp.float32)       # [TM, TN]
        r = r0 * inv_lc[q]
        if q == 0:    # Matern 1.5
            poly = 1.0 + SQRT3 * r
            arg = SQRT3 * r
        else:         # Matern 2.5
            poly = 1.0 + SQRT5 * r + (5.0 / 3.0) * (r * r)
            arg = SQRT5 * r
        # single fused exponential per q (Matern decay + Gibbs-RBF)
        acc = acc + poly * coef * jnp.exp(-(arg + d2 * invs))

    k_ref[...] = acc


def tl_cov(x1, x2, c1, c2, dom1, oh2, inv_lc, *, tm_cap=256, tn_cap=512):
    """Full covariance block K[x1, x2] ([N1, N2] float32)."""
    N1, P = x1.shape
    N2 = x2.shape[0]
    ndp6 = dom1.shape[1]
    ndp = oh2.shape[1]
    assert ndp6 == 6 * ndp

    # lane/sublane-dense padding + tile sizes
    N1a = _ceil_to(N1, 8)
    TM = min(tm_cap, N1a)
    N1p = _ceil_to(N1a, TM)
    N2a = _ceil_to(N2, 128)
    TN = min(tn_cap, N2a)
    N2p = _ceil_to(N2a, TN)

    # side-1 operands (row axis padded)
    x1p = jnp.zeros((N1p, P), jnp.bfloat16).at[:N1].set(x1.astype(jnp.bfloat16))
    n1 = jnp.sum(x1 * x1, axis=1)
    s1 = jnp.zeros((N1p, 8), jnp.float32).at[:N1, 0].set(n1).at[:N1, 1].set(c1)
    dom1p = jnp.zeros((N1p, ndp6), jnp.float32).at[:N1].set(dom1)

    # side-2 operands, pre-transposed so the lane axis is N2
    x2tp = jnp.zeros((P, N2p), jnp.bfloat16).at[:, :N2].set(x2.T.astype(jnp.bfloat16))
    n2 = jnp.sum(x2 * x2, axis=1)
    s2t = jnp.zeros((8, N2p), jnp.float32).at[0, :N2].set(n2).at[1, :N2].set(c2)
    e2t = jnp.zeros((ndp, N2p), jnp.float32).at[:, :N2].set(oh2.T)

    kernel = functools.partial(tl_cov_kernel, ndp=ndp, inv_lc=tuple(inv_lc))
    out = pl.pallas_call(
        kernel,
        out_shape=jax.ShapeDtypeStruct((N1p, N2p), jnp.float32),
        grid=(N1p // TM, N2p // TN),
        in_specs=[
            pl.BlockSpec((TM, P), lambda i, j: (i, 0)),
            pl.BlockSpec((P, TN), lambda i, j: (0, j)),
            pl.BlockSpec((TM, 8), lambda i, j: (i, 0)),
            pl.BlockSpec((8, TN), lambda i, j: (0, j)),
            pl.BlockSpec((TM, ndp6), lambda i, j: (i, 0)),
            pl.BlockSpec((ndp, TN), lambda i, j: (0, j)),
        ],
        out_specs=pl.BlockSpec((TM, TN), lambda i, j: (i, j)),
        compiler_params=pltpu.CompilerParams(
            dimension_semantics=("parallel", "parallel"),
            vmem_limit_bytes=32 * 1024 * 1024,
        ),
    )(x1p, x2tp, s1, s2t, dom1p, e2t)
    return out[:N1, :N2]


# ----------------------------------------------------------------------------
# Pallas kernel: tiled dense matmul with f32 VMEM accumulator
# ----------------------------------------------------------------------------
def matmul_kernel(a_ref, b_ref, o_ref, acc_ref):
    @pl.when(pl.program_id(2) == 0)
    def _():
        acc_ref[...] = jnp.zeros_like(acc_ref)

    acc_ref[...] += jnp.dot(a_ref[...], b_ref[...], preferred_element_type=jnp.float32)
    o_ref[...] = acc_ref[...].astype(o_ref.dtype)


def pallas_matmul(a, b, *, tm_cap=256, tn_cap=256, tk_cap=512):
    M, K = a.shape
    K2, N = b.shape
    assert K == K2
    Ma = _ceil_to(M, 8); TM = min(tm_cap, Ma); Mp = _ceil_to(Ma, TM)
    Na = _ceil_to(N, 128); TN = min(tn_cap, Na); Np = _ceil_to(Na, TN)
    Ka = _ceil_to(K, 128); TK = min(tk_cap, Ka); Kp = _ceil_to(Ka, TK)

    ap = jnp.zeros((Mp, Kp), jnp.float32).at[:M, :K].set(a.astype(jnp.float32))
    bp = jnp.zeros((Kp, Np), jnp.float32).at[:K, :N].set(b.astype(jnp.float32))

    out = pl.pallas_call(
        matmul_kernel,
        out_shape=jax.ShapeDtypeStruct((Mp, Np), jnp.float32),
        grid=(Mp // TM, Np // TN, Kp // TK),
        in_specs=[
            pl.BlockSpec((TM, TK), lambda i, j, k: (i, k)),
            pl.BlockSpec((TK, TN), lambda i, j, k: (k, j)),
        ],
        out_specs=pl.BlockSpec((TM, TN), lambda i, j, k: (i, j)),
        scratch_shapes=[pltpu.VMEM((TM, TN), jnp.float32)],
        compiler_params=pltpu.CompilerParams(
            dimension_semantics=("parallel", "parallel", "arbitrary"),
            vmem_limit_bytes=32 * 1024 * 1024,
        ),
    )(ap, bp)
    return out[:M, :N]


# ----------------------------------------------------------------------------
# PSD projection (nearestPD equivalent: symmetric eigenvalue clamp)
# ----------------------------------------------------------------------------
def _nearest_pd(A, floor=1e-6):
    # TODO(synk): the reference's iterative isPD/nearestPD (try-Cholesky + SVD/eig
    # loop) is data-dependent control flow with no Pallas equivalent; replaced by a
    # single symmetric eigenvalue clamp (Higham projection) which is a no-op for
    # matrices that are already PD up to the floor.
    B = 0.5 * (A + A.T)
    w, V = jnp.linalg.eigh(B)
    w = jnp.maximum(w, floor)
    R = (V * w[None, :]) @ V.T
    return 0.5 * (R + R.T) + floor * jnp.eye(A.shape[0], dtype=A.dtype)


# ----------------------------------------------------------------------------
# Model wrapper (mirrors TLMOGaussianProcess.__init__ / forward, Train_mode path)
# ----------------------------------------------------------------------------
class TLMOGaussianProcessPallas:
    def __init__(self, xT, yT, xS, yS, idxS, DrugC, NDomains, key):
        self.Douts = yT.shape[1]
        self.DrugC = jnp.asarray(DrugC, jnp.float32)[:, None]
        self.NDomains = NDomains
        assert self.DrugC.shape[0] == yT.shape[1]
        self.Pfeat = xT.shape[1]
        D = self.Douts

        # kron(ones(D,1), x.reshape(-1)).reshape(-1,P)  ==  tile(x, (D,1))
        self.xT = jnp.tile(xT, (D, 1))
        self.xS = jnp.tile(xS, (D, 1))
        self.yT = yT.T.reshape(-1, 1)
        self.yS = yS.T.reshape(-1, 1)
        # kron(DrugC, ones(N,1))  ==  repeat each concentration N times
        self.DrugC_xT = jnp.repeat(self.DrugC, xT.shape[0], axis=0)
        self.DrugC_xS = jnp.repeat(self.DrugC, xS.shape[0], axis=0)
        self.idxS = jnp.tile(jnp.asarray(idxS, jnp.int32), D)
        self.idxT = jnp.full((xT.shape[0] * D,), NDomains - 1, jnp.int32)
        self.all_y = jnp.concatenate([self.yS, self.yT], axis=0)

        # --- deterministic synthetic parameter init (shapes from module __init__) ---
        # TODO(synk): the exact Kernel_CrossDomains / TLRelatedness parameterisation is
        # not in the reference snippet; modelled as per-domain Gibbs-RBF kernels and a
        # PSD unit-diagonal relatedness matrix.
        W = 0.3 * jax.random.normal(key, (NDomains, NDomains), jnp.float32) + jnp.eye(NDomains)
        G = W @ W.T
        dg = jnp.sqrt(jnp.diag(G))
        self.Lambda = G / (dg[:, None] * dg[None, :])           # TLRelatedness (LambdaDiDj)

        dom = jnp.arange(NDomains, dtype=jnp.float32)
        self.tl_ls = jnp.stack([1.0 + 0.10 * dom,               # per-domain lengthscales
                                1.2 + 0.05 * dom,
                                0.8 + 0.07 * dom])               # [3, NDomains]
        self.tl_var = jnp.stack([0.9 + 0.02 * dom,               # per-domain variances
                                 0.7 + 0.03 * dom,
                                 0.5 + 0.04 * dom])              # [3, NDomains]
        self.coreg_ls = jnp.array([0.5, 0.7, 0.9], jnp.float32)  # Matern(1.5,2.5,2.5) ls
        self.lik_std_noise = 1.0 * jnp.ones((NDomains,), jnp.float32)
        self.Train_mode = True

        # --- precomputed ND x ND domain-pair tables (coef_q and 1/(l_i^2+l_j^2)) ---
        self.NDp = max(8, _ceil_to(NDomains, 8))
        Pf = float(self.Pfeat)
        coef_tabs, invs_tabs = [], []
        for q in range(3):
            l = self.tl_ls[q]
            v = self.tl_var[q]
            l2 = l * l
            S = l2[:, None] + l2[None, :]
            pref = (2.0 * (l[:, None] * l[None, :]) / S) ** (0.5 * Pf)
            coef = self.Lambda * jnp.sqrt(v[:, None] * v[None, :]) * pref
            invs = 1.0 / S
            coef_tabs.append(jnp.zeros((NDomains, self.NDp), jnp.float32).at[:, :NDomains].set(coef))
            invs_tabs.append(jnp.zeros((NDomains, self.NDp), jnp.float32).at[:, :NDomains].set(invs))
        self.dom_tab = jnp.concatenate(coef_tabs + invs_tabs, axis=1)   # [ND, 6*NDp]
        self.inv_coreg_ls = tuple(float(1.0 / float(c)) for c in self.coreg_ls)

    def forward(self, xT):
        # Train_mode == True branch of the reference forward
        D = self.Douts
        xTr = jnp.tile(xT, (D, 1))
        nT = xTr.shape[0]

        # One pallas_call builds the full joint covariance over [target; source];
        # KTT / KTS / KSS are slices of it (shares all source-side operand DMA).
        x_all = jnp.concatenate([xTr, self.xS], axis=0)
        c_all = jnp.concatenate([self.DrugC_xT[:, 0], self.DrugC_xS[:, 0]], axis=0)
        idx_all = jnp.concatenate([self.idxT, self.idxS], axis=0)

        dom_rows = self.dom_tab[idx_all]                               # [N, 6*NDp]
        oh = jax.nn.one_hot(idx_all, self.NDp, dtype=jnp.float32)      # [N, NDp]

        K_all = tl_cov(x_all, x_all, c_all, c_all, dom_rows, oh, self.inv_coreg_ls)

        KTT = K_all[:nT, :nT]
        KTS = K_all[:nT, nT:]
        KSS = K_all[nT:, nT:]

        noise2 = self.lik_std_noise ** 2
        CSS = KSS + jnp.diag(noise2[self.idxS])
        CTT = KTT + jnp.diag(noise2[self.idxT])

        CSS = _nearest_pd(CSS)
        LSS = jnp.linalg.cholesky(CSS)
        alpha1 = jax.scipy.linalg.solve_triangular(LSS, self.yS, lower=True)
        alpha = jax.scipy.linalg.solve_triangular(LSS.T, alpha1, lower=False)
        mu_star = pallas_matmul(KTS, alpha)

        vTT = jax.scipy.linalg.solve_triangular(LSS, KTS.T, lower=True)
        C_star = CTT - pallas_matmul(vTT.T, vTT)
        C_star = _nearest_pd(C_star)
        L = jnp.linalg.cholesky(C_star)
        return mu_star, L


if __name__ == "__main__":
    key = jax.random.PRNGKey(0)
    kx, ky, kz, kw, kp = jax.random.split(key, 5)

    P = 24          # input features
    NT = 6          # target-domain points
    NS = 16         # source-domain points
    Douts = 7       # drug concentrations (== len(DrugC) in the reference)
    NDomains = 5    # source domains 0..3, target domain = 4

    DrugC = jnp.linspace(0.142857, 1.0, Douts)
    xT = jax.random.normal(kx, (NT, P), jnp.float32)
    xS = jax.random.normal(ky, (NS, P), jnp.float32)
    yT = jnp.clip(jax.random.uniform(kz, (NT, Douts), jnp.float32), 1e-9, None)
    yS = jnp.clip(jax.random.uniform(kw, (NS, Douts), jnp.float32), 1e-9, None)
    idxS = [0] * 4 + [1] * 4 + [2] * 4 + [3] * 4   # sorted source-domain labels

    model = TLMOGaussianProcessPallas(xT, yT, xS, yS, idxS, DrugC, NDomains, kp)
    mu_star, L = model.forward(xT)
    mu_star = jax.block_until_ready(mu_star)
    L = jax.block_until_ready(L)

    assert mu_star.shape == (NT * Douts, 1)
    assert L.shape == (NT * Douts, NT * Douts)
    assert bool(jnp.all(jnp.isfinite(mu_star))) and bool(jnp.all(jnp.isfinite(L)))
    print("KERNEL_OK")
</pallas_src>

<mosaic_0001>
module attributes {stable_mosaic.version = 11 : i64} {
  func.func @tl_cov_kernel(%arg0: i32, %arg1: i32, %arg2: memref<160x24xbf16, #tpu.memory_space<vmem>>, %arg3: memref<24x256xbf16, #tpu.memory_space<vmem>>, %arg4: memref<160x8xf32, #tpu.memory_space<vmem>>, %arg5: memref<8x256xf32, #tpu.memory_space<vmem>>, %arg6: memref<160x48xf32, #tpu.memory_space<vmem>>, %arg7: memref<8x256xf32, #tpu.memory_space<vmem>>, %arg8: memref<160x256xf32, #tpu.memory_space<vmem>>) attributes {dimension_semantics = [#tpu.dimension_semantics<parallel>, #tpu.dimension_semantics<parallel>], iteration_bounds = array<i64: 1, 1>, scalar_prefetch = 0 : i64, scratch_operands = 0 : i64, tpu.core_type = #tpu.core_type<tc>, window_params = [{transform_indices = @transform_0, window_bounds = array<i64: 160, 24>}, {transform_indices = @transform_1, window_bounds = array<i64: 24, 256>}, {transform_indices = @transform_2, window_bounds = array<i64: 160, 8>}, {transform_indices = @transform_3, window_bounds = array<i64: 8, 256>}, {transform_indices = @transform_4, window_bounds = array<i64: 160, 48>}, {transform_indices = @transform_5, window_bounds = array<i64: 8, 256>}, {transform_indices = @transform_6, window_bounds = array<i64: 160, 256>}]} {
    %c0 = arith.constant 0 : index
    %c0_0 = arith.constant 0 : index
    %0 = vector.load %arg2[%c0, %c0_0] : memref<160x24xbf16, #tpu.memory_space<vmem>>, vector<160x24xbf16>
    %c0_1 = arith.constant 0 : index
    %c0_2 = arith.constant 0 : index
    %1 = vector.load %arg3[%c0_1, %c0_2] : memref<24x256xbf16, #tpu.memory_space<vmem>>, vector<24x256xbf16>
    %cst = arith.constant dense<0.000000e+00> : vector<160x256xf32>
    %2 = tpu.matmul %0, %1, %cst {dimension_numbers = #tpu.dot_dimension_numbers<[1], [0], [0], [1], [0, 0, 1, 1], [], []>} : vector<160x24xbf16>, vector<24x256xbf16>, vector<160x256xf32> -> vector<160x256xf32>
    %c0_3 = arith.constant 0 : index
    %c0_4 = arith.constant 0 : index
    %3 = vector.load %arg4[%c0_3, %c0_4] : memref<160x8xf32, #tpu.memory_space<vmem>>, vector<160x1xf32>
    %c0_5 = arith.constant 0 : index
    %c1 = arith.constant 1 : index
    %4 = vector.load %arg4[%c0_5, %c1] : memref<160x8xf32, #tpu.memory_space<vmem>>, vector<160x1xf32>
    %c0_6 = arith.constant 0 : index
    %c0_7 = arith.constant 0 : index
    %5 = vector.load %arg5[%c0_6, %c0_7] : memref<8x256xf32, #tpu.memory_space<vmem>>, vector<1x256xf32>
    %c1_8 = arith.constant 1 : index
    %c0_9 = arith.constant 0 : index
    %6 = vector.load %arg5[%c1_8, %c0_9] : memref<8x256xf32, #tpu.memory_space<vmem>>, vector<1x256xf32>
    %7 = vector.broadcast %3 : vector<160x1xf32> to vector<160x256xf32>
    %8 = vector.broadcast %5 : vector<1x256xf32> to vector<160x256xf32>
    %9 = arith.addf %7, %8 : vector<160x256xf32>
    %cst_10 = arith.constant 2.000000e+00 : f32
    %10 = vector.broadcast %cst_10 : f32 to vector<160x256xf32>
    %11 = arith.mulf %10, %2 : vector<160x256xf32>
    %12 = arith.subf %9, %11 : vector<160x256xf32>
    %cst_11 = arith.constant 0.000000e+00 : f32
    %13 = vector.broadcast %cst_11 : f32 to vector<160x256xf32>
    %14 = arith.maximumf %12, %13 : vector<160x256xf32>
    %15 = vector.broadcast %4 : vector<160x1xf32> to vector<160x256xf32>
    %16 = vector.broadcast %6 : vector<1x256xf32> to vector<160x256xf32>
    %17 = arith.subf %15, %16 : vector<160x256xf32>
    %18 = math.absf %17 : vector<160x256xf32>
    %c0_12 = arith.constant 0 : index
    %c0_13 = arith.constant 0 : index
    %19 = vector.load %arg7[%c0_12, %c0_13] : memref<8x256xf32, #tpu.memory_space<vmem>>, vector<8x256xf32>
    %c0_14 = arith.constant 0 : index
    %c0_15 = arith.constant 0 : index
    %20 = vector.load %arg6[%c0_14, %c0_15] : memref<160x48xf32, #tpu.memory_space<vmem>>, vector<160x48xf32>
    %cst_16 = arith.constant 0.000000e+00 : f32
    %21 = vector.broadcast %cst_16 : f32 to vector<160x256xf32>
    %22 = vector.extract_strided_slice %20 {offsets = [0, 0], sizes = [160, 8], strides = [1, 1]} : vector<160x48xf32> to vector<160x8xf32>
    %cst_17 = arith.constant dense<0.000000e+00> : vector<160x256xf32>
    %23 = tpu.matmul %22, %19, %cst_17 {dimension_numbers = #tpu.dot_dimension_numbers<[1], [0], [0], [1], [0, 0, 1, 1], [], []>} : vector<160x8xf32>, vector<8x256xf32>, vector<160x256xf32> -> vector<160x256xf32>
    %24 = vector.extract_strided_slice %20 {offsets = [0, 24], sizes = [160, 8], strides = [1, 1]} : vector<160x48xf32> to vector<160x8xf32>
    %cst_18 = arith.constant dense<0.000000e+00> : vector<160x256xf32>
    %25 = tpu.matmul %24, %19, %cst_18 {dimension_numbers = #tpu.dot_dimension_numbers<[1], [0], [0], [1], [0, 0, 1, 1], [], []>} : vector<160x8xf32>, vector<8x256xf32>, vector<160x256xf32> -> vector<160x256xf32>
    %cst_19 = arith.constant 2.000000e+00 : f32
    %26 = vector.broadcast %cst_19 : f32 to vector<160x256xf32>
    %27 = arith.mulf %18, %26 : vector<160x256xf32>
    %cst_20 = arith.constant 1.73205078 : f32
    %28 = vector.broadcast %cst_20 : f32 to vector<160x256xf32>
    %29 = arith.mulf %28, %27 : vector<160x256xf32>
    %cst_21 = arith.constant 1.000000e+00 : f32
    %30 = vector.broadcast %cst_21 : f32 to vector<160x256xf32>
    %31 = arith.addf %30, %29 : vector<160x256xf32>
    %cst_22 = arith.constant 1.73205078 : f32
    %32 = vector.broadcast %cst_22 : f32 to vector<160x256xf32>
    %33 = arith.mulf %32, %27 : vector<160x256xf32>
    %34 = arith.mulf %31, %23 : vector<160x256xf32>
    %35 = arith.mulf %14, %25 : vector<160x256xf32>
    %36 = arith.addf %33, %35 : vector<160x256xf32>
    %cst_23 = arith.constant 0.000000e+00 : f32
    %37 = vector.broadcast %cst_23 : f32 to vector<160x256xf32>
    %38 = arith.subf %37, %36 : vector<160x256xf32>
    %39 = math.exp %38 : vector<160x256xf32>
    %40 = arith.mulf %34, %39 : vector<160x256xf32>
    %41 = arith.addf %21, %40 : vector<160x256xf32>
    %42 = vector.extract_strided_slice %20 {offsets = [0, 8], sizes = [160, 8], strides = [1, 1]} : vector<160x48xf32> to vector<160x8xf32>
    %cst_24 = arith.constant dense<0.000000e+00> : vector<160x256xf32>
    %43 = tpu.matmul %42, %19, %cst_24 {dimension_numbers = #tpu.dot_dimension_numbers<[1], [0], [0], [1], [0, 0, 1, 1], [], []>} : vector<160x8xf32>, vector<8x256xf32>, vector<160x256xf32> -> vector<160x256xf32>
    %44 = vector.extract_strided_slice %20 {offsets = [0, 32], sizes = [160, 8], strides = [1, 1]} : vector<160x48xf32> to vector<160x8xf32>
    %cst_25 = arith.constant dense<0.000000e+00> : vector<160x256xf32>
    %45 = tpu.matmul %44, %19, %cst_25 {dimension_numbers = #tpu.dot_dimension_numbers<[1], [0], [0], [1], [0, 0, 1, 1], [], []>} : vector<160x8xf32>, vector<8x256xf32>, vector<160x256xf32> -> vector<160x256xf32>
    %cst_26 = arith.constant 1.42857146 : f32
    %46 = vector.broadcast %cst_26 : f32 to vector<160x256xf32>
    %47 = arith.mulf %18, %46 : vector<160x256xf32>
    %cst_27 = arith.constant 2.23606801 : f32
    %48 = vector.broadcast %cst_27 : f32 to vector<160x256xf32>
    %49 = arith.mulf %48, %47 : vector<160x256xf32>
    %cst_28 = arith.constant 1.000000e+00 : f32
    %50 = vector.broadcast %cst_28 : f32 to vector<160x256xf32>
    %51 = arith.addf %50, %49 : vector<160x256xf32>
    %52 = arith.mulf %47, %47 : vector<160x256xf32>
    %cst_29 = arith.constant 1.66666663 : f32
    %53 = vector.broadcast %cst_29 : f32 to vector<160x256xf32>
    %54 = arith.mulf %53, %52 : vector<160x256xf32>
    %55 = arith.addf %51, %54 : vector<160x256xf32>
    %cst_30 = arith.constant 2.23606801 : f32
    %56 = vector.broadcast %cst_30 : f32 to vector<160x256xf32>
    %57 = arith.mulf %56, %47 : vector<160x256xf32>
    %58 = arith.mulf %55, %43 : vector<160x256xf32>
    %59 = arith.mulf %14, %45 : vector<160x256xf32>
    %60 = arith.addf %57, %59 : vector<160x256xf32>
    %cst_31 = arith.constant 0.000000e+00 : f32
    %61 = vector.broadcast %cst_31 : f32 to vector<160x256xf32>
    %62 = arith.subf %61, %60 : vector<160x256xf32>
    %63 = math.exp %62 : vector<160x256xf32>
    %64 = arith.mulf %58, %63 : vector<160x256xf32>
    %65 = arith.addf %41, %64 : vector<160x256xf32>
    %66 = vector.extract_strided_slice %20 {offsets = [0, 16], sizes = [160, 8], strides = [1, 1]} : vector<160x48xf32> to vector<160x8xf32>
    %cst_32 = arith.constant dense<0.000000e+00> : vector<160x256xf32>
    %67 = tpu.matmul %66, %19, %cst_32 {dimension_numbers = #tpu.dot_dimension_numbers<[1], [0], [0], [1], [0, 0, 1, 1], [], []>} : vector<160x8xf32>, vector<8x256xf32>, vector<160x256xf32> -> vector<160x256xf32>
    %68 = vector.extract_strided_slice %20 {offsets = [0, 40], sizes = [160, 8], strides = [1, 1]} : vector<160x48xf32> to vector<160x8xf32>
    %cst_33 = arith.constant dense<0.000000e+00> : vector<160x256xf32>
    %69 = tpu.matmul %68, %19, %cst_33 {dimension_numbers = #tpu.dot_dimension_numbers<[1], [0], [0], [1], [0, 0, 1, 1], [], []>} : vector<160x8xf32>, vector<8x256xf32>, vector<160x256xf32> -> vector<160x256xf32>
    %cst_34 = arith.constant 1.11111116 : f32
    %70 = vector.broadcast %cst_34 : f32 to vector<160x256xf32>
    %71 = arith.mulf %18, %70 : vector<160x256xf32>
    %cst_35 = arith.constant 2.23606801 : f32
    %72 = vector.broadcast %cst_35 : f32 to vector<160x256xf32>
    %73 = arith.mulf %72, %71 : vector<160x256xf32>
    %cst_36 = arith.constant 1.000000e+00 : f32
    %74 = vector.broadcast %cst_36 : f32 to vector<160x256xf32>
    %75 = arith.addf %74, %73 : vector<160x256xf32>
    %76 = arith.mulf %71, %71 : vector<160x256xf32>
    %cst_37 = arith.constant 1.66666663 : f32
    %77 = vector.broadcast %cst_37 : f32 to vector<160x256xf32>
    %78 = arith.mulf %77, %76 : vector<160x256xf32>
    %79 = arith.addf %75, %78 : vector<160x256xf32>
    %cst_38 = arith.constant 2.23606801 : f32
    %80 = vector.broadcast %cst_38 : f32 to vector<160x256xf32>
    %81 = arith.mulf %80, %71 : vector<160x256xf32>
    %82 = arith.mulf %79, %67 : vector<160x256xf32>
    %83 = arith.mulf %14, %69 : vector<160x256xf32>
    %84 = arith.addf %81, %83 : vector<160x256xf32>
    %cst_39 = arith.constant 0.000000e+00 : f32
    %85 = vector.broadcast %cst_39 : f32 to vector<160x256xf32>
    %86 = arith.subf %85, %84 : vector<160x256xf32>
    %87 = math.exp %86 : vector<160x256xf32>
    %88 = arith.mulf %82, %87 : vector<160x256xf32>
    %89 = arith.addf %65, %88 : vector<160x256xf32>
    %c0_40 = arith.constant 0 : index
    %c0_41 = arith.constant 0 : index
    %90 = vector.load %arg8[%c0_40, %c0_41] : memref<160x256xf32, #tpu.memory_space<vmem>>, vector<160x256xf32>
    tpu.vector_store %arg8[%c0_40, %c0_41], %89 {strides = array<i32>} : memref<160x256xf32, #tpu.memory_space<vmem>>, vector<160x256xf32>,
    return
  }
  func.func @transform_0(%arg0: i32, %arg1: i32) -> (i32, i32) {
    %c0_i32 = arith.constant 0 : i32
    %c0_i32_0 = arith.constant 0 : i32
    return %arg0, %c0_i32 : i32, i32
  }
  func.func @transform_1(%arg0: i32, %arg1: i32) -> (i32, i32) {
    %c0_i32 = arith.constant 0 : i32
    %c0_i32_0 = arith.constant 0 : i32
    return %c0_i32, %arg1 : i32, i32
  }
  func.func @transform_2(%arg0: i32, %arg1: i32) -> (i32, i32) {
    %c0_i32 = arith.constant 0 : i32
    %c0_i32_0 = arith.constant 0 : i32
    return %arg0, %c0_i32 : i32, i32
  }
  func.func @transform_3(%arg0: i32, %arg1: i32) -> (i32, i32) {
    %c0_i32 = arith.constant 0 : i32
    %c0_i32_0 = arith.constant 0 : i32
    return %c0_i32, %arg1 : i32, i32
  }
  func.func @transform_4(%arg0: i32, %arg1: i32) -> (i32, i32) {
    %c0_i32 = arith.constant 0 : i32
    %c0_i32_0 = arith.constant 0 : i32
    return %arg0, %c0_i32 : i32, i32
  }
  func.func @transform_5(%arg0: i32, %arg1: i32) -> (i32, i32) {
    %c0_i32 = arith.constant 0 : i32
    %c0_i32_0 = arith.constant 0 : i32
    return %c0_i32, %arg1 : i32, i32
  }
  func.func @transform_6(%arg0: i32, %arg1: i32) -> (i32, i32) {
    %c0_i32 = arith.constant 0 : i32
    return %arg0, %arg1 : i32, i32
  }
}

</mosaic_0001>

<bundles_post_ra>
// kernel: tpu_custom_call.1
= control target key start
LH: loop header
LB: loop body
LE: loop exit
PB: predicated region body
PF: predicated region fallthrough
CT: control target
= control target key end

     0   :  { %s4352_s27 = smov 104   ;;  %vm144_vm0 = vcmask 1043456   ;;  %vm744_vm1 = vcmask 64512   ;;  %s7588_s0 = inlined_call_operand.vmem [shape: bf16[160,24], index: 0, kind: input, shape index: {}]   ;;  %s7589_s1 = inlined_call_operand.vmem [shape: bf16[24,256], index: 1, kind: input, shape index: {}]   ;;  %s7590_s2 = inlined_call_operand.vmem [shape: f32[160,8], index: 2, kind: input, shape index: {}]   ;;  %s7591_s3 = inlined_call_operand.vmem [shape: f32[8,256], index: 3, kind: input, shape index: {}]   ;;  %s7592_s4 = inlined_call_operand.vmem [shape: f32[160,48], index: 4, kind: input, shape index: {}]   ;;  %s7593_s5 = inlined_call_operand.vmem [shape: f32[8,256], index: 5, kind: input, shape index: {}]   ;;  %s7594_s6 = inlined_call_operand.hbm [shape: f32[160,256], index: 6, kind: output, shape index: {}]  }
   0x1   :  { %v4400_v0 = vld [vmem:[%s7592_s4 + $0x20] sm:$0xff]  ;;  %v4405_v1 = vld [vmem:[%s7592_s4 + $0x10] sm:$0xff]  ;;  %v4067_v9 = vld [vmem:[%s7589_s1 + $0x4] sm:$0xf0] }
   0x2   :  { %v4410_v2 = vld [vmem:[%s7592_s4] sm:$0xff]  ;;  %967 = vrot.lane.b32.xlu2 %v4400_v0, %s4352_s27  ;;  %963 = vrot.lane.b32.xlu1 %v4405_v1, %s4352_s27  ;;  %v47_v3 = vld [vmem:[%s7589_s1 + $0x10] sm:$0xff] }
   0x3   :  { %959 = vrot.lane.b32.xlu0 %v4410_v2, %s4352_s27  ;;  %v105_v4 = vunpack.c.l.b16 %v47_v3  ;;  %v106_v5 = vunpack.c.h.b16 %v47_v3  ;;  %v3789_v6 = vld [vmem:[%s7589_s1] sm:$0xf]  ;;  %v4066_v10 = vld [vmem:[%s7589_s1 + $0x4] sm:$0xf]  ;;  %v3791_v11 = vld [vmem:[%s7589_s1 + $0x8] sm:$0xf0] }
   0x4   :  { %v4436_v12 = vld [vmem:[%s7592_s4 + $0x28] sm:$0xff]  ;;  %v4441_v15 = vld [vmem:[%s7592_s4 + $0x18] sm:$0xff]  ;;  %v4446_v16 = vld [vmem:[%s7593_s5] sm:$0xff]  ;;  %v3790_v19 = vor.u32 %v4067_v9, %v3789_v6  ;;  %v3794_v20 = vor.u32 %v4066_v10, %v3791_v11 }
   0x5   :  { %v109_v7 = vpack.c.b16 %v105_v4, %v105_v4  ;;  %v110_v8 = vpack.c.b16 %v106_v5, %v106_v5  ;;  %v4451_v17 = vld [vmem:[%s7593_s5 + $0x8] sm:$0xff]  ;;  %4068 = vmatpush.msra.mxu2 %v4446_v16 }
   0x6   :  { %v4456_v18 = vld [vmem:[%s7592_s4 + $0x8] sm:$0xff]  ;;  %4069 = vmatpush.msra.mxu3 %v4451_v17 }
   0x7   :  { %v146_v13 = vsel %vm144_vm0, %v109_v7, 0  ;;  %v149_v14 = vsel %vm144_vm0, %v110_v8, 0 }
   0x8   :  { %157 = vmatpush.bf16.msra.mxu0 %v146_v13  ;;  %216 = vmatpush.bf16.msra.mxu1 %v149_v14 }
   0x9   :  { %11 = vsyncpa [#allocation3], 0  ;;  %v4467_v21 = vld [vmem:[%s7592_s4 + $0x48] sm:$0xff]  ;;  %v4056_v22 = vld [vmem:[%s7588_s0] sm:$0xff]  ;;  %vm113_vm2 = vcmask 195584   ;;  %1054 = vmatpush.msrb.mxu2 %v4446_v16  ;;  %1131 = vmatpush.msrb.mxu3 %v4451_v17  ;;  %s4353_s8 = smov 96  }
   0xa   :  { %969 = vrot.lane.b32.xlu2 %v4436_v12, %s4352_s27  ;;  %965 = vrot.lane.b32.xlu1 %v4441_v15, %s4352_s27  ;;  %v4486_v23 = vld [vmem:[%s7592_s4 + $0x40] sm:$0xff]  ;;  %v4491_v24 = vld [vmem:[%s7592_s4 + $0x38] sm:$0xff]  ;;  %v4355_v39 = vmov 0   ;;  %s4356_s28 = smov 88   ;;  %s4357_s7 = smov 112  }
   0xb   :  { %961 = vrot.lane.b32.xlu0 %v4456_v18, %s4352_s27  ;;  %3825 = vmatmul.msk.f32.vlgmr.msra.gmra.mxu2 %vm744_vm1, %v4467_v21  ;;  %v4496_v25 = vld [vmem:[%s7592_s4 + $0x30] sm:$0xff]  ;;  %v4521_v27 = vld [vmem:[%s7592_s4 + $0x58] sm:$0xff]  ;;  %v4057_v28 = vld [vmem:[%s7588_s0 + $0x8] sm:$0xff]  ;;  %s3735_s14 = sshll.u32 %s7594_s6, 4  ;;  %s4360_s15 = smov 256   ;;  %s3736_s14 = int_to_ptr.hbm [resolvable:$true] %s3735_s14 }
   0xc   :  { %158 = vmatpush.bf16.msra.mxu0 %v3790_v19  ;;  %217 = vmatpush.bf16.msra.mxu1 %v3794_v20  ;;  %v4509_v26 = vld [vmem:[%s7592_s4 + $0x50] sm:$0xff]  ;;  %v4546_v30 = vld [vmem:[%s7592_s4 + $0x68] sm:$0xff]  ;;  %v4551_v31 = vld [vmem:[%s7592_s4 + $0x60] sm:$0xff]  ;;  %s4361_s16 = smov 16  }
   0xd   :  { %3845 = vmatmul.msk.f32.vlgmr.msra.gmra.mxu3 %vm744_vm1, %v4467_v21  ;;  %1962 = vmatpush.msra.mxu2 %v4446_v16  ;;  %v4541_v29 = vld [vmem:[%s7592_s4 + $0x70] sm:$0xff]  ;;  %v4566_v32 = vld [vmem:[%s7592_s4 + $0x88] sm:$0xff]  ;;  %v4571_v33 = vld [vmem:[%s7592_s4 + $0x80] sm:$0xff] }
   0xe   :  { %2039 = vmatpush.msra.mxu3 %v4451_v17  ;;  %v4576_v34 = vld [vmem:[%s7592_s4 + $0x78] sm:$0xff]  ;;  %v4058_v35 = vld [vmem:[%s7588_s0 + $0x10] sm:$0xff]  ;;  %4080 = vset.pattern.permute.xlu1 %v4355_v39  ;;  %v4060_v40 = vld [vmem:[%s7588_s0 + $0x20] sm:$0xff] }
   0xf   :  { %3795 = vmatmul.msk.bf16.vlgmr.msra.gmra.mxu0 %vm113_vm2, %v4056_v22  ;;  %3805 = vmatmul.msk.bf16.vlgmr.msra.gmra.mxu1 %vm113_vm2, %v4056_v22  ;;  %v4596_v36 = vld [vmem:[%s7592_s4 + $0x98] sm:$0xff]  ;;  %v4601_v37 = vld [vmem:[%s7592_s4 + $0x90] sm:$0xff]  ;;  %s4354_s4 = smov 120   ;;  %v4061_v41 = vld [vmem:[%s7588_s0 + $0x28] sm:$0xff] }
  0x10   :  { %820 = vmatpush.msrb.mxu0 %v4446_v16  ;;  %897 = vmatpush.msrb.mxu1 %v4451_v17  ;;  %v4059_v38 = vld [vmem:[%s7588_s0 + $0x18] sm:$0xff]  ;;  %v4691_v44 = vld [vmem:[%s7590_s2] sm:$0xff]  ;;  %v4062_v45 = vld [vmem:[%s7588_s0 + $0x30] sm:$0xff] }
  0x11   :  { %4081 = vset.pattern.permute.xlu2 %v4355_v39  ;;  %4082 = vset.pattern.permute.xlu0 %v4355_v39  ;;  %v4718_v50 = vld [vmem:[%s7590_s2 + $0x8] sm:$0xff]  ;;  %v4063_v51 = vld [vmem:[%s7588_s0 + $0x38] sm:$0xff]  ;;  %v4064_v58 = vld [vmem:[%s7588_s0 + $0x40] sm:$0xff] }
  0x12   :  { %1728 = vmatpush.msra.mxu0 %v4446_v16  ;;  %975 = vrot.lane.b32.xlu2 %v4486_v23, %s4352_s27  ;;  %v4776_v4 = vld [vmem:[%s7590_s2 + $0x10] sm:$0xff]  ;;  %v4065_v14 = vld [vmem:[%s7588_s0 + $0x48] sm:$0xff]  ;;  %v4833_v39 = vld [vmem:[%s7590_s2 + $0x18] sm:$0xff] }
  0x13   :  { %973 = vrot.lane.b32.xlu1 %v4491_v24, %s4352_s27  ;;  %971 = vrot.lane.b32.xlu0 %v4496_v25, %s4352_s27  ;;  %7777 = vst [vmem:[#allocation10_spill] sm:$0xff] %v4833_v39 }
  0x14   :  { %3826 = vmatmul.msk.f32.gmra.mxu2 %vm744_vm1, %v4509_v26  ;;  %1805 = vmatpush.msra.mxu1 %v4451_v17 }
  0x15   :  { %3846 = vmatmul.msk.f32.gmra.mxu3 %vm744_vm1, %v4509_v26 }
  0x1a   :  { %981 = vrot.lane.b32.xlu2 %v4521_v27, %s4352_s27 }
  0x1b   :  { %979 = vrot.lane.b32.xlu1 %v4509_v26, %s4352_s27  ;;  %977 = vrot.lane.b32.xlu0 %v4467_v21, %s4352_s27 }
  0x1c   :  { %3827 = vmatmul.msk.f32.gmra.mxu2 %vm744_vm1, %v4521_v27 }
  0x1d   :  { %3847 = vmatmul.msk.f32.gmra.mxu3 %vm744_vm1, %v4521_v27 }
  0x1f   :  { %3796 = vmatmul.msk.bf16.gmra.mxu0 %vm113_vm2, %v4057_v28  ;;  %3806 = vmatmul.msk.bf16.gmra.mxu1 %vm113_vm2, %v4057_v28 }
  0x22   :  { %987 = vrot.lane.b32.xlu2 %v4541_v29, %s4352_s27 }
  0x23   :  { %985 = vrot.lane.b32.xlu1 %v4546_v30, %s4352_s27  ;;  %983 = vrot.lane.b32.xlu0 %v4551_v31, %s4352_s27 }
  0x24   :  { %3828 = vmatmul.msk.f32.gmra.mxu2 %vm744_vm1, %v4551_v31 }
  0x25   :  { %3848 = vmatmul.msk.f32.gmra.mxu3 %vm744_vm1, %v4551_v31 }
  0x2a   :  { %993 = vrot.lane.b32.xlu2 %v4566_v32, %s4352_s27 }
  0x2b   :  { %991 = vrot.lane.b32.xlu1 %v4571_v33, %s4352_s27  ;;  %989 = vrot.lane.b32.xlu0 %v4576_v34, %s4352_s27 }
  0x2c   :  { %3829 = vmatmul.msk.f32.gmra.mxu2 %vm744_vm1, %v4546_v30 }
  0x2d   :  { %3849 = vmatmul.msk.f32.gmra.mxu3 %vm744_vm1, %v4546_v30 }
  0x2f   :  { %3797 = vmatmul.msk.bf16.gmra.mxu0 %vm113_vm2, %v4058_v35  ;;  %3807 = vmatmul.msk.bf16.gmra.mxu1 %vm113_vm2, %v4058_v35 }
  0x32   :  { %1867 = vrot.lane.b32.xlu2 %v4410_v2, %s4353_s8 }
  0x33   :  { %997 = vrot.lane.b32.xlu1 %v4596_v36, %s4352_s27  ;;  %995 = vrot.lane.b32.xlu0 %v4601_v37, %s4352_s27 }
  0x34   :  { %3830 = vmatmul.msk.f32.gmra.mxu2 %vm744_vm1, %v4541_v29 }
  0x35   :  { %3850 = vmatmul.msk.f32.gmra.mxu3 %vm744_vm1, %v4541_v29 }
  0x3a   :  { %1633 = vrot.lane.b32.xlu2 %v4410_v2, %s4354_s4 }
  0x3b   :  { %1871 = vrot.lane.b32.xlu1 %v4405_v1, %s4353_s8  ;;  %1869 = vrot.lane.b32.xlu0 %v4456_v18, %s4353_s8 }
  0x3c   :  { %3831 = vmatmul.msk.f32.gmra.mxu2 %vm744_vm1, %v4576_v34 }
  0x3d   :  { %3851 = vmatmul.msk.f32.gmra.mxu3 %vm744_vm1, %v4576_v34 }
  0x3f   :  { %3798 = vmatmul.msk.bf16.gmra.mxu0 %vm113_vm2, %v4059_v38  ;;  %3808 = vmatmul.msk.bf16.gmra.mxu1 %vm113_vm2, %v4059_v38 }
  0x42   :  { %1875 = vrot.lane.b32.xlu2 %v4400_v0, %s4353_s8 }
  0x43   :  { %1635 = vrot.lane.b32.xlu1 %v4456_v18, %s4354_s4  ;;  %1873 = vrot.lane.b32.xlu0 %v4441_v15, %s4353_s8 }
  0x44   :  { %3832 = vmatmul.msk.f32.gmra.mxu2 %vm744_vm1, %v4571_v33 }
  0x45   :  { %3852 = vmatmul.msk.f32.gmra.mxu3 %vm744_vm1, %v4571_v33 }
  0x4a   :  { %1639 = vrot.lane.b32.xlu2 %v4441_v15, %s4354_s4 }
  0x4b   :  { %1877 = vrot.lane.b32.xlu1 %v4436_v12, %s4353_s8  ;;  %1637 = vrot.lane.b32.xlu0 %v4405_v1, %s4354_s4 }
  0x4c   :  { %3833 = vmatmul.msk.f32.gmra.mxu2 %vm744_vm1, %v4566_v32 }
  0x4d   :  { %3853 = vmatmul.msk.f32.gmra.mxu3 %vm744_vm1, %v4566_v32 }
  0x4f   :  { %3799 = vmatmul.msk.bf16.gmra.mxu0 %vm113_vm2, %v4060_v40  ;;  %3809 = vmatmul.msk.bf16.gmra.mxu1 %vm113_vm2, %v4060_v40 }
  0x52   :  { %1881 = vrot.lane.b32.xlu2 %v4491_v24, %s4353_s8 }
  0x53   :  { %1641 = vrot.lane.b32.xlu1 %v4400_v0, %s4354_s4  ;;  %1879 = vrot.lane.b32.xlu0 %v4496_v25, %s4353_s8 }
  0x54   :  { %3834 = vmatmul.msk.f32.gmra.mxu2 %vm744_vm1, %v4601_v37 }
  0x55   :  { %3854 = vmatmul.msk.f32.gmra.mxu3 %vm744_vm1, %v4601_v37 }
  0x5a   :  { %1645 = vrot.lane.b32.xlu2 %v4496_v25, %s4354_s4 }
  0x5b   :  { %1883 = vrot.lane.b32.xlu1 %v4486_v23, %s4353_s8  ;;  %1643 = vrot.lane.b32.xlu0 %v4436_v12, %s4354_s4 }
  0x5c   :  { %3835 = vmatmul.msk.f32.gmra.mxu2 %vm744_vm1, %v4596_v36  ;;  %v4674_v42 = vpop.permute.xlu2 %967 }
  0x5d   :  { %3855 = vmatmul.msk.f32.gmra.mxu3 %vm744_vm1, %v4596_v36 }
  0x5f   :  { %3800 = vmatmul.msk.bf16.gmra.mxu0 %vm113_vm2, %v4061_v41  ;;  %3810 = vmatmul.msk.bf16.gmra.mxu1 %vm113_vm2, %v4061_v41 }
  0x62   :  { %1887 = vrot.lane.b32.xlu2 %v4509_v26, %s4353_s8 }
  0x63   :  { %1647 = vrot.lane.b32.xlu1 %v4491_v24, %s4354_s4  ;;  %1885 = vrot.lane.b32.xlu0 %v4467_v21, %s4353_s8 }
  0x64   :  { %v4686_v43 = vpop.permute.xlu2 %969 }
  0x6a   :  { %1889 = vrot.lane.b32.xlu2 %v4521_v27, %s4353_s8 }
  0x6b   :  { %294 = vperm.xlu1 %4080, %v4691_v44   ;;  %1649 = vrot.lane.b32.xlu0 %v4486_v23, %s4354_s4 }
  0x6c   :  { %v4701_v46 = vpop.permute.xlu2 %975 }
  0x6f   :  { %3801 = vmatmul.msk.bf16.gmra.mxu0 %vm113_vm2, %v4062_v45  ;;  %3811 = vmatmul.msk.bf16.gmra.mxu1 %vm113_vm2, %v4062_v45 }
  0x72   :  { %1653 = vrot.lane.b32.xlu2 %v4509_v26, %s4354_s4 }
  0x73   :  { %1891 = vrot.lane.b32.xlu1 %v4551_v31, %s4353_s8  ;;  %1651 = vrot.lane.b32.xlu0 %v4467_v21, %s4354_s4 }
  0x74   :  { %v4711_v47 = vpop.permute.xlu2 %981  ;;  %v964_v48 = vpop.permute.xlu1 %963 }
  0x75   :  { %v960_v49 = vpop.permute.xlu0 %959 }
  0x76   :  { %3856 = vmatmul.msk.f32.vlgmr.msrb.gmra.mxu2 %vm744_vm1, %v960_v49  ;;  %3876 = vmatmul.msk.f32.vlgmr.msrb.gmra.mxu3 %vm744_vm1, %v960_v49 }
  0x77   :  { %2990 = vmatpush.msrb.mxu2 %v4446_v16  ;;  %3067 = vmatpush.msrb.mxu3 %v4451_v17 }
  0x7a   :  { %299 = vperm.xlu2 %4081, %v4718_v50  }
  0x7b   :  { %1655 = vrot.lane.b32.xlu1 %v4521_v27, %s4354_s4  ;;  %1893 = vrot.lane.b32.xlu0 %v4546_v30, %s4353_s8 }
  0x7c   :  { %v4730_v52 = vpop.permute.xlu2 %987  ;;  %v966_v53 = vpop.permute.xlu1 %965 }
  0x7d   :  { %v962_v54 = vpop.permute.xlu0 %961 }
  0x7e   :  { %3857 = vmatmul.msk.f32.gmra.mxu2 %vm744_vm1, %v962_v54  ;;  %3877 = vmatmul.msk.f32.gmra.mxu3 %vm744_vm1, %v962_v54 }
  0x7f   :  { %3802 = vmatmul.msk.bf16.gmra.mxu0 %vm113_vm2, %v4063_v51  ;;  %3812 = vmatmul.msk.bf16.gmra.mxu1 %vm113_vm2, %v4063_v51 }
  0x82   :  { %1897 = vrot.lane.b32.xlu2 %v4576_v34, %s4353_s8 }
  0x83   :  { %1657 = vrot.lane.b32.xlu1 %v4551_v31, %s4354_s4  ;;  %1895 = vrot.lane.b32.xlu0 %v4541_v29, %s4353_s8 }
  0x84   :  { %v4742_v55 = vpop.permute.xlu2 %993 }
  0x85   :  { %v4744_v56 = vpop.permute.xlu1 %973  ;;  %v972_v57 = vpop.permute.xlu0 %971 }
  0x86   :  { %3858 = vmatmul.msk.f32.gmra.mxu2 %vm744_vm1, %v964_v48  ;;  %3878 = vmatmul.msk.f32.gmra.mxu3 %vm744_vm1, %v964_v48 }
  0x8a   :  { %1661 = vrot.lane.b32.xlu2 %v4541_v29, %s4354_s4 }
  0x8b   :  { %1899 = vrot.lane.b32.xlu1 %v4571_v33, %s4353_s8  ;;  %1659 = vrot.lane.b32.xlu0 %v4546_v30, %s4354_s4 }
  0x8c   :  { %v4759_v60 = vpop.permute.xlu2 %1867  ;;  %v4763_v62 = vpop.f32.mrf.mxu0 }
  0x8d   :  { %v4757_v59 = vpop.permute.xlu1 %979  ;;  %v4761_v61 = vpop.permute.xlu0 %977 }
  0x8e   :  { %v4765_v63 = vpop.f32.mrf.mxu1  ;;  %3859 = vmatmul.msk.f32.gmra.mxu2 %vm744_vm1, %v966_v53  ;;  %3879 = vmatmul.msk.f32.gmra.mxu3 %vm744_vm1, %v966_v53  ;;  %v4769_v3 = vpop.f32.mrf.mxu2 }
  0x8f   :  { %7772 = vst [vmem:[#allocation5_spill] sm:$0xff] %v4769_v3  ;;  %3803 = vmatmul.msk.bf16.gmra.mxu0 %vm113_vm2, %v4064_v58  ;;  %3813 = vmatmul.msk.bf16.gmra.mxu1 %vm113_vm2, %v4064_v58 }
  0x90   :  { %v4778_v5 = vpop.f32.mrf.mxu3 }
  0x91   :  { %7773 = vst [vmem:[#allocation6_spill] sm:$0xff] %v4778_v5 }
  0x92   :  { %1663 = vrot.lane.b32.xlu2 %v4576_v34, %s4354_s4 }
  0x93   :  { %1901 = vrot.lane.b32.xlu1 %v4566_v32, %s4353_s8  ;;  %304 = vperm.xlu0 %4082, %v4776_v4  }
  0x94   :  { %v4787_v7 = vpop.permute.xlu2 %1633  ;;  %v4791_v9 = vpop.f32.mrf.mxu0 }
  0x95   :  { %v4785_v6 = vpop.permute.xlu1 %985  ;;  %v4789_v8 = vpop.permute.xlu0 %983 }
  0x96   :  { %v4793_v10 = vpop.f32.mrf.mxu1  ;;  %3860 = vmatmul.msk.f32.gmra.mxu2 %vm744_vm1, %v4674_v42  ;;  %3880 = vmatmul.msk.f32.gmra.mxu3 %vm744_vm1, %v4674_v42 }
  0x97   :  { %v4799_v11 = vpop.f32.mrf.mxu2 }
  0x98   :  { %7774 = vst [vmem:[#allocation7_spill] sm:$0xff] %v4799_v11  ;;  %v4801_v13 = vpop.f32.mrf.mxu3 }
  0x99   :  { %7775 = vst [vmem:[#allocation8_spill] sm:$0xff] %v4801_v13 }
  0x9a   :  { %1665 = vrot.lane.b32.xlu2 %v4571_v33, %s4354_s4 }
  0x9b   :  { %1903 = vrot.lane.b32.xlu1 %v4601_v37, %s4353_s8  ;;  %1905 = vrot.lane.b32.xlu0 %v4596_v36, %s4353_s8 }
  0x9c   :  { %v4814_v20 = vpop.permute.xlu2 %1875  ;;  %v4818_v28 = vpop.f32.mrf.mxu0 }
  0x9d   :  { %v4812_v19 = vpop.permute.xlu1 %991  ;;  %v4816_v22 = vpop.permute.xlu0 %989 }
  0x9e   :  { %v4820_v35 = vpop.f32.mrf.mxu1  ;;  %3861 = vmatmul.msk.f32.gmra.mxu2 %vm744_vm1, %v4686_v43  ;;  %3881 = vmatmul.msk.f32.gmra.mxu3 %vm744_vm1, %v4686_v43 }
  0x9f   :  { %v4826_v38 = vpop.f32.mrf.mxu2  ;;  %3804 = vmatmul.msk.bf16.gmra.mxu0 %vm113_vm2, %v4065_v14  ;;  %3814 = vmatmul.msk.bf16.gmra.mxu1 %vm113_vm2, %v4065_v14 }
  0xa0   :  { %7776 = vst [vmem:[#allocation9_spill] sm:$0xff] %v4826_v38  ;;  %v4835_v40 = vpop.f32.mrf.mxu3  ;;  %v4887_v38 = vld [vmem:[%s7590_s2 + $0x20] sm:$0xff] }
  0xa1   :  { %7778 = vst [vmem:[#allocation11_spill] sm:$0xff] %v4835_v40 }
  0xa2   :  { %309 = vperm.xlu2 %4081, %v4833_v39   ;;  %7783 = vst [vmem:[#allocation16_spill] sm:$0xff] %v4887_v38 }
  0xa3   :  { %1667 = vrot.lane.b32.xlu1 %v4566_v32, %s4354_s4  ;;  %2895 = vrot.lane.b32.xlu0 %v4410_v2, %s4356_s28 }
  0xa4   :  { %v4844_v42 = vpop.permute.xlu2 %1639  ;;  %v4848_v45 = vpop.f32.mrf.mxu0 }
  0xa5   :  { %v4842_v41 = vpop.permute.xlu1 %997  ;;  %v4846_v43 = vpop.permute.xlu0 %995 }
  0xa6   :  { %v4850_v48 = vpop.f32.mrf.mxu1  ;;  %3862 = vmatmul.msk.f32.gmra.mxu2 %vm744_vm1, %v972_v57  ;;  %3882 = vmatmul.msk.f32.gmra.mxu3 %vm744_vm1, %v972_v57 }
  0xa7   :  { %v4854_v49 = vpop.f32.mrf.mxu2 }
  0xa8   :  { %7779 = vst [vmem:[#allocation12_spill] sm:$0xff] %v4854_v49  ;;  %v4856_v51 = vpop.f32.mrf.mxu3 }
  0xa9   :  { %7780 = vst [vmem:[#allocation13_spill] sm:$0xff] %v4856_v51 }
  0xaa   :  { %2897 = vrot.lane.b32.xlu2 %v4456_v18, %s4356_s28 }
  0xab   :  { %1669 = vrot.lane.b32.xlu1 %v4601_v37, %s4354_s4  ;;  %1671 = vrot.lane.b32.xlu0 %v4596_v36, %s4354_s4 }
  0xac   :  { %v4866_v54 = vpop.permute.xlu2 %1881  ;;  %v4870_v57 = vpop.f32.mrf.mxu0 }
  0xad   :  { %v4864_v53 = vpop.permute.xlu1 %1871  ;;  %7781 = vst [vmem:[#allocation14_spill] sm:$0xff] %v4866_v54  ;;  %v4868_v58 = vpop.permute.xlu0 %1869 }
  0xae   :  { %v4872_v14 = vpop.f32.mrf.mxu1  ;;  %3863 = vmatmul.msk.f32.gmra.mxu2 %vm744_vm1, %v4744_v56  ;;  %3883 = vmatmul.msk.f32.gmra.mxu3 %vm744_vm1, %v4744_v56 }
  0xaf   :  { %3816 = vmatmul.msk.f32.vlgmr.msrb.gmra.mxu0 %vm744_vm1, %v4410_v2  ;;  %3836 = vmatmul.msk.f32.vlgmr.msrb.gmra.mxu1 %vm744_vm1, %v4410_v2  ;;  %v4882_v40 = vpop.f32.mrf.mxu2 }
  0xb0   :  { %7782 = vst [vmem:[#allocation15_spill] sm:$0xff] %v4882_v40  ;;  %v4889_v13 = vpop.f32.mrf.mxu3  ;;  %2756 = vmatpush.msrb.mxu0 %v4446_v16  ;;  %2833 = vmatpush.msrb.mxu1 %v4451_v17 }
  0xb1   :  { %7784 = vst [vmem:[#allocation17_spill] sm:$0xff] %v4889_v13 }
  0xb2   :  { %2661 = vrot.lane.b32.xlu2 %v4410_v2, %s4357_s7 }
  0xb3   :  { %2899 = vrot.lane.b32.xlu1 %v4405_v1, %s4356_s28  ;;  %314 = vperm.xlu0 %4082, %v4887_v38  }
  0xb4   :  { %v4900_v40 = vpop.permute.xlu2 %1645  ;;  %v4904_v13 = vpop.f32.mrf.mxu0 }
  0xb5   :  { %v4898_v56 = vpop.permute.xlu1 %1635  ;;  %v4902_v11 = vpop.permute.xlu0 %1873 }
  0xb6   :  { %v4906_v16 = vpop.f32.mrf.mxu1  ;;  %3864 = vmatmul.msk.f32.gmra.mxu2 %vm744_vm1, %v4701_v46  ;;  %3884 = vmatmul.msk.f32.gmra.mxu3 %vm744_vm1, %v4701_v46 }
  0xb7   :  { %3817 = vmatmul.msk.f32.gmra.mxu0 %vm744_vm1, %v4456_v18  ;;  %3837 = vmatmul.msk.f32.gmra.mxu1 %vm744_vm1, %v4456_v18  ;;  %v4916_v2 = vpop.f32.mrf.mxu2 }
  0xb8   :  { %7785 = vst [vmem:[#allocation18_spill] sm:$0xff] %v4916_v2  ;;  %v4918_v17 = vpop.f32.mrf.mxu3 }
  0xb9   :  { %7786 = vst [vmem:[#allocation19_spill] sm:$0xff] %v4918_v17 }
  0xba   :  { %2663 = vrot.lane.b32.xlu2 %v4456_v18, %s4357_s7 }
  0xbb   :  { %2901 = vrot.lane.b32.xlu1 %v4441_v15, %s4356_s28  ;;  %2903 = vrot.lane.b32.xlu0 %v4400_v0, %s4356_s28 }
  0xbc   :  { %v4928_v51 = vpop.permute.xlu2 %1887  ;;  %v4932_v5 = vpop.f32.mrf.mxu0 }
  0xbd   :  { %v4926_v46 = vpop.permute.xlu1 %1877  ;;  %7787 = vst [vmem:[#allocation20_spill] sm:$0xff] %v4928_v51  ;;  %v4930_v49 = vpop.permute.xlu0 %1637 }
  0xbe   :  { %v4934_v2 = vpop.f32.mrf.mxu1  ;;  %3865 = vmatmul.msk.f32.gmra.mxu2 %vm744_vm1, %v4761_v61  ;;  %3885 = vmatmul.msk.f32.gmra.mxu3 %vm744_vm1, %v4761_v61 }
  0xbf   :  { %3818 = vmatmul.msk.f32.gmra.mxu0 %vm744_vm1, %v4405_v1  ;;  %3838 = vmatmul.msk.f32.gmra.mxu1 %vm744_vm1, %v4405_v1  ;;  %v4950_v18 = vpop.f32.mrf.mxu2 }
  0xc0   :  { %7788 = vst [vmem:[#allocation21_spill] sm:$0xff] %v4950_v18  ;;  %v4952_v17 = vpop.f32.mrf.mxu3 }
  0xc1   :  { %7789 = vst [vmem:[#allocation22_spill] sm:$0xff] %v4952_v17 }
  0xc2   :  { %2905 = vrot.lane.b32.xlu2 %v4436_v12, %s4356_s28 }
  0xc3   :  { %2665 = vrot.lane.b32.xlu1 %v4405_v1, %s4357_s7  ;;  %2667 = vrot.lane.b32.xlu0 %v4441_v15, %s4357_s7  ;;  %v4975_v1 = vld [vmem:[%s7590_s2 + $0x28] sm:$0xff] }
  0xc4   :  { %v4956_v3 = vpop.permute.xlu2 %1889  ;;  %v4960_v54 = vpop.f32.mrf.mxu0  ;;  %7794 = vst [vmem:[#allocation27_spill] sm:$0xff] %v4975_v1 }
  0xc5   :  { %v4954_v61 = vpop.permute.xlu1 %1641  ;;  %7790 = vst [vmem:[#allocation23_spill] sm:$0xff] %v4956_v3  ;;  %v4958_v51 = vpop.permute.xlu0 %1879 }
  0xc6   :  { %7791 = vst [vmem:[#allocation24_spill] sm:$0xff] %v4958_v51  ;;  %v4962_v39 = vpop.f32.mrf.mxu1  ;;  %3866 = vmatmul.msk.f32.gmra.mxu2 %vm744_vm1, %v4757_v59  ;;  %3886 = vmatmul.msk.f32.gmra.mxu3 %vm744_vm1, %v4757_v59 }
  0xc7   :  { %7792 = vst [vmem:[#allocation25_spill] sm:$0xff] %v4960_v54  ;;  %3819 = vmatmul.msk.f32.gmra.mxu0 %vm744_vm1, %v4441_v15  ;;  %3839 = vmatmul.msk.f32.gmra.mxu1 %vm744_vm1, %v4441_v15  ;;  %v5003_v54 = vpop.f32.mrf.mxu2 }
  0xc8   :  { %7793 = vst [vmem:[#allocation26_spill] sm:$0xff] %v4962_v39  ;;  %v289_v39 = vld [vmem:[%s7591_s3] ss:$8 sm:$0x3] }
  0xc9   :  { %7799 = vst [vmem:[#allocation32_spill] sm:$0xff] %v5003_v54 }
  0xca   :  { %2907 = vrot.lane.b32.xlu2 %v4496_v25, %s4356_s28 }
  0xcb   :  { %319 = vperm.xlu1 %4080, %v4975_v1   ;;  %2669 = vrot.lane.b32.xlu0 %v4400_v0, %s4357_s7 }
  0xcc   :  { %v4984_v17 = vpop.permute.xlu2 %1653  ;;  %v4988_v15 = vpop.f32.mrf.mxu0 }
  0xcd   :  { %v4982_v59 = vpop.permute.xlu1 %1883  ;;  %7796 = vst [vmem:[#allocation29_spill] sm:$0xff] %v4984_v17  ;;  %v4986_v18 = vpop.permute.xlu0 %1643 }
  0xce   :  { %7795 = vst [vmem:[#allocation28_spill] sm:$0xff] %v4982_v59  ;;  %v4990_v3 = vpop.f32.mrf.mxu1  ;;  %3867 = vmatmul.msk.f32.gmra.mxu2 %vm744_vm1, %v4711_v47  ;;  %3887 = vmatmul.msk.f32.gmra.mxu3 %vm744_vm1, %v4711_v47 }
  0xcf   :  { %7797 = vst [vmem:[#allocation30_spill] sm:$0xff] %v4988_v15  ;;  %3820 = vmatmul.msk.f32.gmra.mxu0 %vm744_vm1, %v4400_v0  ;;  %3840 = vmatmul.msk.f32.gmra.mxu1 %vm744_vm1, %v4400_v0  ;;  %v5005_v15 = vpop.f32.mrf.mxu3  ;;  %v5020_v0 = vmul.f32 2.0, %v4793_v10  ;;  %v438_v10 = vmul.f32 2.0, %v4765_v63 }
  0xd0   :  { %7798 = vst [vmem:[#allocation31_spill] sm:$0xff] %v4990_v3  ;;  %v5007_v3 = vperm.slane %v289_v39, 1 }
  0xd1   :  { %7800 = vst [vmem:[#allocation33_spill] sm:$0xff] %v5005_v15 }
  0xd2   :  { %2671 = vrot.lane.b32.xlu2 %v4436_v12, %s4357_s7 }
  0xd3   :  { %2909 = vrot.lane.b32.xlu1 %v4491_v24, %s4356_s28  ;;  %2911 = vrot.lane.b32.xlu0 %v4486_v23, %s4356_s28 }
  0xd4   :  { %v5017_v59 = vpop.permute.xlu2 %299  ;;  %v5028_v1 = vpop.f32.mrf.mxu0 }
  0xd5   :  { %v5015_v47 = vpop.permute.xlu1 %1647  ;;  %v5022_v54 = vpop.permute.xlu0 %1885  ;;  %v5026_v15 = vadd.f32 %v5007_v3, %v5017_v59  ;;  %7802 = vst [vmem:[#allocation35_spill] sm:$0xff] %v5028_v1  ;;  %v5045_v1 = vld [vmem:[%s7590_s2 + $0x30] sm:$0xff] }
  0xd6   :  { %7801 = vst [vmem:[#allocation34_spill] sm:$0xff] %v5022_v54  ;;  %v5030_v38 = vpop.f32.mrf.mxu1  ;;  %3868 = vmatmul.msk.f32.gmra.mxu2 %vm744_vm1, %v4789_v8  ;;  %3888 = vmatmul.msk.f32.gmra.mxu3 %vm744_vm1, %v4789_v8 }
  0xd7   :  { %7803 = vst [vmem:[#allocation36_spill] sm:$0xff] %v5030_v38  ;;  %3821 = vmatmul.msk.f32.gmra.mxu0 %vm744_vm1, %v4436_v12  ;;  %3841 = vmatmul.msk.f32.gmra.mxu1 %vm744_vm1, %v4436_v12  ;;  %v5047_v38 = vpop.f32.mrf.mxu2  ;;  %v5049_v54 = vpop.f32.mrf.mxu3 }
  0xd8   :  { %7804 = vst [vmem:[#allocation37_spill] sm:$0xff] %v5045_v1 }
  0xd9   :  { %7805 = vst [vmem:[#allocation38_spill] sm:$0xff] %v5047_v38 }
  0xda   :  { %7806 = vst [vmem:[#allocation39_spill] sm:$0xff] %v5049_v54  ;;  %324 = vperm.xlu2 %4081, %v5045_v1  }
  0xdb   :  { %2673 = vrot.lane.b32.xlu1 %v4496_v25, %s4357_s7  ;;  %2913 = vrot.lane.b32.xlu0 %v4467_v21, %s4356_s28 }
  0xdc   :  { %v5056_v8 = vpop.permute.xlu2 %1897  ;;  %v5062_v38 = vpop.f32.mrf.mxu0 }
  0xdd   :  { %7807 = vst [vmem:[#allocation40_spill] sm:$0xff] %v5056_v8  ;;  %v295_v12 = vpop.permute.xlu1 %294  ;;  %v5059_v17 = vpop.permute.xlu0 %1649 }
  0xde   :  { %v398_v51 = vadd.f32 %v5007_v3, %v295_v12  ;;  %7808 = vst [vmem:[#allocation41_spill] sm:$0xff] %v5062_v38  ;;  %v5064_v54 = vpop.f32.mrf.mxu1  ;;  %3869 = vmatmul.msk.f32.gmra.mxu2 %vm744_vm1, %v4785_v6  ;;  %3889 = vmatmul.msk.f32.gmra.mxu3 %vm744_vm1, %v4785_v6 }
  0xdf   :  { %7809 = vst [vmem:[#allocation42_spill] sm:$0xff] %v5064_v54  ;;  %3822 = vmatmul.msk.f32.gmra.mxu0 %vm744_vm1, %v4496_v25  ;;  %3842 = vmatmul.msk.f32.gmra.mxu1 %vm744_vm1, %v4496_v25  ;;  %v5080_v63 = vpop.f32.mrf.mxu2  ;;  %v5082_v38 = vpop.f32.mrf.mxu3 }
  0xe0   :  { %v478_v1 = vsub.f32 %v398_v51, %v438_v10  ;;  %7810 = vst [vmem:[#allocation43_spill] sm:$0xff] %v5080_v63 }
  0xe1   :  { %7811 = vst [vmem:[#allocation44_spill] sm:$0xff] %v5082_v38  ;;  %v5105_v38 = vld [vmem:[%s7590_s2 + $0x38] sm:$0xff] }
  0xe2   :  { %2915 = vrot.lane.b32.xlu2 %v4509_v26, %s4356_s28 }
  0xe3   :  { %2675 = vrot.lane.b32.xlu1 %v4491_v24, %s4357_s7  ;;  %2677 = vrot.lane.b32.xlu0 %v4486_v23, %s4357_s7 }
  0xe4   :  { %v5084_v6 = vpop.permute.xlu2 %1661  ;;  %v5090_v25 = vpop.f32.mrf.mxu0 }
  0xe5   :  { %v5086_v51 = vpop.permute.xlu1 %1891  ;;  %v5088_v10 = vpop.permute.xlu0 %1651  ;;  %7812 = vst [vmem:[#allocation45_spill] sm:$0xff] %v5090_v25 }
  0xe6   :  { %v5092_v54 = vpop.f32.mrf.mxu1  ;;  %3870 = vmatmul.msk.f32.gmra.mxu2 %vm744_vm1, %v4730_v52  ;;  %3890 = vmatmul.msk.f32.gmra.mxu3 %vm744_vm1, %v4730_v52 }
  0xe7   :  { %7813 = vst [vmem:[#allocation46_spill] sm:$0xff] %v5092_v54  ;;  %3823 = vmatmul.msk.f32.gmra.mxu0 %vm744_vm1, %v4491_v24  ;;  %3843 = vmatmul.msk.f32.gmra.mxu1 %vm744_vm1, %v4491_v24  ;;  %v5120_v54 = vperm.slane %v289_v39, 0 }
  0xe9   :  { %v397_v39 = vadd.f32 %v5120_v54, %v295_v12 }
  0xea   :  { %2679 = vrot.lane.b32.xlu2 %v4467_v21, %s4357_s7  ;;  %v5132_v21 = vpop.f32.mrf.mxu2 }
  0xeb   :  { %2917 = vrot.lane.b32.xlu1 %v4521_v27, %s4356_s28  ;;  %329 = vperm.xlu0 %4082, %v5105_v38   ;;  %7817 = vst [vmem:[#allocation50_spill] sm:$0xff] %v5132_v21 }
  0xec   :  { %v5112_v52 = vpop.permute.xlu2 %1663  ;;  %v5118_v24 = vpop.f32.mrf.mxu0 }
  0xed   :  { %v5114_v63 = vpop.permute.xlu1 %1655  ;;  %v5116_v25 = vpop.permute.xlu0 %1893  ;;  %7815 = vst [vmem:[#allocation48_spill] sm:$0xff] %v5118_v24 }
  0xee   :  { %7814 = vst [vmem:[#allocation47_spill] sm:$0xff] %v5116_v25  ;;  %v5122_v8 = vpop.f32.mrf.mxu1  ;;  %3871 = vmatmul.msk.f32.gmra.mxu2 %vm744_vm1, %v4816_v22  ;;  %3891 = vmatmul.msk.f32.gmra.mxu3 %vm744_vm1, %v4816_v22  ;;  %v5134_v25 = vpop.f32.mrf.mxu3 }
  0xef   :  { %7816 = vst [vmem:[#allocation49_spill] sm:$0xff] %v5122_v8  ;;  %3824 = vmatmul.msk.f32.gmra.mxu0 %vm744_vm1, %v4486_v23  ;;  %3844 = vmatmul.msk.f32.gmra.mxu1 %vm744_vm1, %v4486_v23  ;;  %v437_v8 = vmul.f32 2.0, %v4763_v62 }
  0xf0   :  { %7818 = vst [vmem:[#allocation51_spill] sm:$0xff] %v5134_v25 }
  0xf1   :  { %v477_v22 = vsub.f32 %v397_v39, %v437_v8  ;;  %v5166_v8 = vmax.f32 %v478_v1, 0.0 }
  0xf2   :  { %2681 = vrot.lane.b32.xlu2 %v4509_v26, %s4357_s7  ;;  %v399_v26 = vadd.f32 %v5120_v54, %v5017_v59 }
  0xf3   :  { %2919 = vrot.lane.b32.xlu1 %v4551_v31, %s4356_s28  ;;  %2921 = vrot.lane.b32.xlu0 %v4546_v30, %s4356_s28  ;;  %v5164_v62 = vmax.f32 %v477_v22, 0.0  ;;  %7823 = vst [vmem:[#allocation56_spill] sm:$0xff] %v5166_v8 }
  0xf4   :  { %v5144_v24 = vpop.permute.xlu2 %1665  ;;  %v5150_v25 = vpop.f32.mrf.mxu0 }
  0xf5   :  { %v5146_v23 = vpop.permute.xlu1 %1657  ;;  %v5148_v21 = vpop.permute.xlu0 %1895  ;;  %7820 = vst [vmem:[#allocation53_spill] sm:$0xff] %v5150_v25  ;;  %v439_v25 = vmul.f32 2.0, %v4791_v9  ;;  %v444_v9 = vmul.f32 2.0, %v4850_v48 }
  0xf6   :  { %7819 = vst [vmem:[#allocation52_spill] sm:$0xff] %v5148_v21  ;;  %v5152_v12 = vpop.f32.mrf.mxu1  ;;  %3872 = vmatmul.msk.f32.gmra.mxu2 %vm744_vm1, %v4812_v19  ;;  %3892 = vmatmul.msk.f32.gmra.mxu3 %vm744_vm1, %v4812_v19 }
  0xf7   :  { %7821 = vst [vmem:[#allocation54_spill] sm:$0xff] %v5152_v12  ;;  %3896 = vmatmul.msk.f32.vlgmr.msra.gmra.mxu0 %vm744_vm1, %v4787_v7  ;;  %3916 = vmatmul.msk.f32.vlgmr.msra.gmra.mxu1 %vm744_vm1, %v4787_v7  ;;  %v479_v7 = vsub.f32 %v399_v26, %v439_v25  ;;  %v7827_v25 = vsub.f32 %v5026_v15, %v5020_v0 }
  0xf8   :  { %7822 = vst [vmem:[#allocation55_spill] sm:$0xff] %v5164_v62 }
  0xf9   :  { %v1056_v39 = vpop.f32.mrf.mxu2  ;;  %v1133_v12 = vpop.f32.mrf.mxu3  ;;  %v5200_v48 = vmax.f32 %v479_v7, 0.0  ;;  %v5205_v26 = vmax.f32 %v7827_v25, 0.0  ;;  %v441_v25 = vmul.f32 2.0, %v4818_v28 }
  0xfa   :  { %v5170_v21 = vmul.f32 %v1056_v39, %v5164_v62  ;;  %v5173_v19 = vmul.f32 %v1133_v12, %v5166_v8  ;;  %2923 = vrot.lane.b32.xlu2 %v4541_v29, %s4356_s28 }
  0xfb   :  { %2683 = vrot.lane.b32.xlu1 %v4521_v27, %s4357_s7  ;;  %2685 = vrot.lane.b32.xlu0 %v4551_v31, %s4357_s7  ;;  %v5198_v31 = vld [vmem:[%s7590_s2 + $0x40] sm:$0xff]  ;;  %7826 = vst [vmem:[#allocation59_spill] sm:$0xff] %v5200_v48 }
  0xfc   :  { %7824 = vst [vmem:[#allocation57_spill] sm:$0xff] %v5170_v21  ;;  %v310_v1 = vpop.permute.xlu2 %309 }
  0xfd   :  { %7825 = vst [vmem:[#allocation58_spill] sm:$0xff] %v5173_v19  ;;  %v5181_v59 = vpop.permute.xlu1 %1899  ;;  %v5184_v22 = vpop.permute.xlu0 %1659  ;;  %v404_v12 = vadd.f32 %v5007_v3, %v310_v1 }
  0xfe   :  { %3873 = vmatmul.msk.f32.gmra.mxu2 %vm744_vm1, %v4742_v55  ;;  %3893 = vmatmul.msk.f32.gmra.mxu3 %vm744_vm1, %v4742_v55  ;;  %7828 = vst [vmem:[#allocation60_spill] sm:$0xff] %v5205_v26  ;;  %v5207_v55 = vpop.f32.mrf.mxu0  ;;  %v5209_v39 = vpop.f32.mrf.mxu1 }
  0xff   :  { %v484_v27 = vsub.f32 %v404_v12, %v444_v9  ;;  %3897 = vmatmul.msk.f32.gmra.mxu0 %vm744_vm1, %v4898_v56  ;;  %3917 = vmatmul.msk.f32.gmra.mxu1 %vm744_vm1, %v4898_v56  ;;  %7829 = vst [vmem:[#allocation61_spill] sm:$0xff] %v5207_v55 }
 0x100   :  { %7830 = vst [vmem:[#allocation62_spill] sm:$0xff] %v5209_v39 }
 0x101   :  { %v1059_v9 = vpop.f32.mrf.mxu2  ;;  %v1136_v12 = vpop.f32.mrf.mxu3 }
 0x102   :  { %v5212_v56 = vmul.f32 %v1059_v9, %v5200_v48  ;;  %v5215_v19 = vmul.f32 %v1136_v12, %v5205_v26  ;;  %2925 = vrot.lane.b32.xlu2 %v4576_v34, %s4356_s28  ;;  %v442_v9 = vmul.f32 2.0, %v4820_v35 }
 0x103   :  { %334 = vperm.xlu1 %4080, %v5198_v31   ;;  %2687 = vrot.lane.b32.xlu0 %v4546_v30, %s4357_s7  ;;  %v403_v30 = vadd.f32 %v5120_v54, %v310_v1 }
 0x104   :  { %7831 = vst [vmem:[#allocation63_spill] sm:$0xff] %v5212_v56  ;;  %v5222_v15 = vpop.permute.xlu2 %2897 }
 0x105   :  { %7832 = vst [vmem:[#allocation64_spill] sm:$0xff] %v5215_v19  ;;  %v5224_v0 = vpop.permute.xlu1 %1901  ;;  %v305_v7 = vpop.permute.xlu0 %304 }
 0x106   :  { %7833 = vst [vmem:[#allocation65_spill] sm:$0xff] %v5222_v15  ;;  %v401_v12 = vadd.f32 %v5120_v54, %v305_v7  ;;  %v402_v21 = vadd.f32 %v5007_v3, %v305_v7  ;;  %3874 = vmatmul.msk.f32.gmra.mxu2 %vm744_vm1, %v4846_v43  ;;  %3894 = vmatmul.msk.f32.gmra.mxu3 %vm744_vm1, %v4846_v43  ;;  %v443_v7 = vmul.f32 2.0, %v4848_v45  ;;  %v5248_v43 = vpop.f32.mrf.mxu0 }
 0x107   :  { %3898 = vmatmul.msk.f32.gmra.mxu0 %vm744_vm1, %v4930_v49  ;;  %3918 = vmatmul.msk.f32.gmra.mxu1 %vm744_vm1, %v4930_v49  ;;  %v5250_v49 = vpop.f32.mrf.mxu1 }
 0x108   :  { %v481_v28 = vsub.f32 %v401_v12, %v441_v25  ;;  %v482_v35 = vsub.f32 %v402_v21, %v442_v9  ;;  %v483_v21 = vsub.f32 %v403_v30, %v443_v7  ;;  %v5281_v12 = vmax.f32 %v484_v27, 0.0 }
 0x109   :  { %v1062_v55 = vpop.f32.mrf.mxu2  ;;  %v1139_v15 = vpop.f32.mrf.mxu3 }
 0x10a   :  { %v5240_v39 = vmax.f32 %v481_v28, 0.0  ;;  %v5242_v19 = vmax.f32 %v482_v35, 0.0  ;;  %2689 = vrot.lane.b32.xlu2 %v4541_v29, %s4357_s7  ;;  %7840 = vst [vmem:[#allocation72_spill] sm:$0xff] %v5281_v12 }
 0x10b   :  { %2927 = vrot.lane.b32.xlu1 %v4571_v33, %s4356_s28  ;;  %2929 = vrot.lane.b32.xlu0 %v4566_v32, %s4356_s28 }
 0x10c   :  { %7834 = vst [vmem:[#allocation66_spill] sm:$0xff] %v5240_v39  ;;  %v5255_v45 = vmul.f32 %v1062_v55, %v5240_v39  ;;  %v5258_v1 = vmul.f32 %v1139_v15, %v5242_v19  ;;  %v5260_v25 = vpop.permute.xlu2 %2661  ;;  %v5277_v55 = vld [vmem:[%s7590_s2 + $0x48] sm:$0xff]  ;;  %v5279_v15 = vmax.f32 %v483_v21, 0.0 }
 0x10d   :  { %7835 = vst [vmem:[#allocation67_spill] sm:$0xff] %v5242_v19  ;;  %v5262_v29 = vpop.permute.xlu1 %1903  ;;  %v5264_v9 = vpop.permute.xlu0 %1905 }
 0x10e   :  { %7836 = vst [vmem:[#allocation68_spill] sm:$0xff] %v5255_v45  ;;  %3875 = vmatmul.msk.f32.gmra.mxu2 %vm744_vm1, %v4842_v41  ;;  %3895 = vmatmul.msk.f32.gmra.mxu3 %vm744_vm1, %v4842_v41  ;;  %v5300_v21 = vpop.f32.mrf.mxu0 }
 0x10f   :  { %7837 = vst [vmem:[#allocation69_spill] sm:$0xff] %v5258_v1  ;;  %3899 = vmatmul.msk.f32.gmra.mxu0 %vm744_vm1, %v4844_v42  ;;  %3919 = vmatmul.msk.f32.gmra.mxu1 %vm744_vm1, %v4844_v42 }
 0x110   :  { %7838 = vst [vmem:[#allocation70_spill] sm:$0xff] %v5264_v9 }
 0x111   :  { %7839 = vst [vmem:[#allocation71_spill] sm:$0xff] %v5279_v15  ;;  %v1065_v30 = vpop.f32.mrf.mxu2  ;;  %v1142_v28 = vpop.f32.mrf.mxu3 }
 0x112   :  { %v5284_v35 = vmul.f32 %v1065_v30, %v5279_v15  ;;  %v5287_v41 = vmul.f32 %v1142_v28, %v5281_v12  ;;  %339 = vperm.xlu2 %4081, %v5277_v55   ;;  %7844 = vst [vmem:[#allocation76_spill] sm:$0xff] %v5300_v21  ;;  %v5302_v30 = vpop.f32.mrf.mxu1  ;;  %v445_v15 = vmul.f32 2.0, %v4870_v57 }
 0x113   :  { %2691 = vrot.lane.b32.xlu1 %v4576_v34, %s4357_s7  ;;  %2931 = vrot.lane.b32.xlu0 %v4601_v37, %s4356_s28  ;;  %7845 = vst [vmem:[#allocation77_spill] sm:$0xff] %v5302_v30 }
 0x114   :  { %7841 = vst [vmem:[#allocation73_spill] sm:$0xff] %v5284_v35  ;;  %v5294_v42 = vpop.permute.xlu2 %2663 }
 0x115   :  { %7842 = vst [vmem:[#allocation74_spill] sm:$0xff] %v5287_v41  ;;  %v5296_v27 = vpop.permute.xlu1 %1667  ;;  %v5298_v7 = vpop.permute.xlu0 %2895 }
 0x116   :  { %7843 = vst [vmem:[#allocation75_spill] sm:$0xff] %v5298_v7  ;;  %3936 = vmatmul.msk.f32.vlgmr.msra.gmra.mxu2 %vm744_vm1, %v4759_v60  ;;  %3956 = vmatmul.msk.f32.vlgmr.msra.gmra.mxu3 %vm744_vm1, %v4759_v60 }
 0x117   :  { %3900 = vmatmul.msk.f32.gmra.mxu0 %vm744_vm1, %v4954_v61  ;;  %3920 = vmatmul.msk.f32.gmra.mxu1 %vm744_vm1, %v4954_v61 }
 0x119   :  { %v1068_v34 = vpop.f32.mrf.mxu2  ;;  %v1145_v28 = vpop.f32.mrf.mxu3 }
 0x11a   :  { %2933 = vrot.lane.b32.xlu2 %v4596_v36, %s4356_s28  ;;  %v5339_v61 = vpop.f32.mrf.mxu1 }
 0x11b   :  { %2693 = vrot.lane.b32.xlu1 %v4571_v33, %s4357_s7  ;;  %2695 = vrot.lane.b32.xlu0 %v4566_v32, %s4357_s7  ;;  %v5335_v32 = vld [vmem:[%s7590_s2 + $0x50] sm:$0xff]  ;;  %v5337_v33 = vpop.f32.mrf.mxu0  ;;  %7848 = vst [vmem:[#allocation80_spill] sm:$0xff] %v5339_v61  ;;  %v446_v61 = vmul.f32 2.0, %v4872_v14 }
 0x11c   :  { %v5318_v41 = vpop.permute.xlu2 %2905  ;;  %7847 = vst [vmem:[#allocation79_spill] sm:$0xff] %v5337_v33 }
 0x11d   :  { %7846 = vst [vmem:[#allocation78_spill] sm:$0xff] %v5318_v41  ;;  %v5320_v60 = vpop.permute.xlu1 %1669  ;;  %v5322_v35 = vpop.permute.xlu0 %1671  ;;  %v5344_v41 = vld [vmem:[%s7590_s2 + $0x58] sm:$0xff] }
 0x11e   :  { %3937 = vmatmul.msk.f32.gmra.mxu2 %vm744_vm1, %v4868_v58  ;;  %3957 = vmatmul.msk.f32.gmra.mxu3 %vm744_vm1, %v4868_v58 }
 0x11f   :  { %3901 = vmatmul.msk.f32.gmra.mxu0 %vm744_vm1, %v4986_v18  ;;  %3921 = vmatmul.msk.f32.gmra.mxu1 %vm744_vm1, %v4986_v18 }
 0x121   :  { %v5346_v58 = vpop.f32.mrf.mxu2  ;;  %v5348_v1 = vpop.f32.mrf.mxu3 }
 0x122   :  { %2697 = vrot.lane.b32.xlu2 %v4601_v37, %s4357_s7  ;;  %v5373_v37 = vld [vmem:[%s7590_s2 + $0x60] sm:$0xff] }
 0x123   :  { %344 = vperm.xlu1 %4080, %v5335_v32   ;;  %349 = vperm.xlu0 %4082, %v5344_v41  }
 0x124   :  { %v5354_v18 = vpop.permute.xlu2 %2907 }
 0x125   :  { %7849 = vst [vmem:[#allocation81_spill] sm:$0xff] %v5354_v18  ;;  %v5356_v45 = vpop.permute.xlu1 %2899  ;;  %v315_v12 = vpop.permute.xlu0 %314 }
 0x126   :  { %7850 = vst [vmem:[#allocation82_spill] sm:$0xff] %v5356_v45  ;;  %v405_v33 = vadd.f32 %v5120_v54, %v315_v12  ;;  %v406_v7 = vadd.f32 %v5007_v3, %v315_v12  ;;  %3938 = vmatmul.msk.f32.gmra.mxu2 %vm744_vm1, %v4864_v53  ;;  %3958 = vmatmul.msk.f32.gmra.mxu3 %vm744_vm1, %v4864_v53  ;;  %v5378_v12 = vld [vmem:[%s7590_s2 + $0x68] sm:$0xff] }
 0x127   :  { %3902 = vmatmul.msk.f32.gmra.mxu0 %vm744_vm1, %v4900_v40  ;;  %3922 = vmatmul.msk.f32.gmra.mxu1 %vm744_vm1, %v4900_v40  ;;  %v5387_v40 = vpop.f32.mrf.mxu0 }
 0x128   :  { %v485_v57 = vsub.f32 %v405_v33, %v445_v15  ;;  %v486_v14 = vsub.f32 %v406_v7, %v446_v61  ;;  %v5389_v15 = vpop.f32.mrf.mxu1 }
 0x129   :  { %v1074_v18 = vpop.f32.mrf.mxu2  ;;  %v1151_v53 = vpop.f32.mrf.mxu3 }
 0x12a   :  { %v5380_v45 = vmax.f32 %v485_v57, 0.0  ;;  %v5382_v19 = vmax.f32 %v486_v14, 0.0  ;;  %354 = vperm.xlu2 %4081, %v5373_v37  }
 0x12b   :  { %2699 = vrot.lane.b32.xlu1 %v4596_v36, %s4357_s7  ;;  %359 = vperm.xlu0 %4082, %v5378_v12   ;;  %v5415_v36 = vld [vmem:[%s7590_s2 + $0x78] sm:$0xff] }
 0x12c   :  { %7851 = vst [vmem:[#allocation83_spill] sm:$0xff] %v5380_v45  ;;  %v5393_v7 = vmul.f32 %v1068_v34, %v5380_v45  ;;  %v5396_v33 = vmul.f32 %v1145_v28, %v5382_v19  ;;  %v5398_v61 = vpop.permute.xlu2 %2671  ;;  %v5420_v34 = vld [vmem:[%s7590_s2 + $0x70] sm:$0xff]  ;;  %v449_v45 = vmul.f32 2.0, %v4932_v5 }
 0x12d   :  { %7852 = vst [vmem:[#allocation84_spill] sm:$0xff] %v5382_v19  ;;  %v5400_v57 = vpop.permute.xlu1 %2901  ;;  %v5402_v14 = vpop.permute.xlu0 %2903 }
 0x12e   :  { %7853 = vst [vmem:[#allocation85_spill] sm:$0xff] %v5393_v7  ;;  %3939 = vmatmul.msk.f32.gmra.mxu2 %vm744_vm1, %v4902_v11  ;;  %3959 = vmatmul.msk.f32.gmra.mxu3 %vm744_vm1, %v4902_v11  ;;  %v5425_v11 = vld [vmem:[%s7590_s2 + $0x80] sm:$0xff] }
 0x12f   :  { %7854 = vst [vmem:[#allocation86_spill] sm:$0xff] %v5396_v33  ;;  %3903 = vmatmul.msk.f32.gmra.mxu0 %vm744_vm1, %v5015_v47  ;;  %3923 = vmatmul.msk.f32.gmra.mxu1 %vm744_vm1, %v5015_v47  ;;  %v5442_v39 = vpop.f32.mrf.mxu0 }
 0x130   :  { %7855 = vst [vmem:[#allocation87_spill] sm:$0xff] %v5398_v61  ;;  %v5444_v9 = vpop.f32.mrf.mxu1 }
 0x131   :  { %7856 = vst [vmem:[#allocation88_spill] sm:$0xff] %v5400_v57  ;;  %v5427_v28 = vpop.f32.mrf.mxu2  ;;  %v5429_v19 = vpop.f32.mrf.mxu3  ;;  %v450_v57 = vmul.f32 2.0, %v4934_v2  ;;  %v5457_v2 = vld [vmem:[%s7590_s2 + $0x90] sm:$0xff] }
 0x132   :  { %7857 = vst [vmem:[#allocation89_spill] sm:$0xff] %v5402_v14  ;;  %369 = vperm.xlu2 %4081, %v5415_v36  }
 0x133   :  { %364 = vperm.xlu1 %4080, %v5420_v34   ;;  %374 = vperm.xlu0 %4082, %v5425_v11   ;;  %7860 = vst [vmem:[#allocation92_spill] sm:$0xff] %v5442_v39  ;;  %v447_v39 = vmul.f32 2.0, %v4904_v13 }
 0x134   :  { %v325_v47 = vpop.permute.xlu2 %324  ;;  %7861 = vst [vmem:[#allocation93_spill] sm:$0xff] %v5444_v9 }
 0x135   :  { %v5434_v14 = vpop.permute.xlu1 %2665  ;;  %v5438_v33 = vpop.permute.xlu0 %2667  ;;  %v409_v7 = vadd.f32 %v5120_v54, %v325_v47  ;;  %v410_v61 = vadd.f32 %v5007_v3, %v325_v47  ;;  %v5462_v47 = vld [vmem:[%s7590_s2 + $0x88] sm:$0xff] }
 0x136   :  { %7858 = vst [vmem:[#allocation90_spill] sm:$0xff] %v5434_v14  ;;  %3940 = vmatmul.msk.f32.gmra.mxu2 %vm744_vm1, %v4814_v20  ;;  %3960 = vmatmul.msk.f32.gmra.mxu3 %vm744_vm1, %v4814_v20  ;;  %v5467_v20 = vld [vmem:[%s7590_s2 + $0x98] sm:$0xff] }
 0x137   :  { %7859 = vst [vmem:[#allocation91_spill] sm:$0xff] %v5438_v33  ;;  %v489_v30 = vsub.f32 %v409_v7, %v449_v45  ;;  %v490_v5 = vsub.f32 %v410_v61, %v450_v57  ;;  %3904 = vmatmul.msk.f32.gmra.mxu0 %vm744_vm1, %v5059_v17  ;;  %3924 = vmatmul.msk.f32.gmra.mxu1 %vm744_vm1, %v5059_v17  ;;  %v448_v33 = vmul.f32 2.0, %v4906_v16  ;;  %v5502_v13 = vpop.f32.mrf.mxu0 }
 0x138   :  { %7865 = vst [vmem:[#allocation97_spill] sm:$0xff] %v5502_v13  ;;  %v5504_v16 = vpop.f32.mrf.mxu1 }
 0x139   :  { %v5469_v45 = vmax.f32 %v489_v30, 0.0  ;;  %v5471_v7 = vmax.f32 %v490_v5, 0.0  ;;  %v5473_v17 = vpop.f32.mrf.mxu2  ;;  %v5475_v61 = vpop.f32.mrf.mxu3  ;;  %7866 = vst [vmem:[#allocation98_spill] sm:$0xff] %v5504_v16  ;;  %v7882_v16 = vld [vmem:[#allocation27_spill] sm:$0xff] }
 0x13a   :  { %384 = vperm.xlu2 %4081, %v5457_v2  }
 0x13b   :  { %7862 = vst [vmem:[#allocation94_spill] sm:$0xff] %v5469_v45  ;;  %379 = vperm.xlu1 %4080, %v5462_v47   ;;  %v5480_v57 = vmul.f32 %v1074_v18, %v5469_v45  ;;  %v5483_v9 = vmul.f32 %v1151_v53, %v5471_v7  ;;  %389 = vperm.xlu0 %4082, %v5467_v20  }
 0x13c   :  { %7863 = vst [vmem:[#allocation95_spill] sm:$0xff] %v5471_v7  ;;  %v5486_v30 = vpop.permute.xlu2 %2915 }
 0x13d   :  { %7864 = vst [vmem:[#allocation96_spill] sm:$0xff] %v5486_v30  ;;  %v320_v5 = vpop.permute.xlu1 %319  ;;  %v5490_v21 = vpop.permute.xlu0 %2669 }
 0x13e   :  { %v407_v14 = vadd.f32 %v5120_v54, %v320_v5  ;;  %v408_v56 = vadd.f32 %v5007_v3, %v320_v5  ;;  %3941 = vmatmul.msk.f32.gmra.mxu2 %vm744_vm1, %v4926_v46  ;;  %3961 = vmatmul.msk.f32.gmra.mxu3 %vm744_vm1, %v4926_v46  ;;  %v4358_v46 = vmov 1  }
 0x13f   :  { %3905 = vmatmul.msk.f32.gmra.mxu0 %vm744_vm1, %v5088_v10  ;;  %3925 = vmatmul.msk.f32.gmra.mxu1 %vm744_vm1, %v5088_v10 }
 0x140   :  { %v487_v18 = vsub.f32 %v407_v14, %v447_v39  ;;  %v488_v53 = vsub.f32 %v408_v56, %v448_v33 }
 0x141   :  { %v5510_v45 = vpop.f32.mrf.mxu2  ;;  %v5512_v30 = vpop.f32.mrf.mxu3 }
 0x142   :  { %v5506_v7 = vmax.f32 %v487_v18, 0.0  ;;  %v5508_v5 = vmax.f32 %v488_v53, 0.0  ;;  %4084 = vset.pattern.permute.xlu2 %v4358_v46  ;;  %v7874_v18 = vld [vmem:[#allocation24_spill] sm:$0xff] }
 0x143   :  { %4083 = vset.pattern.permute.xlu1 %v4358_v46  ;;  %4085 = vset.pattern.permute.xlu0 %v4358_v46  ;;  %v7876_v53 = vld [vmem:[#allocation16_spill] sm:$0xff]  ;;  %v7877_v46 = vld [vmem:[#allocation10_spill] sm:$0xff] }
 0x144   :  { %7867 = vst [vmem:[#allocation99_spill] sm:$0xff] %v5506_v7  ;;  %v5516_v39 = vmul.f32 %v5346_v58, %v5506_v7  ;;  %v5520_v10 = vmul.f32 %v5348_v1, %v5508_v5  ;;  %562 = vperm.xlu2 %4084, %v4718_v50   ;;  %566 = vperm.xlu0 %4085, %v4776_v4   ;;  %v5525_v56 = vpop.permute.xlu2 %2679  ;;  %v7875_v1 = vld [vmem:[#allocation29_spill] sm:$0xff]  ;;  %v5543_v4 = vpop.f32.mrf.mxu0 }
 0x145   :  { %7868 = vst [vmem:[#allocation100_spill] sm:$0xff] %v5508_v5  ;;  %558 = vperm.xlu1 %4083, %v4691_v44   ;;  %v5527_v33 = vpop.permute.xlu1 %2909  ;;  %v5529_v14 = vpop.permute.xlu0 %2911 }
 0x146   :  { %7869 = vst [vmem:[#allocation101_spill] sm:$0xff] %v5516_v39  ;;  %3942 = vmatmul.msk.f32.gmra.mxu2 %vm744_vm1, %v7874_v18  ;;  %3962 = vmatmul.msk.f32.gmra.mxu3 %vm744_vm1, %v7874_v18  ;;  %v5545_v58 = vpop.f32.mrf.mxu1 }
 0x147   :  { %7870 = vst [vmem:[#allocation102_spill] sm:$0xff] %v5520_v10  ;;  %3906 = vmatmul.msk.f32.gmra.mxu0 %vm744_vm1, %v7875_v1  ;;  %3926 = vmatmul.msk.f32.gmra.mxu1 %vm744_vm1, %v7875_v1  ;;  %v7880_v1 = vld [vmem:[#allocation14_spill] sm:$0xff] }
 0x148   :  { %7871 = vst [vmem:[#allocation103_spill] sm:$0xff] %v5525_v56  ;;  %v7892_v56 = vld [vmem:[#allocation34_spill] sm:$0xff] }
 0x149   :  { %7872 = vst [vmem:[#allocation104_spill] sm:$0xff] %v5527_v33  ;;  %v5539_v50 = vpop.f32.mrf.mxu2  ;;  %v5541_v44 = vpop.f32.mrf.mxu3 }
 0x14a   :  { %7873 = vst [vmem:[#allocation105_spill] sm:$0xff] %v5529_v14  ;;  %v7890_v14 = vld [vmem:[#allocation25_spill] sm:$0xff] }
 0x14b   :  { %v451_v33 = vmul.f32 2.0, %v7890_v14 }
 0x14c   :  { %574 = vperm.xlu2 %4084, %v7876_v53   ;;  %586 = vperm.xlu0 %4085, %v5105_v38   ;;  %v5550_v18 = vpop.permute.xlu2 %2681  ;;  %v5577_v5 = vpop.f32.mrf.mxu0 }
 0x14d   :  { %570 = vperm.xlu1 %4083, %v7877_v46   ;;  %7878 = vst [vmem:[#allocation24_spill] sm:$0xff] %v5550_v18  ;;  %v5552_v10 = vpop.permute.xlu1 %2673  ;;  %v5554_v39 = vpop.permute.xlu0 %2913  ;;  %v7881_v46 = vld [vmem:[#allocation37_spill] sm:$0xff]  ;;  %v7891_v18 = vld [vmem:[#allocation26_spill] sm:$0xff] }
 0x14e   :  { %7879 = vst [vmem:[#allocation29_spill] sm:$0xff] %v5554_v39  ;;  %3943 = vmatmul.msk.f32.gmra.mxu2 %vm744_vm1, %v7880_v1  ;;  %3963 = vmatmul.msk.f32.gmra.mxu3 %vm744_vm1, %v7880_v1  ;;  %v5579_v7 = vpop.f32.mrf.mxu1 }
 0x14f   :  { %3907 = vmatmul.msk.f32.gmra.mxu0 %vm744_vm1, %v5114_v63  ;;  %3927 = vmatmul.msk.f32.gmra.mxu1 %vm744_vm1, %v5114_v63  ;;  %7885 = vst [vmem:[#allocation14_spill] sm:$0xff] %v5577_v5  ;;  %v7887_v63 = vld [vmem:[#allocation28_spill] sm:$0xff] }
 0x150   :  { %7886 = vst [vmem:[#allocation37_spill] sm:$0xff] %v5579_v7  ;;  %v452_v7 = vmul.f32 2.0, %v7891_v18 }
 0x151   :  { %v5564_v38 = vpop.f32.mrf.mxu2  ;;  %v5566_v53 = vpop.f32.mrf.mxu3 }
 0x154   :  { %582 = vperm.xlu2 %4084, %v7881_v46   ;;  %598 = vperm.xlu0 %4085, %v5335_v32   ;;  %v5571_v13 = vpop.permute.xlu2 %2923 }
 0x155   :  { %578 = vperm.xlu1 %4083, %v7882_v16   ;;  %7883 = vst [vmem:[#allocation16_spill] sm:$0xff] %v5571_v13  ;;  %v5573_v39 = vpop.permute.xlu1 %2675  ;;  %v5575_v1 = vpop.permute.xlu0 %2677 }
 0x156   :  { %7884 = vst [vmem:[#allocation10_spill] sm:$0xff] %v5575_v1  ;;  %3944 = vmatmul.msk.f32.gmra.mxu2 %vm744_vm1, %v7887_v63  ;;  %3964 = vmatmul.msk.f32.gmra.mxu3 %vm744_vm1, %v7887_v63 }
 0x157   :  { %3908 = vmatmul.msk.f32.gmra.mxu0 %vm744_vm1, %v5146_v23  ;;  %3928 = vmatmul.msk.f32.gmra.mxu1 %vm744_vm1, %v5146_v23 }
 0x159   :  { %v5589_v32 = vpop.f32.mrf.mxu2  ;;  %v5591_v16 = vpop.f32.mrf.mxu3 }
 0x15c   :  { %594 = vperm.xlu2 %4084, %v5277_v55   ;;  %610 = vperm.xlu0 %4085, %v5378_v12   ;;  %v5596_v46 = vpop.permute.xlu2 %2925  ;;  %v5614_v55 = vpop.f32.mrf.mxu1 }
 0x15d   :  { %590 = vperm.xlu1 %4083, %v5198_v31   ;;  %7888 = vst [vmem:[#allocation27_spill] sm:$0xff] %v5596_v46  ;;  %v5598_v13 = vpop.permute.xlu1 %2917  ;;  %v330_v63 = vpop.permute.xlu0 %329 }
 0x15e   :  { %7889 = vst [vmem:[#allocation28_spill] sm:$0xff] %v5598_v13  ;;  %v411_v23 = vadd.f32 %v5120_v54, %v330_v63  ;;  %v412_v5 = vadd.f32 %v5007_v3, %v330_v63  ;;  %3945 = vmatmul.msk.f32.gmra.mxu2 %vm744_vm1, %v7892_v56  ;;  %3965 = vmatmul.msk.f32.gmra.mxu3 %vm744_vm1, %v7892_v56  ;;  %v5612_v31 = vpop.f32.mrf.mxu0 }
 0x15f   :  { %3909 = vmatmul.msk.f32.gmra.mxu0 %vm744_vm1, %v5184_v22  ;;  %3929 = vmatmul.msk.f32.gmra.mxu1 %vm744_vm1, %v5184_v22  ;;  %7893 = vst [vmem:[#allocation25_spill] sm:$0xff] %v5612_v31 }
 0x160   :  { %7894 = vst [vmem:[#allocation26_spill] sm:$0xff] %v5614_v55  ;;  %v491_v12 = vsub.f32 %v411_v23, %v451_v33  ;;  %v492_v14 = vsub.f32 %v412_v5, %v452_v7  ;;  %v7902_v23 = vld [vmem:[#allocation20_spill] sm:$0xff]  ;;  %v7908_v55 = vld [vmem:[#allocation23_spill] sm:$0xff] }
 0x161   :  { %v5616_v18 = vpop.f32.mrf.mxu2  ;;  %v5618_v63 = vpop.f32.mrf.mxu3 }
 0x162   :  { %v5620_v46 = vmax.f32 %v491_v12, 0.0  ;;  %v5622_v13 = vmax.f32 %v492_v14, 0.0  ;;  %v7905_v14 = vld [vmem:[#allocation35_spill] sm:$0xff] }
 0x164   :  { %7895 = vst [vmem:[#allocation34_spill] sm:$0xff] %v5620_v46  ;;  %606 = vperm.xlu2 %4084, %v5373_v37   ;;  %v5627_v56 = vmul.f32 %v5427_v28, %v5620_v46  ;;  %v5631_v22 = vmul.f32 %v5429_v19, %v5622_v13  ;;  %622 = vperm.xlu0 %4085, %v5425_v11   ;;  %v5635_v7 = vpop.permute.xlu2 %2689  ;;  %v5655_v11 = vpop.f32.mrf.mxu1 }
 0x165   :  { %7896 = vst [vmem:[#allocation106_spill] sm:$0xff] %v5622_v13  ;;  %602 = vperm.xlu1 %4083, %v5344_v41   ;;  %v5637_v5 = vpop.permute.xlu1 %2919  ;;  %v5639_v33 = vpop.permute.xlu0 %2921 }
 0x166   :  { %7897 = vst [vmem:[#allocation107_spill] sm:$0xff] %v5627_v56  ;;  %3946 = vmatmul.msk.f32.gmra.mxu2 %vm744_vm1, %v7902_v23  ;;  %3966 = vmatmul.msk.f32.gmra.mxu3 %vm744_vm1, %v7902_v23  ;;  %v5653_v37 = vpop.f32.mrf.mxu0  ;;  %v455_v23 = vmul.f32 2.0, %v7905_v14 }
 0x167   :  { %7898 = vst [vmem:[#allocation108_spill] sm:$0xff] %v5631_v22  ;;  %3910 = vmatmul.msk.f32.gmra.mxu0 %vm744_vm1, %v5084_v6  ;;  %3930 = vmatmul.msk.f32.gmra.mxu1 %vm744_vm1, %v5084_v6  ;;  %v7906_v6 = vld [vmem:[#allocation36_spill] sm:$0xff] }
 0x168   :  { %7899 = vst [vmem:[#allocation109_spill] sm:$0xff] %v5635_v7 }
 0x169   :  { %7900 = vst [vmem:[#allocation110_spill] sm:$0xff] %v5637_v5  ;;  %v5649_v19 = vpop.f32.mrf.mxu2  ;;  %v5651_v41 = vpop.f32.mrf.mxu3 }
 0x16a   :  { %7901 = vst [vmem:[#allocation111_spill] sm:$0xff] %v5639_v33  ;;  %v456_v33 = vmul.f32 2.0, %v7906_v6 }
 0x16b   :  { %7903 = vst [vmem:[#allocation20_spill] sm:$0xff] %v5655_v11 }
 0x16c   :  { %618 = vperm.xlu2 %4084, %v5415_v36   ;;  %634 = vperm.xlu0 %4085, %v5467_v20   ;;  %v340_v28 = vpop.permute.xlu2 %339 }
 0x16d   :  { %614 = vperm.xlu1 %4083, %v5420_v34   ;;  %v5660_v12 = vpop.permute.xlu1 %2683  ;;  %v5664_v13 = vpop.permute.xlu0 %2685  ;;  %v415_v46 = vadd.f32 %v5120_v54, %v340_v28  ;;  %v416_v5 = vadd.f32 %v5007_v3, %v340_v28 }
 0x16e   :  { %7904 = vst [vmem:[#allocation112_spill] sm:$0xff] %v5660_v12  ;;  %3947 = vmatmul.msk.f32.gmra.mxu2 %vm744_vm1, %v7908_v55  ;;  %3967 = vmatmul.msk.f32.gmra.mxu3 %vm744_vm1, %v7908_v55  ;;  %v5702_v7 = vpop.f32.mrf.mxu0 }
 0x16f   :  { %7907 = vst [vmem:[#allocation35_spill] sm:$0xff] %v5664_v13  ;;  %v495_v36 = vsub.f32 %v415_v46, %v455_v23  ;;  %v496_v34 = vsub.f32 %v416_v5, %v456_v33  ;;  %3911 = vmatmul.msk.f32.gmra.mxu0 %vm744_vm1, %v5112_v52  ;;  %3931 = vmatmul.msk.f32.gmra.mxu1 %vm744_vm1, %v5112_v52  ;;  %v7914_v5 = vld [vmem:[#allocation30_spill] sm:$0xff]  ;;  %v7915_v23 = vld [vmem:[#allocation31_spill] sm:$0xff] }
 0x170   :  { %v453_v33 = vmul.f32 2.0, %v7914_v5  ;;  %7917 = vst [vmem:[#allocation31_spill] sm:$0xff] %v5702_v7 }
 0x171   :  { %v5676_v20 = vmax.f32 %v495_v36, 0.0  ;;  %v5678_v14 = vmax.f32 %v496_v34, 0.0  ;;  %v5680_v6 = vpop.f32.mrf.mxu2  ;;  %v5682_v28 = vpop.f32.mrf.mxu3  ;;  %v454_v36 = vmul.f32 2.0, %v7915_v23 }
 0x173   :  { %7909 = vst [vmem:[#allocation36_spill] sm:$0xff] %v5676_v20  ;;  %v5686_v31 = vmul.f32 %v5510_v45, %v5676_v20  ;;  %v5690_v46 = vmul.f32 %v5512_v30, %v5678_v14  ;;  %v5704_v30 = vpop.f32.mrf.mxu1 }
 0x174   :  { %7910 = vst [vmem:[#allocation23_spill] sm:$0xff] %v5678_v14  ;;  %630 = vperm.xlu2 %4084, %v5457_v2   ;;  %v5694_v52 = vpop.permute.xlu2 %2933 }
 0x175   :  { %7911 = vst [vmem:[#allocation113_spill] sm:$0xff] %v5686_v31  ;;  %626 = vperm.xlu1 %4083, %v5462_v47   ;;  %v335_v55 = vpop.permute.xlu1 %334  ;;  %v5698_v34 = vpop.permute.xlu0 %2687 }
 0x176   :  { %7912 = vst [vmem:[#allocation114_spill] sm:$0xff] %v5690_v46  ;;  %v413_v45 = vadd.f32 %v5120_v54, %v335_v55  ;;  %v414_v20 = vadd.f32 %v5007_v3, %v335_v55  ;;  %3948 = vmatmul.msk.f32.gmra.mxu2 %vm744_vm1, %v5086_v51  ;;  %3968 = vmatmul.msk.f32.gmra.mxu3 %vm744_vm1, %v5086_v51 }
 0x177   :  { %7913 = vst [vmem:[#allocation115_spill] sm:$0xff] %v5694_v52  ;;  %3912 = vmatmul.msk.f32.gmra.mxu0 %vm744_vm1, %v5144_v24  ;;  %3932 = vmatmul.msk.f32.gmra.mxu1 %vm744_vm1, %v5144_v24 }
 0x178   :  { %7916 = vst [vmem:[#allocation30_spill] sm:$0xff] %v5698_v34  ;;  %v493_v2 = vsub.f32 %v413_v45, %v453_v33  ;;  %v494_v47 = vsub.f32 %v414_v20, %v454_v36  ;;  %v7926_v36 = vld [vmem:[#allocation47_spill] sm:$0xff]  ;;  %v7970_v34 = vld [vmem:[#allocation77_spill] sm:$0xff] }
 0x179   :  { %7918 = vst [vmem:[#allocation116_spill] sm:$0xff] %v5704_v30  ;;  %v5718_v23 = vpop.f32.mrf.mxu2  ;;  %v5720_v52 = vpop.f32.mrf.mxu3 }
 0x17a   :  { %v5714_v5 = vmax.f32 %v493_v2, 0.0  ;;  %v5716_v55 = vmax.f32 %v494_v47, 0.0 }
 0x17c   :  { %7919 = vst [vmem:[#allocation117_spill] sm:$0xff] %v5714_v5  ;;  %v5724_v14 = vmul.f32 %v5473_v17, %v5714_v5  ;;  %v5728_v51 = vmul.f32 %v5475_v61, %v5716_v55  ;;  %v5730_v20 = vpop.permute.xlu2 %2697  ;;  %v5744_v17 = vpop.f32.mrf.mxu0 }
 0x17d   :  { %7920 = vst [vmem:[#allocation118_spill] sm:$0xff] %v5716_v55  ;;  %v5732_v33 = vpop.permute.xlu1 %2927  ;;  %v5734_v24 = vpop.permute.xlu0 %2929 }
 0x17e   :  { %7921 = vst [vmem:[#allocation119_spill] sm:$0xff] %v5724_v14  ;;  %3949 = vmatmul.msk.f32.gmra.mxu2 %vm744_vm1, %v7926_v36  ;;  %3969 = vmatmul.msk.f32.gmra.mxu3 %vm744_vm1, %v7926_v36  ;;  %v5746_v61 = vpop.f32.mrf.mxu1  ;;  %v7931_v36 = vld [vmem:[#allocation49_spill] sm:$0xff]  ;;  %v7933_v14 = vld [vmem:[#allocation52_spill] sm:$0xff] }
 0x17f   :  { %7922 = vst [vmem:[#allocation120_spill] sm:$0xff] %v5728_v51  ;;  %3913 = vmatmul.msk.f32.gmra.mxu0 %vm744_vm1, %v5296_v27  ;;  %3933 = vmatmul.msk.f32.gmra.mxu1 %vm744_vm1, %v5296_v27  ;;  %v462_v5 = vmul.f32 2.0, %v7931_v36 }
 0x180   :  { %7923 = vst [vmem:[#allocation121_spill] sm:$0xff] %v5730_v20 }
 0x181   :  { %7924 = vst [vmem:[#allocation122_spill] sm:$0xff] %v5732_v33  ;;  %v5748_v45 = vpop.f32.mrf.mxu2  ;;  %v5750_v2 = vpop.f32.mrf.mxu3  ;;  %v7930_v33 = vld [vmem:[#allocation48_spill] sm:$0xff] }
 0x182   :  { %7925 = vst [vmem:[#allocation123_spill] sm:$0xff] %v5734_v24  ;;  %v461_v55 = vmul.f32 2.0, %v7930_v33 }
 0x183   :  { %7927 = vst [vmem:[#allocation47_spill] sm:$0xff] %v5744_v17 }
 0x184   :  { %7928 = vst [vmem:[#allocation124_spill] sm:$0xff] %v5746_v61  ;;  %v355_v47 = vpop.permute.xlu2 %354 }
 0x185   :  { %v5752_v24 = vpop.permute.xlu1 %2691  ;;  %v5756_v20 = vpop.permute.xlu0 %2931  ;;  %v421_v51 = vadd.f32 %v5120_v54, %v355_v47  ;;  %v422_v27 = vadd.f32 %v5007_v3, %v355_v47 }
 0x186   :  { %7929 = vst [vmem:[#allocation125_spill] sm:$0xff] %v5752_v24  ;;  %3950 = vmatmul.msk.f32.gmra.mxu2 %vm744_vm1, %v7933_v14  ;;  %3970 = vmatmul.msk.f32.gmra.mxu3 %vm744_vm1, %v7933_v14  ;;  %v5772_v24 = vpop.f32.mrf.mxu0  ;;  %v5774_v22 = vpop.f32.mrf.mxu1 }
 0x187   :  { %7932 = vst [vmem:[#allocation48_spill] sm:$0xff] %v5756_v20  ;;  %v501_v30 = vsub.f32 %v421_v51, %v461_v55  ;;  %v502_v7 = vsub.f32 %v422_v27, %v462_v5  ;;  %3914 = vmatmul.msk.f32.gmra.mxu0 %vm744_vm1, %v5320_v60  ;;  %3934 = vmatmul.msk.f32.gmra.mxu1 %vm744_vm1, %v5320_v60 }
 0x188   :  { %7936 = vst [vmem:[#allocation126_spill] sm:$0xff] %v5772_v24  ;;  %v7942_v24 = vld [vmem:[#allocation40_spill] sm:$0xff] }
 0x189   :  { %v5768_v33 = vmax.f32 %v501_v30, 0.0  ;;  %v5770_v36 = vmax.f32 %v502_v7, 0.0  ;;  %v1110_v20 = vpop.f32.mrf.mxu2  ;;  %v1187_v47 = vpop.f32.mrf.mxu3  ;;  %7937 = vst [vmem:[#allocation127_spill] sm:$0xff] %v5774_v22  ;;  %v467_v7 = vmul.f32 2.0, %v5248_v43  ;;  %v468_v30 = vmul.f32 2.0, %v5250_v49 }
 0x18b   :  { %7934 = vst [vmem:[#allocation49_spill] sm:$0xff] %v5768_v33  ;;  %v5778_v14 = vmul.f32 %v5589_v32, %v5768_v33  ;;  %v5782_v5 = vmul.f32 %v5591_v16, %v5770_v36 }
 0x18c   :  { %7935 = vst [vmem:[#allocation52_spill] sm:$0xff] %v5770_v36  ;;  %v370_v55 = vpop.permute.xlu2 %369 }
 0x18d   :  { %7938 = vst [vmem:[#allocation128_spill] sm:$0xff] %v5778_v14  ;;  %v5784_v60 = vpop.permute.xlu1 %2693  ;;  %v5788_v51 = vpop.permute.xlu0 %2695  ;;  %v427_v27 = vadd.f32 %v5120_v54, %v370_v55  ;;  %v428_v22 = vadd.f32 %v5007_v3, %v370_v55  ;;  %v7958_v14 = vld [vmem:[#allocation54_spill] sm:$0xff] }
 0x18e   :  { %7939 = vst [vmem:[#allocation129_spill] sm:$0xff] %v5782_v5  ;;  %3951 = vmatmul.msk.f32.gmra.mxu2 %vm744_vm1, %v7942_v24  ;;  %3971 = vmatmul.msk.f32.gmra.mxu3 %vm744_vm1, %v7942_v24  ;;  %v7947_v24 = vld [vmem:[#allocation42_spill] sm:$0xff]  ;;  %v464_v56 = vmul.f32 2.0, %v7958_v14 }
 0x18f   :  { %7940 = vst [vmem:[#allocation130_spill] sm:$0xff] %v5784_v60  ;;  %v507_v32 = vsub.f32 %v427_v27, %v467_v7  ;;  %v508_v16 = vsub.f32 %v428_v22, %v468_v30  ;;  %3915 = vmatmul.msk.f32.gmra.mxu0 %vm744_vm1, %v5322_v35  ;;  %3935 = vmatmul.msk.f32.gmra.mxu1 %vm744_vm1, %v5322_v35  ;;  %v5817_v7 = vmul.f32 2.0, %v7947_v24  ;;  %v473_v35 = vmul.f32 2.0, %v5387_v40  ;;  %v7949_v24 = vld [vmem:[#allocation46_spill] sm:$0xff]  ;;  %v5836_v40 = vpop.f32.mrf.mxu1  ;;  %v7957_v60 = vld [vmem:[#allocation53_spill] sm:$0xff] }
 0x190   :  { %7941 = vst [vmem:[#allocation131_spill] sm:$0xff] %v5788_v51  ;;  %v463_v5 = vmul.f32 2.0, %v7957_v60 }
 0x191   :  { %v5800_v43 = vmax.f32 %v507_v32, 0.0  ;;  %v5802_v49 = vmax.f32 %v508_v16, 0.0  ;;  %v5804_v36 = vpop.f32.mrf.mxu2  ;;  %v5806_v55 = vpop.f32.mrf.mxu3  ;;  %v474_v32 = vmul.f32 2.0, %v5389_v15  ;;  %7950 = vst [vmem:[#allocation46_spill] sm:$0xff] %v5836_v40 }
 0x192   :  { %v5823_v16 = vpop.f32.mrf.mxu0  ;;  %v3815_v40 = vld [vmem:[%s7591_s3 + $0x1] ss:$8 sm:$0x3]  ;;  %s4359_s3 = smov [#allocation2]  }
 0x193   :  { %7943 = vst [vmem:[#allocation40_spill] sm:$0xff] %v5800_v43  ;;  %v5810_v33 = vmul.f32 %v5680_v6, %v5800_v43  ;;  %v5814_v22 = vmul.f32 %v5682_v28, %v5802_v49  ;;  %s3733_s11 = sshll.u32 %s4359_s3, 4  ;;  %s3734_s11 = int_to_ptr.vmem [resolvable:$true] %s3733_s11 }
 0x194   :  { %7944 = vst [vmem:[#allocation132_spill] sm:$0xff] %v5802_v49  ;;  %v385_v30 = vpop.permute.xlu2 %384  ;;  %v5834_v49 = vmul.f32 2.0, %v7949_v24 }
 0x195   :  { %7945 = vst [vmem:[#allocation133_spill] sm:$0xff] %v5810_v33  ;;  %v5820_v27 = vpop.permute.xlu1 %344  ;;  %v5825_v51 = vpop.permute.xlu0 %349  ;;  %v433_v6 = vadd.f32 %v5120_v54, %v385_v30  ;;  %v434_v43 = vadd.f32 %v5007_v3, %v385_v30 }
 0x196   :  { %7946 = vst [vmem:[#allocation134_spill] sm:$0xff] %v5814_v22  ;;  %v5831_v28 = vadd.f32 %v5007_v3, %v5820_v27  ;;  %v5840_v15 = vadd.f32 %v5007_v3, %v5825_v51  ;;  %3952 = vmatmul.msk.f32.gmra.mxu2 %vm744_vm1, %v5181_v59  ;;  %3972 = vmatmul.msk.f32.gmra.mxu3 %vm744_vm1, %v5181_v59  ;;  %v5873_v22 = vperm.slane %v3815_v40, 0 }
 0x197   :  { %7948 = vst [vmem:[#allocation42_spill] sm:$0xff] %v5823_v16  ;;  %v513_v30 = vsub.f32 %v433_v6, %v473_v35  ;;  %v514_v16 = vsub.f32 %v434_v43, %v474_v32  ;;  %3976 = vmatmul.msk.f32.vlgmr.msrb.gmra.mxu0 %vm744_vm1, %v5260_v25  ;;  %3996 = vmatmul.msk.f32.vlgmr.msrb.gmra.mxu1 %vm744_vm1, %v5260_v25  ;;  %v5891_v14 = vpop.f32.mrf.mxu1 }
 0x198   :  { %7960 = vst [vmem:[#allocation54_spill] sm:$0xff] %v5891_v14 }
 0x199   :  { %v5857_v33 = vmax.f32 %v513_v30, 0.0  ;;  %v5859_v59 = vmax.f32 %v514_v16, 0.0  ;;  %v1964_v43 = vpop.f32.mrf.mxu2  ;;  %v2041_v35 = vpop.f32.mrf.mxu3  ;;  %v5875_v30 = vperm.slane %v3815_v40, 1 }
 0x19a   :  { %v5862_v32 = vmul.f32 %v1964_v43, %v5164_v62  ;;  %v5865_v6 = vmul.f32 %v2041_v35, %v5166_v8 }
 0x19b   :  { %7951 = vst [vmem:[#allocation135_spill] sm:$0xff] %v5857_v33  ;;  %v5868_v24 = vmul.f32 %v1110_v20, %v5857_v33  ;;  %v5871_v25 = vmul.f32 %v1187_v47, %v5859_v59  ;;  %v5885_v20 = vpop.f32.mrf.mxu0 }
 0x19c   :  { %7952 = vst [vmem:[#allocation136_spill] sm:$0xff] %v5859_v59 }
 0x19d   :  { %7953 = vst [vmem:[#allocation137_spill] sm:$0xff] %v5862_v32  ;;  %v360_v16 = vpop.permute.xlu0 %359  ;;  %v5893_v62 = vpop.permute.xlu1 %2699 }
 0x19e   :  { %7954 = vst [vmem:[#allocation138_spill] sm:$0xff] %v5865_v6  ;;  %v423_v43 = vadd.f32 %v5120_v54, %v360_v16  ;;  %v424_v35 = vadd.f32 %v5007_v3, %v360_v16  ;;  %v563_v8 = vpop.permute.xlu2 %562  ;;  %3953 = vmatmul.msk.f32.gmra.mxu2 %vm744_vm1, %v5224_v0  ;;  %3973 = vmatmul.msk.f32.gmra.mxu3 %vm744_vm1, %v5224_v0  ;;  %v7971_v6 = vld [vmem:[#allocation62_spill] sm:$0xff] }
 0x19f   :  { %7955 = vst [vmem:[#allocation139_spill] sm:$0xff] %v5868_v24  ;;  %v644_v47 = vsub.f32 %v563_v8, %v5873_v22  ;;  %v645_v40 = vsub.f32 %v563_v8, %v5875_v30  ;;  %3977 = vmatmul.msk.f32.gmra.mxu0 %vm744_vm1, %v5294_v42  ;;  %3997 = vmatmul.msk.f32.gmra.mxu1 %vm744_vm1, %v5294_v42 }
 0x1a0   :  { %7956 = vst [vmem:[#allocation140_spill] sm:$0xff] %v5871_v25  ;;  %v503_v60 = vsub.f32 %v423_v43, %v463_v5  ;;  %v504_v16 = vsub.f32 %v424_v35, %v464_v56 }
 0x1a1   :  { %7959 = vst [vmem:[#allocation53_spill] sm:$0xff] %v5885_v20  ;;  %v5897_v59 = vand.u32 2147483647, %v644_v47  ;;  %v5899_v0 = vand.u32 2147483647, %v645_v40  ;;  %v1967_v33 = vpop.f32.mrf.mxu2  ;;  %v2044_v25 = vpop.f32.mrf.mxu3 }
 0x1a2   :  { %7961 = vst [vmem:[#allocation141_spill] sm:$0xff] %v5893_v62  ;;  %v5901_v24 = vmax.f32 %v503_v60, 0.0  ;;  %v5903_v8 = vmax.f32 %v504_v16, 0.0  ;;  %v2383_v20 = vmul.f32 %v1967_v33, %v5200_v48  ;;  %v2384_v5 = vmul.f32 %v2044_v25, %v5205_v26  ;;  %v7966_v62 = vld [vmem:[#allocation63_spill] sm:$0xff] }
 0x1a3   :  { %v1195_v56 = vmul.f32 2.0, %v5897_v59  ;;  %v1196_v43 = vmul.f32 2.0, %v5899_v0  ;;  %v2103_v42 = vmul.f32 1.4285715, %v5897_v59  ;;  %v2104_v35 = vmul.f32 1.4285715, %v5899_v0  ;;  %v1733_v12 = vpop.f32.mrf.mxu0 }
 0x1a4   :  { %7962 = vst [vmem:[#allocation142_spill] sm:$0xff] %v5901_v24  ;;  %v5913_v47 = vmul.f32 %v5616_v18, %v5901_v24  ;;  %v5917_v40 = vmul.f32 %v5618_v63, %v5903_v8  ;;  %v7967_v18 = vld [vmem:[#allocation64_spill] sm:$0xff] }
 0x1a5   :  { %7963 = vst [vmem:[#allocation143_spill] sm:$0xff] %v5903_v8  ;;  %v1235_v60 = vmul.f32 1.7320508, %v1195_v56  ;;  %v1236_v33 = vmul.f32 1.7320508, %v1196_v43  ;;  %v375_v16 = vpop.permute.xlu0 %374  ;;  %v2223_v25 = vmul.f32 %v2103_v42, %v2103_v42  ;;  %v7968_v56 = vld [vmem:[#allocation90_spill] sm:$0xff]  ;;  %v2224_v43 = vmul.f32 %v2104_v35, %v2104_v35  ;;  %v5936_v31 = vpop.permute.xlu1 %364 }
 0x1a6   :  { %7964 = vst [vmem:[#allocation144_spill] sm:$0xff] %v5913_v47  ;;  %v2143_v26 = vmul.f32 2.236068, %v2103_v42  ;;  %v2144_v48 = vmul.f32 2.236068, %v2104_v35  ;;  %3954 = vmatmul.msk.f32.gmra.mxu2 %vm744_vm1, %v5262_v29  ;;  %3974 = vmatmul.msk.f32.gmra.mxu3 %vm744_vm1, %v5262_v29  ;;  %v429_v47 = vadd.f32 %v5120_v54, %v375_v16  ;;  %v430_v63 = vadd.f32 %v5007_v3, %v375_v16  ;;  %v7969_v8 = vld [vmem:[#allocation76_spill] sm:$0xff]  ;;  %v1810_v35 = vpop.f32.mrf.mxu1 }
 0x1a7   :  { %7965 = vst [vmem:[#allocation145_spill] sm:$0xff] %v5917_v40  ;;  %v1395_v14 = vadd.f32 %v7966_v62, %v1235_v60  ;;  %v1396_v24 = vadd.f32 %v7967_v18, %v1236_v33  ;;  %3978 = vmatmul.msk.f32.gmra.mxu0 %vm744_vm1, %v7968_v56  ;;  %3998 = vmatmul.msk.f32.gmra.mxu1 %vm744_vm1, %v7968_v56  ;;  %v469_v40 = vmul.f32 2.0, %v7969_v8  ;;  %v470_v29 = vmul.f32 2.0, %v7970_v34 }
 0x1a8   :  { %v2423_v42 = vadd.f32 %v2383_v20, %v2143_v26  ;;  %v5934_v18 = vmul.f32 2.0, %v7971_v6  ;;  %v2263_v32 = vmul.f32 1.6666666, %v2223_v25  ;;  %v2424_v46 = vadd.f32 %v2384_v5, %v2144_v48 }
 0x1a9   :  { %v1435_v13 = vsub.f32 0.0, %v1395_v14  ;;  %v1436_v62 = vsub.f32 0.0, %v1396_v24  ;;  %v509_v17 = vsub.f32 %v429_v47, %v469_v40  ;;  %v510_v56 = vsub.f32 %v430_v63, %v470_v29  ;;  %v2047_v47 = vpop.f32.mrf.mxu3  ;;  %v7974_v40 = vld [vmem:[#allocation70_spill] sm:$0xff] }
 0x1aa   :  { %v2463_v16 = vsub.f32 0.0, %v2423_v42  ;;  %v2264_v1 = vmul.f32 1.6666666, %v2224_v43  ;;  %v2183_v8 = vadd.f32 1.0, %v2143_v26  ;;  %v2464_v34 = vsub.f32 0.0, %v2424_v46  ;;  %v7979_v43 = vld [vmem:[#allocation67_spill] sm:$0xff] }
 0x1ab   :  { %v1477_v20 = vmul.f32 1.442695, %v1435_v13  ;;  %v1479_v61 = vmul.f32 1.442695, %v1436_v62  ;;  %v2184_v24 = vadd.f32 1.0, %v2144_v48  ;;  %v5938_v14 = vmax.f32 %v509_v17, 0.0  ;;  %v1970_v13 = vpop.f32.mrf.mxu2  ;;  %v575_v62 = vpop.permute.xlu2 %574 }
 0x1ac   :  { %v2505_v11 = vmul.f32 1.442695, %v2463_v16  ;;  %v5940_v6 = vmax.f32 %v510_v56, 0.0  ;;  %v1275_v25 = vadd.f32 1.0, %v1235_v60  ;;  %v2507_v5 = vmul.f32 1.442695, %v2464_v34 }
 0x1ad   :  { %4086 = vpow2.f32 %v1477_v20  ;;  %7972 = vst [vmem:[#allocation63_spill] sm:$0xff] %v5938_v14  ;;  %v5944_v42 = vadd.f32 %v5007_v3, %v5936_v31  ;;  %v1276_v48 = vadd.f32 1.0, %v1236_v33  ;;  %v5952_v26 = vmul.f32 %v5718_v23, %v5938_v14  ;;  %v390_v17 = vpop.permute.xlu0 %389  ;;  %v7978_v33 = vld [vmem:[#allocation66_spill] sm:$0xff]  ;;  %v7980_v34 = vld [vmem:[#allocation92_spill] sm:$0xff] }
 0x1ae   :  { %7973 = vst [vmem:[#allocation64_spill] sm:$0xff] %v5940_v6  ;;  %4088 = vpow2.f32 %v1479_v61  ;;  %3955 = vmatmul.msk.f32.gmra.mxu2 %vm744_vm1, %v7974_v40  ;;  %3975 = vmatmul.msk.f32.gmra.mxu3 %vm744_vm1, %v7974_v40  ;;  %v5956_v46 = vmul.f32 %v5720_v52, %v5940_v6  ;;  %v7977_v61 = vld [vmem:[#allocation91_spill] sm:$0xff]  ;;  %v2303_v60 = vadd.f32 %v2263_v32, %v2183_v8  ;;  %v380_v40 = vpop.permute.xlu1 %379  ;;  %v8024_v14 = vld [vmem:[#allocation68_spill] sm:$0xff] }
 0x1af   :  { %4090 = vpow2.f32 %v2505_v11  ;;  %7975 = vst [vmem:[#allocation90_spill] sm:$0xff] %v5952_v26  ;;  %3979 = vmatmul.msk.f32.gmra.mxu0 %vm744_vm1, %v7977_v61  ;;  %3999 = vmatmul.msk.f32.gmra.mxu1 %vm744_vm1, %v7977_v61  ;;  %v2304_v11 = vadd.f32 %v2264_v1, %v2184_v24  ;;  %v5965_v23 = vmul.f32 %v1970_v13, %v7978_v33  ;;  %v5975_v1 = vpop.f32.mrf.mxu0  ;;  %v7981_v61 = vld [vmem:[#allocation93_spill] sm:$0xff] }
 0x1b0   :  { %7976 = vst [vmem:[#allocation76_spill] sm:$0xff] %v5956_v46  ;;  %4092 = vpow2.f32 %v2507_v5  ;;  %v5968_v29 = vmul.f32 %v2047_v47, %v7979_v43  ;;  %v1315_v52 = vmul.f32 %v1275_v25, %v5543_v4  ;;  %v435_v16 = vadd.f32 %v5120_v54, %v390_v17  ;;  %v5978_v4 = vpop.f32.mrf.mxu1 }
 0x1b1   :  { %v1316_v20 = vmul.f32 %v1276_v48, %v5545_v58  ;;  %v436_v56 = vadd.f32 %v5007_v3, %v390_v17  ;;  %v475_v5 = vmul.f32 2.0, %v7980_v34  ;;  %v2343_v13 = vmul.f32 %v2303_v60, %v1733_v12  ;;  %v7982_v34 = vld [vmem:[#allocation75_spill] sm:$0xff] }
 0x1b2   :  { %v476_v63 = vmul.f32 2.0, %v7981_v61  ;;  %v2344_v43 = vmul.f32 %v2304_v11, %v1810_v35  ;;  %v650_v33 = vsub.f32 %v575_v62, %v5873_v22  ;;  %v651_v17 = vsub.f32 %v575_v62, %v5875_v30  ;;  %v7984_v11 = vld [vmem:[#allocation79_spill] sm:$0xff] }
 0x1b3   :  { %v4087_v32 = vpop.eup %4086  ;;  %v515_v6 = vsub.f32 %v435_v16, %v475_v5  ;;  %v471_v62 = vmul.f32 2.0, %v7984_v11  ;;  %v7985_v16 = vld [vmem:[#allocation80_spill] sm:$0xff] }
 0x1b4   :  { %v4089_v8 = vpop.eup %4088  ;;  %v1555_v24 = vmul.f32 %v4087_v32, %v1315_v52  ;;  %v516_v60 = vsub.f32 %v436_v56, %v476_v63  ;;  %v431_v52 = vadd.f32 %v5120_v54, %v380_v40  ;;  %v432_v32 = vadd.f32 %v5007_v3, %v380_v40  ;;  %v583_v40 = vpop.permute.xlu2 %582 }
 0x1b5   :  { %v4091_v47 = vpop.eup %4090  ;;  %v1556_v25 = vmul.f32 %v4089_v8, %v1316_v20  ;;  %v472_v20 = vmul.f32 2.0, %v7985_v16  ;;  %v6000_v63 = vand.u32 2147483647, %v651_v17  ;;  %v6002_v56 = vmax.f32 %v515_v6, 0.0  ;;  %v7993_v17 = vld [vmem:[#allocation71_spill] sm:$0xff] }
 0x1b6   :  { %v4093_v58 = vpop.eup %4092  ;;  %v2583_v48 = vmul.f32 %v4091_v47, %v2343_v13  ;;  %4016 = vmatmul.msk.f32.vlgmr.msrb.gmra.mxu2 %vm744_vm1, %v7982_v34  ;;  %4036 = vmatmul.msk.f32.vlgmr.msrb.gmra.mxu3 %vm744_vm1, %v7982_v34  ;;  %v6004_v3 = vmax.f32 %v516_v60, 0.0  ;;  %v511_v5 = vsub.f32 %v431_v52, %v471_v62  ;;  %v1973_v13 = vpop.f32.mrf.mxu2  ;;  %v654_v52 = vsub.f32 %v583_v40, %v5873_v22  ;;  %v7998_v62 = vld [vmem:[#allocation87_spill] sm:$0xff] }
 0x1b7   :  { %v2584_v12 = vmul.f32 %v4093_v58, %v2344_v43  ;;  %3980 = vmatmul.msk.f32.gmra.mxu0 %vm744_vm1, %v5490_v21  ;;  %4000 = vmatmul.msk.f32.gmra.mxu1 %vm744_vm1, %v5490_v21  ;;  %v5998_v43 = vand.u32 2147483647, %v650_v33  ;;  %7987 = vst [vmem:[#allocation70_spill] sm:$0xff] %v6002_v56  ;;  %v6008_v21 = vmul.f32 %v5804_v36, %v6002_v56  ;;  %v2050_v47 = vpop.f32.mrf.mxu3  ;;  %v6019_v58 = vpop.f32.mrf.mxu0  ;;  %v7994_v36 = vld [vmem:[#allocation65_spill] sm:$0xff] }
 0x1b8   :  { %v5990_v35 = vadd.f32 %v2583_v48, %v1555_v24  ;;  %7988 = vst [vmem:[#allocation91_spill] sm:$0xff] %v6004_v3  ;;  %v512_v24 = vsub.f32 %v432_v32, %v472_v20  ;;  %v6013_v33 = vmul.f32 %v5806_v55, %v6004_v3  ;;  %v1202_v48 = vmul.f32 2.0, %v6000_v63  ;;  %v7997_v32 = vld [vmem:[#allocation72_spill] sm:$0xff]  ;;  %v8002_v56 = vld [vmem:[#allocation61_spill] sm:$0xff] }
 0x1b9   :  { %v5996_v8 = vadd.f32 %v2584_v12, %v1556_v25  ;;  %7989 = vst [vmem:[#allocation92_spill] sm:$0xff] %v6008_v21  ;;  %v1201_v61 = vmul.f32 2.0, %v5998_v43  ;;  %v6015_v25 = vmax.f32 %v511_v5, 0.0  ;;  %v6023_v34 = vmul.f32 %v1973_v13, %v7993_v17  ;;  %v6029_v12 = vpop.f32.mrf.mxu1 }
 0x1ba   :  { %7983 = vst [vmem:[#allocation77_spill] sm:$0xff] %v5990_v35  ;;  %v6017_v6 = vmax.f32 %v512_v24, 0.0  ;;  %v6041_v11 = vmul.f32 %v2050_v47, %v7997_v32  ;;  %v417_v16 = vadd.f32 %v5120_v54, %v5820_v27  ;;  %v1242_v24 = vmul.f32 1.7320508, %v1202_v48  ;;  %v8000_v47 = vld [vmem:[#allocation45_spill] sm:$0xff]  ;;  %v567_v35 = vpop.permute.xlu0 %566  ;;  %v8004_v48 = vld [vmem:[#allocation82_spill] sm:$0xff] }
 0x1bb   :  { %7986 = vst [vmem:[#allocation62_spill] sm:$0xff] %v5996_v8  ;;  %v6033_v55 = vmul.f32 %v5748_v45, %v6015_v25  ;;  %v419_v45 = vadd.f32 %v5120_v54, %v5825_v51  ;;  %v1241_v20 = vmul.f32 1.7320508, %v1201_v61  ;;  %v655_v13 = vsub.f32 %v583_v40, %v5875_v30  ;;  %v8003_v61 = vld [vmem:[#allocation86_spill] sm:$0xff] }
 0x1bc   :  { %7990 = vst [vmem:[#allocation93_spill] sm:$0xff] %v6013_v33  ;;  %v6037_v60 = vmul.f32 %v5750_v2, %v6017_v6  ;;  %v7999_v2 = vld [vmem:[#allocation41_spill] sm:$0xff]  ;;  %v6054_v8 = vand.u32 2147483647, %v654_v52  ;;  %v425_v27 = vadd.f32 %v5120_v54, %v5936_v31  ;;  %v465_v51 = vmul.f32 2.0, %v8002_v56 }
 0x1bd   :  { %7991 = vst [vmem:[#allocation75_spill] sm:$0xff] %v6015_v25  ;;  %v457_v5 = vmul.f32 2.0, %v7999_v2  ;;  %v6061_v2 = vand.u32 2147483647, %v655_v13  ;;  %v646_v40 = vsub.f32 %v567_v35, %v5873_v22  ;;  %v8006_v31 = vsub.f32 %v5831_v28, %v5817_v7 }
 0x1be   :  { %7992 = vst [vmem:[#allocation79_spill] sm:$0xff] %v6017_v6  ;;  %4017 = vmatmul.msk.f32.gmra.mxu2 %vm744_vm1, %v7994_v36  ;;  %4037 = vmatmul.msk.f32.gmra.mxu3 %vm744_vm1, %v7994_v36  ;;  %v459_v36 = vmul.f32 2.0, %v8000_v47  ;;  %v1402_v6 = vadd.f32 %v8003_v61, %v1242_v24  ;;  %v1205_v52 = vmul.f32 2.0, %v6054_v8 }
 0x1bf   :  { %7995 = vst [vmem:[#allocation80_spill] sm:$0xff] %v6033_v55  ;;  %3981 = vmatmul.msk.f32.gmra.mxu0 %vm744_vm1, %v7998_v62  ;;  %4001 = vmatmul.msk.f32.gmra.mxu1 %vm744_vm1, %v7998_v62  ;;  %v497_v32 = vsub.f32 %v417_v16, %v457_v5  ;;  %v8001_v62 = vld [vmem:[#allocation85_spill] sm:$0xff]  ;;  %v6076_v56 = vmax.f32 %v8006_v31, 0.0  ;;  %v6078_v16 = vpop.f32.mrf.mxu0  ;;  %v647_v5 = vsub.f32 %v567_v35, %v5875_v30  ;;  %v1206_v28 = vmul.f32 2.0, %v6061_v2 }
 0x1c0   :  { %7996 = vst [vmem:[#allocation65_spill] sm:$0xff] %v6037_v60  ;;  %v499_v17 = vsub.f32 %v419_v45, %v459_v36  ;;  %v1401_v3 = vadd.f32 %v8001_v62, %v1241_v20  ;;  %v505_v45 = vsub.f32 %v425_v27, %v465_v51  ;;  %v1442_v7 = vsub.f32 0.0, %v1402_v6  ;;  %v8030_v55 = vld [vmem:[#allocation69_spill] sm:$0xff] }
 0x1c1   :  { %v6071_v54 = vmax.f32 %v497_v32, 0.0  ;;  %8007 = vst [vmem:[#allocation41_spill] sm:$0xff] %v6076_v56  ;;  %v6085_v47 = vpop.f32.mrf.mxu1  ;;  %v8009_v32 = vsub.f32 %v5840_v15, %v5834_v49  ;;  %v6093_v61 = vand.u32 2147483647, %v646_v40  ;;  %v1245_v27 = vmul.f32 1.7320508, %v1205_v52 }
 0x1c2   :  { %v6083_v13 = vmax.f32 %v499_v17, 0.0  ;;  %v1441_v36 = vsub.f32 0.0, %v1401_v3  ;;  %v6103_v3 = vmax.f32 %v505_v45, 0.0  ;;  %v6105_v17 = vand.u32 2147483647, %v647_v5  ;;  %v8014_v52 = vld [vmem:[#allocation88_spill] sm:$0xff] }
 0x1c3   :  { %8005 = vst [vmem:[#allocation87_spill] sm:$0xff] %v6071_v54  ;;  %v6090_v62 = vmax.f32 %v8009_v32, 0.0  ;;  %v6097_v35 = vmul.f32 %v5539_v50, %v6071_v54  ;;  %v6112_v6 = vmul.f32 1.4285715, %v5998_v43  ;;  %v6115_v51 = vmul.f32 1.4285715, %v6000_v63 }
 0x1c4   :  { %8008 = vst [vmem:[#allocation45_spill] sm:$0xff] %v6083_v13  ;;  %v6109_v49 = vmul.f32 %v5564_v38, %v6083_v13  ;;  %v1489_v15 = vmul.f32 1.442695, %v1441_v36  ;;  %v1246_v40 = vmul.f32 1.7320508, %v1206_v28  ;;  %v1405_v5 = vadd.f32 %v5480_v57, %v1245_v27 }
 0x1c5   :  { %8010 = vst [vmem:[#allocation85_spill] sm:$0xff] %v6090_v62  ;;  %v6119_v50 = vmul.f32 %v5566_v53, %v6090_v62  ;;  %v6127_v38 = vmul.f32 1.1111112, %v5897_v59  ;;  %v6130_v31 = vmul.f32 1.1111112, %v5899_v0  ;;  %v8017_v53 = vsub.f32 %v5944_v42, %v5934_v18 }
 0x1c6   :  { %4018 = vmatmul.msk.f32.gmra.mxu2 %vm744_vm1, %v8004_v48  ;;  %4038 = vmatmul.msk.f32.gmra.mxu3 %vm744_vm1, %v8004_v48  ;;  %8011 = vst [vmem:[#allocation61_spill] sm:$0xff] %v6103_v3  ;;  %v1197_v48 = vmul.f32 2.0, %v6093_v61  ;;  %v1281_v36 = vadd.f32 1.0, %v1241_v20  ;;  %v2229_v32 = vmul.f32 %v6112_v6, %v6112_v6  ;;  %v2230_v59 = vmul.f32 %v6115_v51, %v6115_v51 }
 0x1c7   :  { %3982 = vmatmul.msk.f32.gmra.mxu0 %vm744_vm1, %v5552_v10  ;;  %4002 = vmatmul.msk.f32.gmra.mxu1 %vm744_vm1, %v5552_v10  ;;  %v6101_v10 = vmul.f32 %v5541_v44, %v6076_v56  ;;  %8012 = vst [vmem:[#allocation86_spill] sm:$0xff] %v6109_v49  ;;  %v1491_v44 = vmul.f32 1.442695, %v1442_v7  ;;  %v6135_v45 = vmax.f32 %v8017_v53, 0.0  ;;  %v1198_v0 = vmul.f32 2.0, %v6105_v17  ;;  %v6154_v20 = vpop.f32.mrf.mxu0 }
 0x1c8   :  { %8013 = vst [vmem:[#allocation82_spill] sm:$0xff] %v6119_v50  ;;  %v6149_v18 = vmul.f32 %v5649_v19, %v6103_v3  ;;  %v1282_v57 = vadd.f32 1.0, %v1242_v24  ;;  %4094 = vpow2.f32 %v1489_v15  ;;  %v6152_v42 = vmul.f32 1.1111112, %v5998_v43  ;;  %v1976_v15 = vpop.f32.mrf.mxu2  ;;  %v8029_v3 = vld [vmem:[#allocation10_spill] sm:$0xff] }
 0x1c9   :  { %8015 = vst [vmem:[#allocation88_spill] sm:$0xff] %v6127_v38  ;;  %4096 = vpow2.f32 %v1491_v44  ;;  %v6157_v7 = vmul.f32 1.1111112, %v6000_v63  ;;  %v1406_v28 = vadd.f32 %v5483_v9, %v1246_v40  ;;  %v6160_v53 = vpop.f32.mrf.mxu1  ;;  %v1445_v19 = vsub.f32 0.0, %v1405_v5 }
 0x1ca   :  { %8016 = vst [vmem:[#allocation146_spill] sm:$0xff] %v6130_v31  ;;  %v6167_v24 = vmul.f32 1.4285715, %v6054_v8  ;;  %v6170_v43 = vmul.f32 1.4285715, %v6061_v2  ;;  %v1321_v63 = vmul.f32 %v1281_v36, %v5653_v37  ;;  %v8025_v36 = vld [vmem:[#allocation83_spill] sm:$0xff] }
 0x1cb   :  { %8018 = vst [vmem:[#allocation147_spill] sm:$0xff] %v6135_v45  ;;  %v6173_v44 = vmul.f32 1.6666666, %v2229_v32  ;;  %v6175_v9 = vmul.f32 1.6666666, %v2230_v59  ;;  %v1446_v25 = vsub.f32 0.0, %v1406_v28  ;;  %v6186_v32 = vmul.f32 %v1976_v15, %v8025_v36 }
 0x1cc   :  { %8019 = vst [vmem:[#allocation148_spill] sm:$0xff] %v6149_v18  ;;  %v2234_v5 = vmul.f32 %v6170_v43, %v6170_v43  ;;  %v2105_v38 = vmul.f32 1.4285715, %v6093_v61  ;;  %v2106_v37 = vmul.f32 1.4285715, %v6105_v17  ;;  %v8026_v59 = vld [vmem:[#allocation89_spill] sm:$0xff] }
 0x1cd   :  { %8020 = vst [vmem:[#allocation149_spill] sm:$0xff] %v6152_v42  ;;  %v8023_v42 = vld [vmem:[#allocation20_spill] sm:$0xff]  ;;  %v6196_v28 = vmul.f32 1.1111112, %v6061_v2  ;;  %v1285_v36 = vadd.f32 1.0, %v1245_v27  ;;  %v1286_v60 = vadd.f32 1.0, %v1246_v40 }
 0x1ce   :  { %4019 = vmatmul.msk.f32.gmra.mxu2 %vm744_vm1, %v8014_v52  ;;  %4039 = vmatmul.msk.f32.gmra.mxu3 %vm744_vm1, %v8014_v52  ;;  %8021 = vst [vmem:[#allocation150_spill] sm:$0xff] %v6157_v7  ;;  %v1237_v52 = vmul.f32 1.7320508, %v1197_v48  ;;  %v1238_v48 = vmul.f32 1.7320508, %v1198_v0  ;;  %v595_v7 = vpop.permute.xlu2 %594  ;;  %v1322_v31 = vmul.f32 %v1282_v57, %v8023_v42  ;;  %v4095_v0 = vpop.eup %4094 }
 0x1cf   :  { %3983 = vmatmul.msk.f32.gmra.mxu0 %vm744_vm1, %v5573_v39  ;;  %4003 = vmatmul.msk.f32.gmra.mxu1 %vm744_vm1, %v5573_v39  ;;  %v6164_v39 = vmul.f32 %v5651_v41, %v6135_v45  ;;  %v2233_v41 = vmul.f32 %v6167_v24, %v6167_v24  ;;  %v1497_v57 = vmul.f32 1.442695, %v1445_v19  ;;  %v6193_v42 = vmul.f32 1.1111112, %v6054_v8  ;;  %8028 = vst [vmem:[#allocation68_spill] sm:$0xff] %v6196_v28  ;;  %v4097_v15 = vpop.eup %4096  ;;  %v6215_v18 = vpop.f32.mrf.mxu0 }
 0x1d0   :  { %v1397_v45 = vadd.f32 %v8024_v14, %v1237_v52  ;;  %v660_v14 = vsub.f32 %v595_v7, %v5873_v22  ;;  %v1398_v62 = vadd.f32 %v8030_v55, %v1238_v48  ;;  %v6207_v19 = vmul.f32 1.6666666, %v2234_v5 }
 0x1d1   :  { %8022 = vst [vmem:[#allocation151_spill] sm:$0xff] %v6164_v39  ;;  %v6205_v8 = vmul.f32 1.6666666, %v2233_v41  ;;  %v2145_v2 = vmul.f32 2.236068, %v2105_v38  ;;  %v2225_v28 = vmul.f32 %v2105_v38, %v2105_v38  ;;  %v6209_v13 = vmul.f32 %v4095_v0, %v1321_v63  ;;  %v6219_v33 = vpop.f32.mrf.mxu1 }
 0x1d2   :  { %8027 = vst [vmem:[#allocation20_spill] sm:$0xff] %v6193_v42  ;;  %v559_v42 = vpop.permute.xlu1 %558  ;;  %v1499_v56 = vmul.f32 1.442695, %v1446_v25  ;;  %v1437_v39 = vsub.f32 0.0, %v1397_v45  ;;  %v2146_v27 = vmul.f32 2.236068, %v2106_v37  ;;  %v6211_v40 = vmul.f32 %v4097_v15, %v1322_v31 }
 0x1d3   :  { %4098 = vpow2.f32 %v1497_v57  ;;  %v2226_v55 = vmul.f32 %v2106_v37, %v2106_v37  ;;  %v1277_v5 = vadd.f32 1.0, %v1237_v52  ;;  %v1438_v54 = vsub.f32 0.0, %v1398_v62 }
 0x1d4   :  { %v642_v38 = vsub.f32 %v559_v42, %v5873_v22  ;;  %v2185_v63 = vadd.f32 1.0, %v2145_v2  ;;  %v2265_v25 = vmul.f32 1.6666666, %v2225_v28  ;;  %v2425_v45 = vadd.f32 %v5965_v23, %v2145_v2  ;;  %v8033_v23 = vld [vmem:[#allocation103_spill] sm:$0xff] }
 0x1d5   :  { %v643_v31 = vsub.f32 %v559_v42, %v5875_v30  ;;  %4100 = vpow2.f32 %v1499_v56  ;;  %v1278_v37 = vadd.f32 1.0, %v1238_v48  ;;  %v1481_v0 = vmul.f32 1.442695, %v1437_v39  ;;  %v8034_v56 = vld [vmem:[#allocation124_spill] sm:$0xff] }
 0x1d6   :  { %4020 = vmatmul.msk.f32.gmra.mxu2 %vm744_vm1, %v8026_v59  ;;  %4040 = vmatmul.msk.f32.gmra.mxu3 %vm744_vm1, %v8026_v59  ;;  %v661_v59 = vsub.f32 %v595_v7, %v5875_v30  ;;  %v6213_v7 = vand.u32 2147483647, %v660_v14  ;;  %v2426_v57 = vadd.f32 %v5968_v29, %v2146_v27  ;;  %v8032_v14 = vld [vmem:[#allocation78_spill] sm:$0xff]  ;;  %v2186_v62 = vadd.f32 1.0, %v2146_v27 }
 0x1d7   :  { %3984 = vmatmul.msk.f32.gmra.mxu0 %vm744_vm1, %v8029_v3  ;;  %4004 = vmatmul.msk.f32.gmra.mxu1 %vm744_vm1, %v8029_v3  ;;  %v8031_v3 = vld [vmem:[#allocation47_spill] sm:$0xff]  ;;  %v2266_v52 = vmul.f32 1.6666666, %v2226_v55  ;;  %v1326_v48 = vmul.f32 %v1286_v60, %v8034_v56  ;;  %v1483_v39 = vmul.f32 1.442695, %v1438_v54  ;;  %v2305_v2 = vadd.f32 %v2265_v25, %v2185_v63  ;;  %v8037_v60 = vld [vmem:[#allocation37_spill] sm:$0xff]  ;;  %v2053_v25 = vpop.f32.mrf.mxu3 }
 0x1d8   :  { %v1325_v41 = vmul.f32 %v1285_v36, %v8031_v3  ;;  %v6228_v36 = vand.u32 2147483647, %v661_v59  ;;  %v1211_v28 = vmul.f32 2.0, %v6213_v7  ;;  %v6235_v29 = vmul.f32 1.1111112, %v6093_v61  ;;  %v8036_v3 = vld [vmem:[#allocation14_spill] sm:$0xff] }
 0x1d9   :  { %v6237_v42 = vand.u32 2147483647, %v642_v38  ;;  %v4099_v15 = vpop.eup %4098  ;;  %v2465_v59 = vsub.f32 0.0, %v2425_v45  ;;  %v6241_v27 = vand.u32 2147483647, %v643_v31  ;;  %v6248_v54 = vmul.f32 %v1278_v37, %v8037_v60 }
 0x1da   :  { %8035 = vst [vmem:[#allocation89_spill] sm:$0xff] %v6235_v29  ;;  %v2149_v55 = vmul.f32 2.236068, %v6112_v6  ;;  %v2466_v61 = vsub.f32 0.0, %v2426_v57  ;;  %v6251_v38 = vmul.f32 1.1111112, %v6105_v17  ;;  %4102 = vpow2.f32 %v1481_v0 }
 0x1db   :  { %v2306_v56 = vadd.f32 %v2266_v52, %v2186_v62  ;;  %v1251_v63 = vmul.f32 1.7320508, %v1211_v28  ;;  %v4101_v45 = vpop.eup %4100  ;;  %v6254_v31 = vmul.f32 %v4099_v15, %v1325_v41  ;;  %4104 = vpow2.f32 %v1483_v39  ;;  %v6263_v62 = vpop.f32.mrf.mxu0  ;;  %v8040_v39 = vld [vmem:[#allocation84_spill] sm:$0xff] }
 0x1dc   :  { %8038 = vst [vmem:[#allocation10_spill] sm:$0xff] %v6251_v38  ;;  %v1193_v6 = vmul.f32 2.0, %v6237_v42  ;;  %v6259_v37 = vmul.f32 %v2305_v2, %v5975_v1  ;;  %v2509_v57 = vmul.f32 1.442695, %v2465_v59  ;;  %v1194_v17 = vmul.f32 2.0, %v6241_v27  ;;  %v6273_v1 = vpop.f32.mrf.mxu1  ;;  %v8043_v2 = vld [vmem:[#allocation113_spill] sm:$0xff] }
 0x1dd   :  { %v2429_v0 = vadd.f32 %v6186_v32, %v2149_v55  ;;  %8039 = vst [vmem:[#allocation69_spill] sm:$0xff] %v6263_v62  ;;  %v2511_v52 = vmul.f32 1.442695, %v2466_v61  ;;  %v6266_v28 = vmul.f32 1.4285715, %v6237_v42  ;;  %v2189_v41 = vadd.f32 1.0, %v2149_v55 }
 0x1de   :  { %4021 = vmatmul.msk.f32.gmra.mxu2 %vm744_vm1, %v8032_v14  ;;  %4041 = vmatmul.msk.f32.gmra.mxu3 %vm744_vm1, %v8032_v14  ;;  %v6245_v14 = vmul.f32 %v1277_v5, %v8036_v3  ;;  %v2150_v5 = vmul.f32 2.236068, %v6115_v51  ;;  %v2390_v15 = vmul.f32 %v2053_v25, %v8040_v39  ;;  %v8041_v3 = vld [vmem:[#allocation81_spill] sm:$0xff]  ;;  %8042 = vst [vmem:[#allocation47_spill] sm:$0xff] %v6273_v1  ;;  %v8044_v61 = vld [vmem:[#allocation24_spill] sm:$0xff]  ;;  %4106 = vpow2.f32 %v2509_v57 }
 0x1df   :  { %3985 = vmatmul.msk.f32.gmra.mxu0 %vm744_vm1, %v8033_v23  ;;  %4005 = vmatmul.msk.f32.gmra.mxu1 %vm744_vm1, %v8033_v23  ;;  %v1212_v23 = vmul.f32 2.0, %v6228_v36  ;;  %v6275_v51 = vmul.f32 %v4101_v45, %v1326_v48  ;;  %v1411_v59 = vadd.f32 %v8043_v2, %v1251_v63  ;;  %v2469_v60 = vsub.f32 0.0, %v2429_v0 }
 0x1e0   :  { %v2346_v55 = vmul.f32 %v2306_v56, %v5978_v4  ;;  %v6281_v25 = vmul.f32 1.7320508, %v1193_v6  ;;  %v6284_v39 = vmul.f32 1.4285715, %v6241_v27  ;;  %v2430_v38 = vadd.f32 %v2390_v15, %v2150_v5  ;;  %v4103_v48 = vpop.eup %4102  ;;  %v8045_v6 = vld [vmem:[#allocation114_spill] sm:$0xff] }
 0x1e1   :  { %v1252_v32 = vmul.f32 1.7320508, %v1212_v23  ;;  %v6288_v23 = vmul.f32 1.7320508, %v1194_v17  ;;  %v2517_v45 = vmul.f32 1.442695, %v2469_v60  ;;  %4108 = vpow2.f32 %v2511_v52 }
 0x1e2   :  { %v2190_v0 = vadd.f32 1.0, %v2150_v5  ;;  %v6291_v2 = vmul.f32 2.236068, %v6266_v28  ;;  %v2309_v4 = vadd.f32 %v6173_v44, %v2189_v41  ;;  %v2470_v56 = vsub.f32 0.0, %v2430_v38  ;;  %v8046_v17 = vld [vmem:[#allocation57_spill] sm:$0xff]  ;;  %v8047_v44 = vld [vmem:[#allocation58_spill] sm:$0xff] }
 0x1e3   :  { %v1412_v29 = vadd.f32 %v8045_v6, %v1252_v32  ;;  %v1451_v15 = vsub.f32 0.0, %v1411_v59  ;;  %v6296_v21 = vmul.f32 1.4285715, %v6213_v7  ;;  %4110 = vpow2.f32 %v2517_v45 }
 0x1e4   :  { %v1291_v57 = vadd.f32 1.0, %v1251_v63  ;;  %v1393_v60 = vadd.f32 %v8046_v17, %v6281_v25  ;;  %v2142_v5 = vmul.f32 2.236068, %v6284_v39  ;;  %v2519_v52 = vmul.f32 1.442695, %v2470_v56  ;;  %v8049_v63 = vld [vmem:[#allocation137_spill] sm:$0xff]  ;;  %v587_v17 = vpop.permute.xlu0 %586 }
 0x1e5   :  { %v6302_v50 = vmul.f32 1.4285715, %v6228_v36  ;;  %v1394_v38 = vadd.f32 %v8047_v44, %v6288_v23  ;;  %v2310_v41 = vadd.f32 %v6175_v9, %v2190_v0  ;;  %v6308_v59 = vmul.f32 1.1111112, %v6213_v7  ;;  %v8050_v56 = vld [vmem:[#allocation104_spill] sm:$0xff] }
 0x1e6   :  { %4022 = vmatmul.msk.f32.gmra.mxu2 %vm744_vm1, %v8041_v3  ;;  %4042 = vmatmul.msk.f32.gmra.mxu3 %vm744_vm1, %v8041_v3  ;;  %v4105_v3 = vpop.eup %4104  ;;  %v2421_v45 = vadd.f32 %v8049_v63, %v6291_v2  ;;  %v2349_v6 = vmul.f32 %v2309_v4, %v6078_v16  ;;  %4112 = vpow2.f32 %v2519_v52  ;;  %v6318_v44 = vmul.f32 %v4103_v48, %v6245_v14  ;;  %v8053_v63 = vld [vmem:[#allocation112_spill] sm:$0xff]  ;;  %v6325_v4 = vpop.f32.mrf.mxu0  ;;  %v8057_v14 = vld [vmem:[#allocation138_spill] sm:$0xff] }
 0x1e7   :  { %3986 = vmatmul.msk.f32.gmra.mxu0 %vm744_vm1, %v8044_v61  ;;  %4006 = vmatmul.msk.f32.gmra.mxu1 %vm744_vm1, %v8044_v61  ;;  %v1292_v61 = vadd.f32 1.0, %v1252_v32  ;;  %8048 = vst [vmem:[#allocation78_spill] sm:$0xff] %v6308_v59  ;;  %v4107_v32 = vpop.eup %4106  ;;  %v1452_v9 = vsub.f32 0.0, %v1412_v29  ;;  %v1509_v7 = vmul.f32 1.442695, %v1451_v15  ;;  %v6328_v52 = vmul.f32 %v4105_v3, %v6248_v54  ;;  %v8056_v59 = vld [vmem:[#allocation5_spill] sm:$0xff]  ;;  %v607_v29 = vpop.permute.xlu2 %606 }
 0x1e8   :  { %8051 = vst [vmem:[#allocation103_spill] sm:$0xff] %v6318_v44  ;;  %v6321_v0 = vmul.f32 1.1111112, %v6228_v36  ;;  %v4109_v16 = vpop.eup %4108  ;;  %v1433_v49 = vsub.f32 0.0, %v1393_v60  ;;  %v2422_v48 = vadd.f32 %v8057_v14, %v2142_v5  ;;  %v6336_v15 = vpop.f32.mrf.mxu1  ;;  %v2350_v54 = vmul.f32 %v2310_v41, %v6085_v47 }
 0x1e9   :  { %8054 = vst [vmem:[#allocation14_spill] sm:$0xff] %v6325_v4  ;;  %v4111_v36 = vpop.eup %4110  ;;  %v1434_v4 = vsub.f32 0.0, %v1394_v38  ;;  %v656_v3 = vsub.f32 %v587_v17, %v5873_v22  ;;  %v2461_v60 = vsub.f32 0.0, %v2421_v45  ;;  %v657_v14 = vsub.f32 %v587_v17, %v5875_v30 }
 0x1ea   :  { %8052 = vst [vmem:[#allocation124_spill] sm:$0xff] %v6321_v0  ;;  %v8059_v0 = vld [vmem:[#allocation6_spill] sm:$0xff]  ;;  %4114 = vpow2.f32 %v1509_v7  ;;  %v2221_v47 = vmul.f32 %v6266_v28, %v6266_v28  ;;  %v2462_v38 = vsub.f32 0.0, %v2422_v48  ;;  %v2222_v45 = vmul.f32 %v6284_v39, %v6284_v39  ;;  %v8063_v7 = vld [vmem:[#allocation105_spill] sm:$0xff] }
 0x1eb   :  { %8055 = vst [vmem:[#allocation37_spill] sm:$0xff] %v6328_v52  ;;  %v6339_v44 = vmul.f32 %v1292_v61, %v8059_v0  ;;  %v6347_v52 = vmul.f32 %v4109_v16, %v2346_v55  ;;  %v1473_v0 = vmul.f32 1.442695, %v1433_v49  ;;  %v6357_v55 = vand.u32 2147483647, %v656_v3  ;;  %v8065_v16 = vld [vmem:[#allocation35_spill] sm:$0xff] }
 0x1ec   :  { %8058 = vst [vmem:[#allocation81_spill] sm:$0xff] %v6336_v15  ;;  %v666_v15 = vsub.f32 %v607_v29, %v5873_v22  ;;  %v4113_v61 = vpop.eup %4112  ;;  %v1273_v17 = vadd.f32 1.0, %v6281_v25  ;;  %v667_v49 = vsub.f32 %v607_v29, %v5875_v30  ;;  %v571_v25 = vpop.permute.xlu1 %570  ;;  %v2261_v48 = vmul.f32 1.6666666, %v2221_v47  ;;  %v8067_v47 = vld [vmem:[#allocation99_spill] sm:$0xff] }
 0x1ed   :  { %8061 = vst [vmem:[#allocation24_spill] sm:$0xff] %v6347_v52  ;;  %v2503_v29 = vmul.f32 1.442695, %v2462_v38 }
 0x1ee   :  { %4023 = vmatmul.msk.f32.gmra.mxu2 %vm744_vm1, %v8050_v56  ;;  %4043 = vmatmul.msk.f32.gmra.mxu3 %vm744_vm1, %v8050_v56  ;;  %v6331_v56 = vmul.f32 %v1291_v57, %v8056_v59  ;;  %v6344_v57 = vmul.f32 %v4107_v32, %v6259_v37  ;;  %v2589_v59 = vmul.f32 %v4111_v36, %v2349_v6  ;;  %v1475_v37 = vmul.f32 1.442695, %v1434_v4  ;;  %v1979_v36 = vpop.f32.mrf.mxu2 }
 0x1ef   :  { %3987 = vmatmul.msk.f32.gmra.mxu0 %vm744_vm1, %v8053_v63  ;;  %4007 = vmatmul.msk.f32.gmra.mxu1 %vm744_vm1, %v8053_v63  ;;  %v1511_v63 = vmul.f32 1.442695, %v1452_v9  ;;  %v2590_v6 = vmul.f32 %v4113_v61, %v2350_v54  ;;  %v2501_v32 = vmul.f32 1.442695, %v2461_v60  ;;  %v6360_v9 = vand.u32 2147483647, %v657_v14  ;;  %v2056_v54 = vpop.f32.mrf.mxu3  ;;  %v6380_v60 = vpop.f32.mrf.mxu0 }
 0x1f0   :  { %8060 = vst [vmem:[#allocation113_spill] sm:$0xff] %v6344_v57  ;;  %v6353_v41 = vadd.f32 %v2589_v59, %v6209_v13  ;;  %v2181_v13 = vadd.f32 1.0, %v6291_v2  ;;  %v6371_v39 = vand.u32 2147483647, %v666_v15  ;;  %v2182_v4 = vadd.f32 1.0, %v2142_v5  ;;  %v4115_v3 = vpop.eup %4114 }
 0x1f1   :  { %4116 = vpow2.f32 %v1511_v63  ;;  %v6369_v28 = vadd.f32 %v2590_v6, %v6211_v40  ;;  %v2262_v2 = vmul.f32 1.6666666, %v2222_v45  ;;  %v2239_v40 = vmul.f32 %v6296_v21, %v6296_v21  ;;  %v6386_v63 = vpop.f32.mrf.mxu1 }
 0x1f2   :  { %8062 = vst [vmem:[#allocation114_spill] sm:$0xff] %v6353_v41  ;;  %4118 = vpow2.f32 %v1473_v0  ;;  %v1207_v15 = vmul.f32 2.0, %v6357_v55  ;;  %v1208_v5 = vmul.f32 2.0, %v6360_v9  ;;  %v6383_v59 = vand.u32 2147483647, %v667_v49 }
 0x1f3   :  { %8064 = vst [vmem:[#allocation57_spill] sm:$0xff] %v6369_v28  ;;  %4120 = vpow2.f32 %v1475_v37  ;;  %v648_v14 = vsub.f32 %v571_v25, %v5873_v22  ;;  %v2240_v61 = vmul.f32 %v6302_v50, %v6302_v50  ;;  %v1217_v0 = vmul.f32 2.0, %v6371_v39  ;;  %v8068_v37 = vld [vmem:[#allocation100_spill] sm:$0xff] }
 0x1f4   :  { %4122 = vpow2.f32 %v2501_v32  ;;  %8066 = vst [vmem:[#allocation58_spill] sm:$0xff] %v6383_v59  ;;  %v6392_v38 = vmul.f32 %v1979_v36, %v8067_v47  ;;  %v6395_v45 = vmul.f32 %v2056_v54, %v8068_v37  ;;  %v1274_v6 = vadd.f32 1.0, %v6288_v23  ;;  %v8071_v23 = vld [vmem:[#allocation29_spill] sm:$0xff] }
 0x1f5   :  { %4124 = vpow2.f32 %v2503_v29  ;;  %v6399_v32 = vmul.f32 2.236068, %v6296_v21  ;;  %v649_v49 = vsub.f32 %v571_v25, %v5875_v30  ;;  %v2279_v28 = vmul.f32 1.6666666, %v2239_v40 }
 0x1f6   :  { %4024 = vmatmul.msk.f32.gmra.mxu2 %vm744_vm1, %v8063_v7  ;;  %4044 = vmatmul.msk.f32.gmra.mxu3 %vm744_vm1, %v8063_v7  ;;  %v6403_v41 = vmul.f32 2.236068, %v6302_v50  ;;  %v1247_v52 = vmul.f32 1.7320508, %v1207_v15  ;;  %v2302_v47 = vadd.f32 %v2262_v2, %v2182_v4  ;;  %v1248_v57 = vmul.f32 1.7320508, %v1208_v5 }
 0x1f7   :  { %3988 = vmatmul.msk.f32.gmra.mxu0 %vm744_vm1, %v8065_v16  ;;  %4008 = vmatmul.msk.f32.gmra.mxu1 %vm744_vm1, %v8065_v16  ;;  %8069 = vst [vmem:[#allocation137_spill] sm:$0xff] %v6399_v32  ;;  %v4117_v7 = vpop.eup %4116  ;;  %v2301_v16 = vadd.f32 %v2261_v48, %v2181_v13  ;;  %v1218_v54 = vmul.f32 2.0, %v6383_v59  ;;  %v6406_v37 = vand.u32 2147483647, %v648_v14  ;;  %v2199_v13 = vadd.f32 1.0, %v6399_v32  ;;  %v8072_v4 = vld [vmem:[#allocation30_spill] sm:$0xff] }
 0x1f8   :  { %8070 = vst [vmem:[#allocation104_spill] sm:$0xff] %v6403_v41  ;;  %v4119_v36 = vpop.eup %4118  ;;  %v2200_v50 = vadd.f32 1.0, %v6403_v41  ;;  %v2280_v25 = vmul.f32 1.6666666, %v2240_v61  ;;  %v6414_v48 = vmul.f32 1.7320508, %v1217_v0  ;;  %v6428_v61 = vmul.f32 %v4115_v3, %v6331_v56 }
 0x1f9   :  { %v4121_v21 = vpop.eup %4120  ;;  %v8073_v2 = vld [vmem:[#allocation97_spill] sm:$0xff]  ;;  %v8074_v15 = vld [vmem:[#allocation98_spill] sm:$0xff]  ;;  %v6421_v14 = vmul.f32 1.1111112, %v6237_v42  ;;  %v6431_v0 = vmul.f32 %v4117_v7, %v6339_v44  ;;  %v6434_v41 = vmul.f32 1.1111112, %v6241_v27  ;;  %v2319_v56 = vadd.f32 %v2279_v28, %v2199_v13  ;;  %v6460_v13 = vpop.f32.mrf.mxu1 }
 0x1fa   :  { %v4123_v29 = vpop.eup %4122  ;;  %v1313_v40 = vmul.f32 %v1273_v17, %v8073_v2  ;;  %v1314_v5 = vmul.f32 %v1274_v6, %v8074_v15  ;;  %8076 = vst [vmem:[#allocation5_spill] sm:$0xff] %v6428_v61  ;;  %v8079_v17 = vld [vmem:[#allocation107_spill] sm:$0xff]  ;;  %v8080_v15 = vld [vmem:[#allocation53_spill] sm:$0xff]  ;;  %v1258_v32 = vmul.f32 1.7320508, %v1218_v54  ;;  %v1199_v46 = vmul.f32 2.0, %v6406_v37 }
 0x1fb   :  { %8075 = vst [vmem:[#allocation112_spill] sm:$0xff] %v6421_v14  ;;  %v1407_v2 = vadd.f32 %v8079_v17, %v1247_v52  ;;  %v4125_v6 = vpop.eup %4124  ;;  %v2341_v42 = vmul.f32 %v2301_v16, %v8080_v15  ;;  %v8081_v14 = vld [vmem:[#allocation108_spill] sm:$0xff]  ;;  %v2320_v3 = vadd.f32 %v2280_v25, %v2200_v50  ;;  %v6450_v15 = vpop.f32.mrf.mxu0  ;;  %v6458_v28 = vmul.f32 1.4285715, %v6360_v9  ;;  %v8090_v50 = vld [vmem:[#allocation129_spill] sm:$0xff] }
 0x1fc   :  { %8077 = vst [vmem:[#allocation138_spill] sm:$0xff] %v6431_v0  ;;  %v8083_v44 = vld [vmem:[#allocation128_spill] sm:$0xff]  ;;  %v6443_v0 = vmul.f32 %v4119_v36, %v1313_v40  ;;  %v6445_v27 = vmul.f32 %v4121_v21, %v1314_v5  ;;  %v599_v36 = vpop.permute.xlu0 %598  ;;  %v1418_v25 = vadd.f32 %v8090_v50, %v1258_v32  ;;  %v2107_v40 = vmul.f32 1.4285715, %v6406_v37  ;;  %v6466_v5 = vpop.f32.mrf.mxu2 }
 0x1fd   :  { %8078 = vst [vmem:[#allocation6_spill] sm:$0xff] %v6434_v41  ;;  %v1417_v7 = vadd.f32 %v8083_v44, %v6414_v48  ;;  %v6447_v17 = vmul.f32 %v4123_v29, %v2341_v42  ;;  %v6463_v29 = vmul.f32 1.7320508, %v1199_v46  ;;  %v6478_v42 = vmul.f32 %v2320_v3, %v6386_v63  ;;  %v8099_v41 = vld [vmem:[#allocation127_spill] sm:$0xff] }
 0x1fe   :  { %4025 = vmatmul.msk.f32.gmra.mxu2 %vm744_vm1, %v8071_v23  ;;  %4045 = vmatmul.msk.f32.gmra.mxu3 %vm744_vm1, %v8071_v23  ;;  %v6423_v23 = vand.u32 2147483647, %v649_v49  ;;  %v1408_v49 = vadd.f32 %v8081_v14, %v1248_v57  ;;  %8084 = vst [vmem:[#allocation105_spill] sm:$0xff] %v6443_v0  ;;  %v1447_v14 = vsub.f32 0.0, %v1407_v2  ;;  %v8091_v2 = vld [vmem:[#allocation96_spill] sm:$0xff]  ;;  %v1287_v44 = vadd.f32 1.0, %v1247_v52 }
 0x1ff   :  { %3989 = vmatmul.msk.f32.gmra.mxu0 %vm744_vm1, %v8072_v4  ;;  %4009 = vmatmul.msk.f32.gmra.mxu1 %vm744_vm1, %v8072_v4  ;;  %v8082_v4 = vld [vmem:[#allocation54_spill] sm:$0xff]  ;;  %8085 = vst [vmem:[#allocation35_spill] sm:$0xff] %v6445_v27  ;;  %v1288_v50 = vadd.f32 1.0, %v1248_v57  ;;  %v6489_v63 = vmul.f32 1.1111112, %v6357_v55  ;;  %v662_v3 = vsub.f32 %v599_v36, %v5873_v22  ;;  %v8096_v52 = vld [vmem:[#allocation73_spill] sm:$0xff] }
 0x200   :  { %v2342_v26 = vmul.f32 %v2302_v47, %v8082_v4  ;;  %8086 = vst [vmem:[#allocation29_spill] sm:$0xff] %v6447_v17  ;;  %v1200_v16 = vmul.f32 2.0, %v6423_v23  ;;  %v6455_v47 = vmul.f32 1.4285715, %v6357_v55  ;;  %v1448_v21 = vsub.f32 0.0, %v1408_v49  ;;  %v8094_v4 = vld [vmem:[#allocation109_spill] sm:$0xff] }
 0x201   :  { %8087 = vst [vmem:[#allocation30_spill] sm:$0xff] %v6450_v15  ;;  %v1457_v49 = vsub.f32 0.0, %v1417_v7  ;;  %v1399_v57 = vadd.f32 %v8096_v52, %v6463_v29  ;;  %v2147_v17 = vmul.f32 2.236068, %v2107_v40  ;;  %v8098_v55 = vld [vmem:[#allocation126_spill] sm:$0xff]  ;;  %v1297_v52 = vadd.f32 1.0, %v6414_v48 }
 0x202   :  { %v6452_v54 = vmul.f32 %v4125_v6, %v2342_v26  ;;  %8089 = vst [vmem:[#allocation98_spill] sm:$0xff] %v6460_v13  ;;  %v6468_v26 = vpop.f32.mrf.mxu3  ;;  %v6475_v6 = vmul.f32 %v2319_v56, %v6380_v60  ;;  %v2235_v46 = vmul.f32 %v6455_v47, %v6455_v47  ;;  %v1240_v27 = vmul.f32 1.7320508, %v1200_v16 }
 0x203   :  { %8093 = vst [vmem:[#allocation53_spill] sm:$0xff] %v6478_v42  ;;  %v1501_v60 = vmul.f32 1.442695, %v1447_v14  ;;  %v2108_v56 = vmul.f32 1.4285715, %v6423_v23  ;;  %v663_v14 = vsub.f32 %v599_v36, %v5875_v30  ;;  %v1328_v13 = vmul.f32 %v1288_v50, %v8099_v41  ;;  %v619_v41 = vpop.permute.xlu2 %618  ;;  %v8103_v50 = vld [vmem:[#allocation125_spill] sm:$0xff] }
 0x204   :  { %8088 = vst [vmem:[#allocation97_spill] sm:$0xff] %v6452_v54  ;;  %v2236_v54 = vmul.f32 %v6458_v28, %v6458_v28  ;;  %v1503_v7 = vmul.f32 1.442695, %v1448_v21  ;;  %v6495_v0 = vmul.f32 1.6666666, %v2235_v46  ;;  %v8100_v21 = vld [vmem:[#allocation74_spill] sm:$0xff] }
 0x205   :  { %8092 = vst [vmem:[#allocation107_spill] sm:$0xff] %v6475_v6  ;;  %v6498_v16 = vmul.f32 1.1111112, %v6360_v9  ;;  %4126 = vpow2.f32 %v1501_v60  ;;  %v2148_v42 = vmul.f32 2.236068, %v2108_v56  ;;  %v1298_v36 = vadd.f32 1.0, %v1258_v32  ;;  %v6536_v6 = vpop.f32.mrf.mxu2 }
 0x206   :  { %4026 = vmatmul.msk.f32.gmra.mxu2 %vm744_vm1, %v8091_v2  ;;  %4046 = vmatmul.msk.f32.gmra.mxu3 %vm744_vm1, %v8091_v2  ;;  %8095 = vst [vmem:[#allocation108_spill] sm:$0xff] %v6489_v63  ;;  %v1458_v2 = vsub.f32 0.0, %v1418_v25  ;;  %v1327_v63 = vmul.f32 %v1287_v44, %v8098_v55  ;;  %v6503_v15 = vmul.f32 1.6666666, %v2236_v54  ;;  %v1400_v25 = vadd.f32 %v8100_v21, %v1240_v27  ;;  %v6512_v54 = vpop.f32.mrf.mxu0  ;;  %v8107_v32 = vld [vmem:[#allocation12_spill] sm:$0xff] }
 0x207   :  { %3990 = vmatmul.msk.f32.gmra.mxu0 %vm744_vm1, %v8094_v4  ;;  %4010 = vmatmul.msk.f32.gmra.mxu1 %vm744_vm1, %v8094_v4  ;;  %8097 = vst [vmem:[#allocation54_spill] sm:$0xff] %v6498_v16  ;;  %v1521_v4 = vmul.f32 1.442695, %v1457_v49  ;;  %v6507_v46 = vand.u32 2147483647, %v662_v3  ;;  %4128 = vpow2.f32 %v1503_v7  ;;  %v1439_v16 = vsub.f32 0.0, %v1399_v57 }
 0x208   :  { %v1523_v9 = vmul.f32 1.442695, %v1458_v2  ;;  %v2427_v49 = vadd.f32 %v6023_v34, %v2147_v17  ;;  %v2227_v44 = vmul.f32 %v2107_v40, %v2107_v40  ;;  %v6510_v55 = vand.u32 2147483647, %v663_v14  ;;  %8102 = vst [vmem:[#allocation129_spill] sm:$0xff] %v6512_v54  ;;  %v6522_v34 = vpop.f32.mrf.mxu1 }
 0x209   :  { %4130 = vpow2.f32 %v1521_v4  ;;  %v6517_v48 = vmul.f32 1.4285715, %v6371_v39  ;;  %v6520_v60 = vmul.f32 1.4285715, %v6383_v59  ;;  %v1440_v3 = vsub.f32 0.0, %v1400_v25  ;;  %8106 = vst [vmem:[#allocation73_spill] sm:$0xff] %v6522_v34 }
 0x20a   :  { %8101 = vst [vmem:[#allocation128_spill] sm:$0xff] %v6510_v55  ;;  %v2228_v7 = vmul.f32 %v2108_v56, %v2108_v56  ;;  %v1337_v40 = vmul.f32 %v1297_v52, %v8107_v32  ;;  %v6528_v2 = vmul.f32 1.1111112, %v6371_v39  ;;  %v2428_v57 = vadd.f32 %v6041_v11, %v2148_v42  ;;  %v8109_v59 = vld [vmem:[#allocation13_spill] sm:$0xff] }
 0x20b   :  { %8104 = vst [vmem:[#allocation96_spill] sm:$0xff] %v6517_v48  ;;  %v1213_v4 = vmul.f32 2.0, %v6507_v46  ;;  %4132 = vpow2.f32 %v1523_v9  ;;  %v1485_v14 = vmul.f32 1.442695, %v1439_v16  ;;  %v2467_v21 = vsub.f32 0.0, %v2427_v49  ;;  %v4127_v56 = vpop.eup %4126  ;;  %v8110_v9 = vld [vmem:[#allocation28_spill] sm:$0xff] }
 0x20c   :  { %8105 = vst [vmem:[#allocation109_spill] sm:$0xff] %v6520_v60  ;;  %v672_v25 = vsub.f32 %v619_v41, %v5873_v22  ;;  %v1338_v34 = vmul.f32 %v1298_v36, %v8109_v59  ;;  %v2187_v54 = vadd.f32 1.0, %v2147_v17  ;;  %v2267_v61 = vmul.f32 1.6666666, %v2227_v44 }
 0x20d   :  { %8108 = vst [vmem:[#allocation126_spill] sm:$0xff] %v6528_v2  ;;  %v4129_v52 = vpop.eup %4128  ;;  %v1279_v39 = vadd.f32 1.0, %v6463_v29  ;;  %v1487_v32 = vmul.f32 1.442695, %v1440_v3  ;;  %v2188_v2 = vadd.f32 1.0, %v2148_v42  ;;  %v1280_v49 = vadd.f32 1.0, %v1240_v27 }
 0x20e   :  { %v2268_v11 = vmul.f32 1.6666666, %v2228_v7  ;;  %4027 = vmatmul.msk.f32.gmra.mxu2 %vm744_vm1, %v8110_v9  ;;  %v2468_v60 = vsub.f32 0.0, %v2428_v57  ;;  %v1253_v48 = vmul.f32 1.7320508, %v1213_v4  ;;  %v673_v59 = vsub.f32 %v619_v41, %v5875_v30  ;;  %v8114_v27 = vld [vmem:[#allocation25_spill] sm:$0xff]  ;;  %v579_v4 = vpop.permute.xlu1 %578 }
 0x20f   :  { %3991 = vmatmul.msk.f32.gmra.mxu0 %vm744_vm1, %v8103_v50  ;;  %4011 = vmatmul.msk.f32.gmra.mxu1 %vm744_vm1, %v8103_v50  ;;  %v1214_v50 = vmul.f32 2.0, %v6510_v55  ;;  %v4131_v16 = vpop.eup %4130  ;;  %4134 = vpow2.f32 %v1485_v14  ;;  %v2513_v17 = vmul.f32 1.442695, %v2467_v21  ;;  %v6542_v36 = vmul.f32 1.1111112, %v6406_v37  ;;  %v6553_v14 = vpop.f32.mrf.mxu3  ;;  %v8115_v37 = vld [vmem:[#allocation26_spill] sm:$0xff] }
 0x210   :  { %v6544_v29 = vand.u32 2147483647, %v672_v25  ;;  %v6546_v42 = vmul.f32 %v4127_v56, %v1327_v63  ;;  %v6548_v44 = vmul.f32 %v4129_v52, %v1328_v13  ;;  %v2307_v3 = vadd.f32 %v2267_v61, %v2187_v54  ;;  %4047 = vmatmul.msk.f32.gmra.mxu3 %vm744_vm1, %v8110_v9 }
 0x211   :  { %8111 = vst [vmem:[#allocation127_spill] sm:$0xff] %v6542_v36  ;;  %v1254_v7 = vmul.f32 1.7320508, %v1214_v50  ;;  %v4133_v1 = vpop.eup %4132  ;;  %v6550_v62 = vmul.f32 %v4131_v16, %v1337_v40  ;;  %v1319_v57 = vmul.f32 %v1279_v39, %v8114_v27  ;;  %4136 = vpow2.f32 %v1487_v32  ;;  %v6598_v27 = vpop.f32.mrf.mxu0 }
 0x212   :  { %8112 = vst [vmem:[#allocation74_spill] sm:$0xff] %v6544_v29  ;;  %v2308_v41 = vadd.f32 %v2268_v11, %v2188_v2  ;;  %v1320_v63 = vmul.f32 %v1280_v49, %v8115_v37  ;;  %v2515_v21 = vmul.f32 1.442695, %v2468_v60  ;;  %v1413_v13 = vadd.f32 %v6097_v35, %v1253_v48 }
 0x213   :  { %8113 = vst [vmem:[#allocation125_spill] sm:$0xff] %v6550_v62  ;;  %v6559_v61 = vand.u32 2147483647, %v673_v59  ;;  %4138 = vpow2.f32 %v2513_v17  ;;  %v6562_v54 = vmul.f32 1.4285715, %v6507_v46  ;;  %v1223_v2 = vmul.f32 2.0, %v6544_v29 }
 0x214   :  { %v6565_v40 = vmul.f32 1.4285715, %v6510_v55  ;;  %v6568_v25 = vmul.f32 %v4133_v1, %v1338_v34  ;;  %v2347_v56 = vmul.f32 %v2307_v3, %v6019_v58  ;;  %v1414_v50 = vadd.f32 %v6101_v10, %v1254_v7  ;;  %v8122_v3 = vld [vmem:[#allocation94_spill] sm:$0xff] }
 0x215   :  { %8116 = vst [vmem:[#allocation12_spill] sm:$0xff] %v6559_v61  ;;  %v652_v60 = vsub.f32 %v579_v4, %v5873_v22  ;;  %v4135_v35 = vpop.eup %4134  ;;  %v6574_v52 = vmul.f32 %v2308_v41, %v6029_v12  ;;  %v6577_v39 = vmul.f32 1.1111112, %v6423_v23  ;;  %v2241_v32 = vmul.f32 %v6562_v54, %v6562_v54  ;;  %v6600_v41 = vpop.f32.mrf.mxu1 }
 0x216   :  { %8117 = vst [vmem:[#allocation13_spill] sm:$0xff] %v6568_v25  ;;  %v2242_v1 = vmul.f32 %v6565_v40, %v6565_v40  ;;  %v1453_v34 = vsub.f32 0.0, %v1413_v13  ;;  %v6584_v58 = vmul.f32 1.1111112, %v6507_v46  ;;  %v1224_v10 = vmul.f32 2.0, %v6559_v61 }
 0x217   :  { %8118 = vst [vmem:[#allocation28_spill] sm:$0xff] %v6577_v39  ;;  %v653_v11 = vsub.f32 %v579_v4, %v5875_v30  ;;  %v4137_v9 = vpop.eup %4136  ;;  %4140 = vpow2.f32 %v2515_v21  ;;  %v1263_v12 = vmul.f32 1.7320508, %v1223_v2  ;;  %v6589_v23 = vmul.f32 1.4285715, %v6544_v29  ;;  %v8123_v4 = vld [vmem:[#allocation130_spill] sm:$0xff] }
 0x218   :  { %8119 = vst [vmem:[#allocation25_spill] sm:$0xff] %v6584_v58  ;;  %v2153_v16 = vmul.f32 2.236068, %v6167_v24  ;;  %v6592_v49 = vmul.f32 %v4135_v35, %v1319_v57  ;;  %v1454_v59 = vsub.f32 0.0, %v1414_v50  ;;  %v6594_v17 = vand.u32 2147483647, %v652_v60  ;;  %3992 = vmatmul.msk.f32.gmra.mxu0 %vm744_vm1, %v8123_v4  ;;  %4012 = vmatmul.msk.f32.gmra.mxu1 %vm744_vm1, %v8123_v4 }
 0x219   :  { %8120 = vst [vmem:[#allocation26_spill] sm:$0xff] %v6589_v23  ;;  %v2393_v46 = vmul.f32 %v6466_v5, %v8122_v3  ;;  %v4139_v37 = vpop.eup %4138  ;;  %v1293_v24 = vadd.f32 1.0, %v1253_v48  ;;  %v1294_v57 = vadd.f32 1.0, %v1254_v7  ;;  %v6606_v21 = vmul.f32 1.6666666, %v2241_v32  ;;  %v8125_v35 = vld [vmem:[#allocation133_spill] sm:$0xff] }
 0x21a   :  { %8121 = vst [vmem:[#allocation152_spill] sm:$0xff] %v6592_v49  ;;  %v6608_v13 = vmul.f32 1.6666666, %v2242_v1  ;;  %v6610_v2 = vmul.f32 %v4137_v9, %v1320_v63  ;;  %v1513_v5 = vmul.f32 1.442695, %v1453_v34  ;;  %v1423_v29 = vadd.f32 %v8125_v35, %v1263_v12  ;;  %v8126_v3 = vld [vmem:[#allocation95_spill] sm:$0xff] }
 0x21b   :  { %v1264_v50 = vmul.f32 1.7320508, %v1224_v10  ;;  %v6612_v60 = vand.u32 2147483647, %v653_v11  ;;  %v2433_v58 = vadd.f32 %v2393_v46, %v2153_v16  ;;  %v2154_v55 = vmul.f32 2.236068, %v6170_v43 }
 0x21c   :  { %8124 = vst [vmem:[#allocation130_spill] sm:$0xff] %v6610_v2  ;;  %v2394_v4 = vmul.f32 %v6468_v26, %v8126_v3  ;;  %v6618_v48 = vmul.f32 %v4139_v37, %v2347_v56  ;;  %v1515_v7 = vmul.f32 1.442695, %v1454_v59  ;;  %v1203_v32 = vmul.f32 2.0, %v6594_v17  ;;  %v8128_v9 = vld [vmem:[#allocation7_spill] sm:$0xff]  ;;  %v8129_v10 = vld [vmem:[#allocation8_spill] sm:$0xff]  ;;  %v611_v3 = vpop.permute.xlu0 %610 }
 0x21d   :  { %v2193_v1 = vadd.f32 1.0, %v2153_v16  ;;  %v4141_v63 = vpop.eup %4140  ;;  %v1333_v34 = vmul.f32 %v1293_v24, %v8128_v9  ;;  %v6623_v11 = vmul.f32 %v1294_v57, %v8129_v10  ;;  %v2473_v2 = vsub.f32 0.0, %v2433_v58  ;;  %v8130_v46 = vld [vmem:[#allocation134_spill] sm:$0xff]  ;;  %v6631_v58 = vpop.f32.mrf.mxu2 }
 0x21e   :  { %8127 = vst [vmem:[#allocation133_spill] sm:$0xff] %v6618_v48  ;;  %v2434_v35 = vadd.f32 %v2394_v4, %v2154_v55  ;;  %v1424_v49 = vadd.f32 %v8130_v46, %v1264_v50  ;;  %v6627_v43 = vmul.f32 1.4285715, %v6559_v61  ;;  %v1204_v26 = vmul.f32 2.0, %v6612_v60  ;;  %v8132_v4 = vld [vmem:[#allocation110_spill] sm:$0xff] }
 0x21f   :  { %v2194_v56 = vadd.f32 1.0, %v2154_v55  ;;  %4142 = vpow2.f32 %v1513_v5  ;;  %v1463_v59 = vsub.f32 0.0, %v1423_v29  ;;  %v2525_v37 = vmul.f32 1.442695, %v2473_v2  ;;  %4028 = vmatmul.msk.f32.gmra.mxu2 %vm744_vm1, %v8132_v4  ;;  %v8197_v23 = vld [vmem:[#allocation82_spill] sm:$0xff] }
 0x220   :  { %8131 = vst [vmem:[#allocation7_spill] sm:$0xff] %v6627_v43  ;;  %v2474_v16 = vsub.f32 0.0, %v2434_v35  ;;  %4144 = vpow2.f32 %v1515_v7  ;;  %v1303_v24 = vadd.f32 1.0, %v1263_v12  ;;  %v1243_v9 = vmul.f32 1.7320508, %v1203_v32 }
 0x221   :  { %v2313_v57 = vadd.f32 %v6205_v8, %v2193_v1  ;;  %v1304_v10 = vadd.f32 1.0, %v1264_v50  ;;  %v2111_v46 = vmul.f32 1.4285715, %v6594_v17  ;;  %4146 = vpow2.f32 %v2525_v37  ;;  %v8134_v50 = vld [vmem:[#allocation21_spill] sm:$0xff] }
 0x222   :  { %v2527_v55 = vmul.f32 1.442695, %v2474_v16  ;;  %v1464_v5 = vsub.f32 0.0, %v1424_v49  ;;  %v1244_v29 = vmul.f32 1.7320508, %v1204_v26  ;;  %v2314_v2 = vadd.f32 %v6207_v19, %v2194_v56  ;;  %v8135_v37 = vld [vmem:[#allocation101_spill] sm:$0xff] }
 0x223   :  { %v668_v7 = vsub.f32 %v611_v3, %v5873_v22  ;;  %v1533_v12 = vmul.f32 1.442695, %v1463_v59  ;;  %v2112_v32 = vmul.f32 1.4285715, %v6612_v60  ;;  %v669_v8 = vsub.f32 %v611_v3, %v5875_v30  ;;  %v8136_v19 = vld [vmem:[#allocation22_spill] sm:$0xff]  ;;  %v631_v3 = vpop.permute.xlu2 %630 }
 0x224   :  { %4148 = vpow2.f32 %v2527_v55  ;;  %v6641_v1 = vmul.f32 %v4141_v63, %v6574_v52  ;;  %v6644_v35 = vmul.f32 %v1303_v24, %v8134_v50  ;;  %v1403_v16 = vadd.f32 %v8135_v37, %v1243_v9  ;;  %v8138_v63 = vld [vmem:[#allocation102_spill] sm:$0xff] }
 0x225   :  { %v2353_v49 = vmul.f32 %v2313_v57, %v6215_v18  ;;  %v4143_v26 = vpop.eup %4142  ;;  %v6649_v56 = vmul.f32 %v1304_v10, %v8136_v19  ;;  %v2151_v59 = vmul.f32 2.236068, %v2111_v46  ;;  %v2231_v61 = vmul.f32 %v2111_v46, %v2111_v46 }
 0x226   :  { %8133 = vst [vmem:[#allocation8_spill] sm:$0xff] %v6641_v1  ;;  %v6652_v55 = vmul.f32 1.1111112, %v6594_v17  ;;  %v4145_v48 = vpop.eup %4144  ;;  %v1535_v52 = vmul.f32 1.442695, %v1464_v5  ;;  %v1404_v1 = vadd.f32 %v8138_v63, %v1244_v29  ;;  %v2354_v24 = vmul.f32 %v2314_v2, %v6219_v33  ;;  %v6665_v2 = vpop.f32.mrf.mxu3  ;;  %4048 = vmatmul.msk.f32.gmra.mxu3 %vm744_vm1, %v8132_v4 }
 0x227   :  { %v6656_v50 = vand.u32 2147483647, %v668_v7  ;;  %v4147_v37 = vpop.eup %4146  ;;  %4150 = vpow2.f32 %v1533_v12  ;;  %v2152_v18 = vmul.f32 2.236068, %v2112_v32  ;;  %v2232_v57 = vmul.f32 %v2112_v32, %v2112_v32 }
 0x228   :  { %8137 = vst [vmem:[#allocation134_spill] sm:$0xff] %v6652_v55  ;;  %v6658_v10 = vand.u32 2147483647, %v669_v8  ;;  %v1283_v19 = vadd.f32 1.0, %v1243_v9  ;;  %v1443_v46 = vsub.f32 0.0, %v1403_v16  ;;  %v2593_v39 = vmul.f32 %v4147_v37, %v2353_v49  ;;  %v6693_v37 = vpop.f32.mrf.mxu1 }
 0x229   :  { %8139 = vst [vmem:[#allocation110_spill] sm:$0xff] %v6656_v50  ;;  %v678_v17 = vsub.f32 %v631_v3, %v5873_v22  ;;  %v6661_v36 = vmul.f32 %v4143_v26, %v1333_v34  ;;  %v1284_v5 = vadd.f32 1.0, %v1244_v29  ;;  %v2431_v63 = vadd.f32 %v6392_v38, %v2151_v59 }
 0x22a   :  { %8140 = vst [vmem:[#allocation21_spill] sm:$0xff] %v6658_v10  ;;  %v4149_v55 = vpop.eup %4148  ;;  %v679_v33 = vsub.f32 %v631_v3, %v5875_v30  ;;  %v1444_v7 = vsub.f32 0.0, %v1404_v1  ;;  %v6670_v9 = vadd.f32 %v2593_v39, %v6254_v31  ;;  %v1219_v32 = vmul.f32 2.0, %v6656_v50  ;;  %v591_v31 = vpop.permute.xlu1 %590 }
 0x22b   :  { %v2594_v12 = vmul.f32 %v4149_v55, %v2354_v24  ;;  %v6674_v34 = vmul.f32 %v4145_v48, %v6623_v11  ;;  %4152 = vpow2.f32 %v1535_v52  ;;  %v2191_v29 = vadd.f32 1.0, %v2151_v59  ;;  %v8145_v11 = vld [vmem:[#allocation34_spill] sm:$0xff]  ;;  %v8146_v55 = vld [vmem:[#allocation31_spill] sm:$0xff] }
 0x22c   :  { %8141 = vst [vmem:[#allocation101_spill] sm:$0xff] %v6670_v9  ;;  %v1220_v38 = vmul.f32 2.0, %v6658_v10  ;;  %v1493_v8 = vmul.f32 1.442695, %v1443_v46  ;;  %v2432_v16 = vadd.f32 %v6395_v45, %v2152_v18  ;;  %v6681_v4 = vand.u32 2147483647, %v678_v17 }
 0x22d   :  { %v6679_v49 = vadd.f32 %v2594_v12, %v6275_v51  ;;  %v4151_v39 = vpop.eup %4150  ;;  %v2471_v1 = vsub.f32 0.0, %v2431_v63  ;;  %v6683_v26 = vand.u32 2147483647, %v679_v33  ;;  %v2155_v48 = vmul.f32 2.236068, %v6455_v47  ;;  %v6691_v51 = vpop.f32.mrf.mxu0  ;;  %v8147_v46 = vld [vmem:[#allocation131_spill] sm:$0xff] }
 0x22e   :  { %8143 = vst [vmem:[#allocation102_spill] sm:$0xff] %v6681_v4  ;;  %v2395_v59 = vmul.f32 %v6536_v6, %v8145_v11  ;;  %v1323_v3 = vmul.f32 %v1283_v19, %v8146_v55  ;;  %v1495_v52 = vmul.f32 1.442695, %v1444_v7  ;;  %v2271_v24 = vmul.f32 1.6666666, %v2231_v61  ;;  %3993 = vmatmul.msk.f32.gmra.mxu0 %vm744_vm1, %v8147_v46  ;;  %4013 = vmatmul.msk.f32.gmra.mxu1 %vm744_vm1, %v8147_v46  ;;  %v8148_v19 = vld [vmem:[#allocation116_spill] sm:$0xff] }
 0x22f   :  { %8142 = vst [vmem:[#allocation22_spill] sm:$0xff] %v6679_v49  ;;  %v6689_v45 = vmul.f32 1.7320508, %v1219_v32  ;;  %v2192_v47 = vadd.f32 1.0, %v2152_v18  ;;  %v2272_v17 = vmul.f32 1.6666666, %v2232_v57  ;;  %v658_v6 = vsub.f32 %v591_v31, %v5873_v22 }
 0x230   :  { %8144 = vst [vmem:[#allocation153_spill] sm:$0xff] %v6683_v26  ;;  %v6699_v63 = vmul.f32 1.7320508, %v1220_v38  ;;  %v1324_v61 = vmul.f32 %v1284_v5, %v8148_v19  ;;  %4154 = vpow2.f32 %v1493_v8  ;;  %v2472_v33 = vsub.f32 0.0, %v2432_v16  ;;  %v8150_v57 = vld [vmem:[#allocation144_spill] sm:$0xff]  ;;  %v8151_v8 = vld [vmem:[#allocation145_spill] sm:$0xff] }
 0x231   :  { %v1229_v7 = vmul.f32 2.0, %v6681_v4  ;;  %v4153_v12 = vpop.eup %4152  ;;  %v2521_v32 = vmul.f32 1.442695, %v2471_v1  ;;  %v6705_v55 = vmul.f32 1.1111112, %v6612_v60  ;;  %v1230_v49 = vmul.f32 2.0, %v6683_v26 }
 0x232   :  { %v2435_v46 = vadd.f32 %v2395_v59, %v2155_v48  ;;  %4156 = vpow2.f32 %v1495_v52  ;;  %v2311_v18 = vadd.f32 %v2271_v24, %v2191_v29  ;;  %v1419_v38 = vadd.f32 %v8150_v57, %v6689_v45  ;;  %v8154_v57 = vld [vmem:[#allocation106_spill] sm:$0xff] }
 0x233   :  { %8149 = vst [vmem:[#allocation31_spill] sm:$0xff] %v6705_v55  ;;  %v659_v9 = vsub.f32 %v591_v31, %v5875_v30  ;;  %v2312_v5 = vadd.f32 %v2272_v17, %v2192_v47  ;;  %v1420_v16 = vadd.f32 %v8151_v8, %v6699_v63  ;;  %v6713_v19 = vand.u32 2147483647, %v658_v6 }
 0x234   :  { %v2156_v1 = vmul.f32 2.236068, %v6458_v28  ;;  %v6717_v60 = vmul.f32 %v4151_v39, %v6644_v35  ;;  %v2523_v11 = vmul.f32 1.442695, %v2472_v33  ;;  %v1269_v59 = vmul.f32 1.7320508, %v1229_v7 }
 0x235   :  { %8152 = vst [vmem:[#allocation131_spill] sm:$0xff] %v6713_v19  ;;  %v2475_v52 = vsub.f32 0.0, %v2435_v46  ;;  %4158 = vpow2.f32 %v2521_v32  ;;  %v1270_v29 = vmul.f32 1.7320508, %v1230_v49  ;;  %v2195_v24 = vadd.f32 1.0, %v2155_v48 }
 0x236   :  { %8153 = vst [vmem:[#allocation116_spill] sm:$0xff] %v6717_v60  ;;  %v2396_v31 = vmul.f32 %v6553_v14, %v8154_v57  ;;  %v4155_v47 = vpop.eup %4154  ;;  %v2351_v17 = vmul.f32 %v2311_v18, %v6154_v20  ;;  %v1459_v8 = vsub.f32 0.0, %v1419_v38  ;;  %v6722_v6 = vand.u32 2147483647, %v659_v9  ;;  %v8158_v14 = vld [vmem:[#allocation139_spill] sm:$0xff]  ;;  %v6732_v20 = vpop.f32.mrf.mxu2 }
 0x237   :  { %v2529_v55 = vmul.f32 1.442695, %v2475_v52  ;;  %v6725_v28 = vmul.f32 %v2312_v5, %v6160_v53  ;;  %v1460_v35 = vsub.f32 0.0, %v1420_v16  ;;  %v1209_v39 = vmul.f32 2.0, %v6713_v19  ;;  %v8159_v9 = vld [vmem:[#allocation111_spill] sm:$0xff]  ;;  %v8161_v53 = vld [vmem:[#allocation140_spill] sm:$0xff] }
 0x238   :  { %8155 = vst [vmem:[#allocation144_spill] sm:$0xff] %v6722_v6  ;;  %v2436_v33 = vadd.f32 %v2396_v31, %v2156_v1  ;;  %v4157_v7 = vpop.eup %4156  ;;  %v6729_v49 = vmul.f32 %v4153_v12, %v6649_v56  ;;  %4160 = vpow2.f32 %v2523_v11  ;;  %v1429_v48 = vadd.f32 %v8158_v14, %v1269_v59  ;;  %4029 = vmatmul.msk.f32.gmra.mxu2 %vm744_vm1, %v8159_v9  ;;  %v623_v12 = vpop.permute.xlu0 %622 }
 0x239   :  { %8156 = vst [vmem:[#allocation145_spill] sm:$0xff] %v6725_v28  ;;  %v2196_v32 = vadd.f32 1.0, %v2156_v1  ;;  %v6736_v46 = vmul.f32 %v4155_v47, %v1323_v3  ;;  %v1430_v18 = vadd.f32 %v8161_v53, %v1270_v29  ;;  %v2315_v38 = vadd.f32 %v6495_v0, %v2195_v24 }
 0x23a   :  { %8157 = vst [vmem:[#allocation154_spill] sm:$0xff] %v6729_v49  ;;  %v2476_v5 = vsub.f32 0.0, %v2436_v33  ;;  %v1525_v16 = vmul.f32 1.442695, %v1459_v8  ;;  %v6741_v56 = vmul.f32 1.4285715, %v6656_v50  ;;  %4162 = vpow2.f32 %v2529_v55  ;;  %v6753_v33 = vpop.f32.mrf.mxu3  ;;  %4049 = vmatmul.msk.f32.gmra.mxu3 %vm744_vm1, %v8159_v9 }
 0x23b   :  { %8160 = vst [vmem:[#allocation139_spill] sm:$0xff] %v6736_v46  ;;  %v1210_v11 = vmul.f32 2.0, %v6722_v6  ;;  %v4159_v1 = vpop.eup %4158  ;;  %v6744_v52 = vmul.f32 %v4157_v7, %v1324_v61  ;;  %v1527_v31 = vmul.f32 1.442695, %v1460_v35  ;;  %v6746_v14 = vmul.f32 1.7320508, %v1209_v39 }
 0x23c   :  { %v2531_v3 = vmul.f32 1.442695, %v2476_v5  ;;  %v1299_v47 = vadd.f32 1.0, %v6689_v45  ;;  %v6750_v0 = vmul.f32 1.4285715, %v6658_v10  ;;  %v1469_v24 = vsub.f32 0.0, %v1429_v48 }
 0x23d   :  { %8162 = vst [vmem:[#allocation111_spill] sm:$0xff] %v6744_v52  ;;  %v2316_v8 = vadd.f32 %v6503_v15, %v2196_v32  ;;  %v1470_v55 = vsub.f32 0.0, %v1430_v18  ;;  %v8163_v61 = vld [vmem:[#allocation69_spill] sm:$0xff]  ;;  %v674_v35 = vsub.f32 %v623_v12, %v5873_v22  ;;  %v6761_v45 = vmul.f32 %v4159_v1, %v2351_v17  ;;  %v8167_v9 = vld [vmem:[#allocation119_spill] sm:$0xff] }
 0x23e   :  { %v2355_v7 = vmul.f32 %v2315_v38, %v8163_v61  ;;  %4164 = vpow2.f32 %v2531_v3  ;;  %v6759_v39 = vpop.eup %4160  ;;  %v6763_v53 = vmul.f32 1.7320508, %v1210_v11  ;;  %v675_v15 = vsub.f32 %v623_v12, %v5875_v30  ;;  %v603_v38 = vpop.permute.xlu1 %602  ;;  %v8168_v3 = vld [vmem:[#allocation15_spill] sm:$0xff] }
 0x23f   :  { %8164 = vst [vmem:[#allocation140_spill] sm:$0xff] %v6759_v39  ;;  %4166 = vpow2.f32 %v1525_v16  ;;  %v1300_v48 = vadd.f32 1.0, %v6699_v63  ;;  %v6768_v32 = vmul.f32 1.4285715, %v6681_v4  ;;  %v1409_v18 = vadd.f32 %v8167_v9, %v6746_v14  ;;  %v8169_v16 = vld [vmem:[#allocation47_spill] sm:$0xff]  ;;  %v8171_v63 = vld [vmem:[#allocation120_spill] sm:$0xff] }
 0x240   :  { %8165 = vst [vmem:[#allocation69_spill] sm:$0xff] %v6761_v45  ;;  %4168 = vpow2.f32 %v1527_v31  ;;  %v4163_v5 = vpop.eup %4162  ;;  %v1339_v61 = vmul.f32 %v1299_v47, %v8168_v3  ;;  %v1309_v17 = vadd.f32 1.0, %v1269_v59  ;;  %v1310_v1 = vadd.f32 1.0, %v1270_v29  ;;  %v6782_v45 = vpop.f32.mrf.mxu0  ;;  %v8173_v29 = vld [vmem:[#allocation121_spill] sm:$0xff]  ;;  %v8176_v3 = vld [vmem:[#allocation43_spill] sm:$0xff]  ;;  %v8177_v39 = vld [vmem:[#allocation44_spill] sm:$0xff] }
 0x241   :  { %8166 = vst [vmem:[#allocation155_spill] sm:$0xff] %v6768_v32  ;;  %v2356_v11 = vmul.f32 %v2316_v8, %v8169_v16  ;;  %v1545_v10 = vmul.f32 1.442695, %v1469_v24  ;;  %v1547_v50 = vmul.f32 1.442695, %v1470_v55  ;;  %v2595_v12 = vmul.f32 %v4163_v5, %v2355_v7  ;;  %v6784_v59 = vpop.f32.mrf.mxu1  ;;  %3994 = vmatmul.msk.f32.gmra.mxu0 %vm744_vm1, %v8173_v29  ;;  %4014 = vmatmul.msk.f32.gmra.mxu1 %vm744_vm1, %v8173_v29 }
 0x242   :  { %v6774_v57 = vand.u32 2147483647, %v674_v35  ;;  %v1410_v31 = vadd.f32 %v8171_v63, %v6763_v53  ;;  %v2117_v4 = vmul.f32 1.4285715, %v6713_v19  ;;  %v6779_v52 = vand.u32 2147483647, %v675_v15 }
 0x243   :  { %v664_v9 = vsub.f32 %v603_v38, %v5873_v22  ;;  %v1449_v24 = vsub.f32 0.0, %v1409_v18  ;;  %v2118_v8 = vmul.f32 1.4285715, %v6722_v6  ;;  %v6792_v55 = vadd.f32 %v2595_v12, %v6546_v42  ;;  %v8175_v15 = vld [vmem:[#allocation17_spill] sm:$0xff] }
 0x244   :  { %8170 = vst [vmem:[#allocation119_spill] sm:$0xff] %v6774_v57  ;;  %v4165_v47 = vpop.eup %4164  ;;  %v665_v7 = vsub.f32 %v603_v38, %v5875_v30  ;;  %v1340_v5 = vmul.f32 %v1300_v48, %v8175_v15  ;;  %v6797_v16 = vmul.f32 %v1309_v17, %v8176_v3  ;;  %v2237_v63 = vmul.f32 %v2117_v4, %v2117_v4  ;;  %v6809_v17 = vpop.f32.mrf.mxu2  ;;  %v8180_v15 = vld [vmem:[#allocation16_spill] sm:$0xff] }
 0x245   :  { %8172 = vst [vmem:[#allocation15_spill] sm:$0xff] %v6779_v52  ;;  %v4167_v35 = vpop.eup %4166  ;;  %v2596_v19 = vmul.f32 %v4165_v47, %v2356_v11  ;;  %v6800_v29 = vmul.f32 %v1310_v1, %v8177_v39  ;;  %4170 = vpow2.f32 %v1545_v10  ;;  %v2238_v18 = vmul.f32 %v2118_v8, %v2118_v8  ;;  %4030 = vmatmul.msk.f32.gmra.mxu2 %vm744_vm1, %v8180_v15 }
 0x246   :  { %8174 = vst [vmem:[#allocation47_spill] sm:$0xff] %v6792_v55  ;;  %v4169_v46 = vpop.eup %4168  ;;  %v1225_v6 = vmul.f32 2.0, %v6774_v57  ;;  %v1450_v42 = vsub.f32 0.0, %v1410_v31  ;;  %v1226_v38 = vmul.f32 2.0, %v6779_v52  ;;  %v6807_v48 = vand.u32 2147483647, %v664_v9 }
 0x247   :  { %v6804_v12 = vadd.f32 %v2596_v19, %v6548_v44  ;;  %v6813_v11 = vmul.f32 %v4167_v35, %v1339_v61  ;;  %4172 = vpow2.f32 %v1547_v50  ;;  %v1505_v10 = vmul.f32 1.442695, %v1449_v24  ;;  %v8184_v9 = vld [vmem:[#allocation96_spill] sm:$0xff] }
 0x248   :  { %8179 = vst [vmem:[#allocation121_spill] sm:$0xff] %v6807_v48  ;;  %v6815_v39 = vand.u32 2147483647, %v665_v7  ;;  %v6817_v1 = vmul.f32 %v4169_v46, %v1340_v5  ;;  %v1289_v44 = vadd.f32 1.0, %v6746_v14  ;;  %v2277_v19 = vmul.f32 1.6666666, %v2237_v63  ;;  %v6832_v14 = vpop.f32.mrf.mxu3  ;;  %4050 = vmatmul.msk.f32.gmra.mxu3 %vm744_vm1, %v8180_v15 }
 0x249   :  { %8178 = vst [vmem:[#allocation120_spill] sm:$0xff] %v6804_v12  ;;  %v2157_v31 = vmul.f32 2.236068, %v2117_v4  ;;  %v2278_v47 = vmul.f32 1.6666666, %v2238_v18  ;;  %v2245_v12 = vmul.f32 %v8184_v9, %v8184_v9  ;;  %v1215_v24 = vmul.f32 2.0, %v6807_v48  ;;  %v6858_v43 = vpop.f32.mrf.mxu1 }
 0x24a   :  { %8181 = vst [vmem:[#allocation17_spill] sm:$0xff] %v6813_v11  ;;  %v6821_v3 = vmul.f32 2.236068, %v8184_v9  ;;  %v6825_v55 = vmul.f32 1.7320508, %v1225_v6  ;;  %v8185_v46 = vld [vmem:[#allocation117_spill] sm:$0xff]  ;;  %4174 = vpow2.f32 %v1505_v10 }
 0x24b   :  { %8182 = vst [vmem:[#allocation43_spill] sm:$0xff] %v6815_v39  ;;  %v1507_v61 = vmul.f32 1.442695, %v1450_v42  ;;  %v6827_v50 = vmul.f32 1.7320508, %v1226_v38  ;;  %v2397_v7 = vmul.f32 %v6631_v58, %v8185_v46  ;;  %v4171_v4 = vpop.eup %4170  ;;  %v1216_v35 = vmul.f32 2.0, %v6815_v39 }
 0x24c   :  { %8183 = vst [vmem:[#allocation44_spill] sm:$0xff] %v6817_v1  ;;  %v2158_v5 = vmul.f32 2.236068, %v2118_v8  ;;  %v8186_v6 = vld [vmem:[#allocation118_spill] sm:$0xff]  ;;  %v2205_v18 = vadd.f32 1.0, %v6821_v3  ;;  %v8187_v42 = vld [vmem:[#allocation109_spill] sm:$0xff] }
 0x24d   :  { %v2398_v63 = vmul.f32 %v6665_v2, %v8186_v6  ;;  %v6841_v38 = vmul.f32 2.236068, %v8187_v42  ;;  %v2246_v58 = vmul.f32 %v8187_v42, %v8187_v42  ;;  %v2437_v9 = vadd.f32 %v2397_v7, %v2157_v31  ;;  %v4173_v46 = vpop.eup %4172  ;;  %v8188_v15 = vld [vmem:[#allocation90_spill] sm:$0xff]  ;;  %v8189_v8 = vld [vmem:[#allocation76_spill] sm:$0xff]  ;;  %8192 = vst [vmem:[#allocation96_spill] sm:$0xff] %v6858_v43 }
 0x24e   :  { %v2285_v28 = vmul.f32 1.6666666, %v2245_v12  ;;  %v1425_v10 = vadd.f32 %v8188_v15, %v6825_v55  ;;  %v2197_v49 = vadd.f32 1.0, %v2157_v31  ;;  %v1426_v32 = vadd.f32 %v8189_v8, %v6827_v50  ;;  %v8190_v42 = vld [vmem:[#allocation42_spill] sm:$0xff] }
 0x24f   :  { %v2438_v60 = vadd.f32 %v2398_v63, %v2158_v5  ;;  %v6849_v2 = vmul.f32 1.7320508, %v1215_v24  ;;  %v2477_v6 = vsub.f32 0.0, %v2437_v9  ;;  %v2198_v1 = vadd.f32 1.0, %v2158_v5  ;;  %v6856_v63 = vpop.f32.mrf.mxu0  ;;  %v8193_v24 = vld [vmem:[#allocation141_spill] sm:$0xff]  ;;  %v8196_v43 = vld [vmem:[#allocation46_spill] sm:$0xff] }
 0x250   :  { %v1290_v11 = vadd.f32 1.0, %v6763_v53  ;;  %4176 = vpow2.f32 %v1507_v61  ;;  %v6852_v25 = vmul.f32 1.7320508, %v1216_v35  ;;  %v1329_v12 = vmul.f32 %v1289_v44, %v8190_v42  ;;  %8191 = vst [vmem:[#allocation16_spill] sm:$0xff] %v6856_v63  ;;  %3995 = vmatmul.msk.f32.gmra.mxu0 %vm744_vm1, %v8193_v24  ;;  %4015 = vmatmul.msk.f32.gmra.mxu1 %vm744_vm1, %v8193_v24  ;;  %v4175_v53 = vpop.eup %4174  ;;  %v635_v44 = vpop.permute.xlu0 %634 }
 0x251   :  { %v2478_v7 = vsub.f32 0.0, %v2438_v60  ;;  %v2206_v62 = vadd.f32 1.0, %v6841_v38  ;;  %v2286_v15 = vmul.f32 1.6666666, %v2246_v58  ;;  %v2533_v31 = vmul.f32 1.442695, %v2477_v6 }
 0x252   :  { %v2325_v61 = vadd.f32 %v2285_v28, %v2205_v18  ;;  %v1465_v35 = vsub.f32 0.0, %v1425_v10  ;;  %v2317_v60 = vadd.f32 %v2277_v19, %v2197_v49  ;;  %v1466_v9 = vsub.f32 0.0, %v1426_v32  ;;  %v8194_v58 = vld [vmem:[#allocation86_spill] sm:$0xff]  ;;  %v8200_v19 = vld [vmem:[#allocation36_spill] sm:$0xff] }
 0x253   :  { %v2535_v5 = vmul.f32 1.442695, %v2478_v7  ;;  %v1415_v6 = vadd.f32 %v8194_v58, %v6849_v2  ;;  %4178 = vpow2.f32 %v2533_v31  ;;  %v2318_v8 = vadd.f32 %v2278_v47, %v2198_v1  ;;  %v6881_v47 = vpop.f32.mrf.mxu2  ;;  %v8203_v31 = vld [vmem:[#allocation81_spill] sm:$0xff] }
 0x254   :  { %v6867_v42 = vmul.f32 %v4171_v4, %v6797_v16  ;;  %v1330_v63 = vmul.f32 %v1290_v11, %v8196_v43  ;;  %v1416_v24 = vadd.f32 %v8197_v23, %v6852_v25  ;;  %v6873_v28 = vmul.f32 %v4173_v46, %v6800_v29  ;;  %v6883_v16 = vpop.f32.mrf.mxu3  ;;  %v8201_v43 = vld [vmem:[#allocation27_spill] sm:$0xff]  ;;  %v8202_v46 = vld [vmem:[#allocation14_spill] sm:$0xff] }
 0x255   :  { %4180 = vpow2.f32 %v2535_v5  ;;  %v6876_v49 = vmul.f32 1.4285715, %v6683_v26  ;;  %v680_v32 = vsub.f32 %v635_v44, %v5873_v22  ;;  %v2399_v1 = vmul.f32 %v6732_v20, %v8200_v19  ;;  %4031 = vmatmul.msk.f32.gmra.mxu2 %vm744_vm1, %v8201_v43  ;;  %4051 = vmatmul.msk.f32.gmra.mxu3 %vm744_vm1, %v8201_v43  ;;  %v8205_v43 = vld [vmem:[#allocation23_spill] sm:$0xff] }
 0x256   :  { %8195 = vst [vmem:[#allocation109_spill] sm:$0xff] %v6867_v42  ;;  %v4177_v23 = vpop.eup %4176  ;;  %v2326_v29 = vadd.f32 %v2286_v15, %v2206_v62  ;;  %v1537_v11 = vmul.f32 1.442695, %v1465_v35  ;;  %v2357_v4 = vmul.f32 %v2317_v60, %v8202_v46  ;;  %v681_v18 = vsub.f32 %v635_v44, %v5875_v30 }
 0x257   :  { %8198 = vst [vmem:[#allocation90_spill] sm:$0xff] %v6873_v28  ;;  %v6892_v10 = vmul.f32 %v2325_v61, %v6598_v27  ;;  %v1539_v20 = vmul.f32 1.442695, %v1466_v9  ;;  %v1455_v7 = vsub.f32 0.0, %v1415_v6  ;;  %v2358_v5 = vmul.f32 %v2318_v8, %v8203_v31  ;;  %v8208_v6 = vld [vmem:[#allocation137_spill] sm:$0xff] }
 0x258   :  { %8199 = vst [vmem:[#allocation76_spill] sm:$0xff] %v6876_v49  ;;  %v1569_v58 = vmul.f32 %v4175_v53, %v1329_v12  ;;  %v6896_v26 = vmul.f32 1.4285715, %v6774_v57  ;;  %v1456_v19 = vsub.f32 0.0, %v1416_v24  ;;  %v2400_v62 = vmul.f32 %v6753_v33, %v8205_v43  ;;  %v615_v53 = vpop.permute.xlu1 %614  ;;  %v8223_v49 = vld [vmem:[#allocation93_spill] sm:$0xff] }
 0x259   :  { %v4179_v15 = vpop.eup %4178  ;;  %v1570_v35 = vmul.f32 %v4177_v23, %v1330_v63  ;;  %v1305_v60 = vadd.f32 1.0, %v6825_v55  ;;  %v6902_v44 = vmul.f32 1.4285715, %v6807_v48  ;;  %v6904_v27 = vand.u32 2147483647, %v680_v32  ;;  %v6912_v55 = vpop.f32.mrf.mxu0 }
 0x25a   :  { %8204 = vst [vmem:[#allocation42_spill] sm:$0xff] %v6896_v26  ;;  %4182 = vpow2.f32 %v1537_v11  ;;  %v2597_v9 = vmul.f32 %v4179_v15, %v2357_v4  ;;  %v6906_v12 = vand.u32 2147483647, %v681_v18  ;;  %v2439_v8 = vadd.f32 %v2399_v1, %v8208_v6  ;;  %v8212_v15 = vld [vmem:[#allocation122_spill] sm:$0xff] }
 0x25b   :  { %8206 = vst [vmem:[#allocation141_spill] sm:$0xff] %v6904_v27  ;;  %v4181_v61 = vpop.eup %4180  ;;  %4184 = vpow2.f32 %v1539_v20  ;;  %v1517_v24 = vmul.f32 1.442695, %v1455_v7  ;;  %v6910_v33 = vmul.f32 1.4285715, %v6815_v39  ;;  %v2247_v11 = vmul.f32 %v6741_v56, %v6741_v56  ;;  %v8216_v39 = vld [vmem:[#allocation104_spill] sm:$0xff] }
 0x25c   :  { %8207 = vst [vmem:[#allocation86_spill] sm:$0xff] %v6906_v12  ;;  %v2598_v63 = vmul.f32 %v4181_v61, %v2358_v5  ;;  %v1519_v23 = vmul.f32 1.442695, %v1456_v19  ;;  %v6914_v46 = vadd.f32 %v2597_v9, %v1569_v58  ;;  %v6917_v32 = vmul.f32 2.236068, %v6741_v56  ;;  %v6932_v58 = vpop.f32.mrf.mxu2  ;;  %v6934_v56 = vpop.f32.mrf.mxu3 }
 0x25d   :  { %8209 = vst [vmem:[#allocation46_spill] sm:$0xff] %v6912_v55  ;;  %v2248_v1 = vmul.f32 %v6750_v0, %v6750_v0  ;;  %v1231_v18 = vmul.f32 2.0, %v6904_v27  ;;  %v670_v20 = vsub.f32 %v615_v53, %v5873_v22  ;;  %v6928_v7 = vmul.f32 2.236068, %v6750_v0  ;;  %4032 = vmatmul.msk.f32.gmra.mxu2 %vm744_vm1, %v8212_v15  ;;  %4052 = vmatmul.msk.f32.gmra.mxu3 %vm744_vm1, %v8212_v15  ;;  %v6943_v9 = vpop.f32.mrf.mxu1 }
 0x25e   :  { %8210 = vst [vmem:[#allocation82_spill] sm:$0xff] %v6914_v46  ;;  %v6921_v4 = vadd.f32 %v2598_v63, %v1570_v35  ;;  %v1232_v19 = vmul.f32 2.0, %v6906_v12  ;;  %v671_v31 = vsub.f32 %v615_v53, %v5875_v30  ;;  %v2479_v5 = vsub.f32 0.0, %v2439_v8 }
 0x25f   :  { %v1306_v35 = vadd.f32 1.0, %v6827_v50  ;;  %v1295_v0 = vadd.f32 1.0, %v6849_v2  ;;  %v1296_v61 = vadd.f32 1.0, %v6852_v25  ;;  %4186 = vpow2.f32 %v1517_v24  ;;  %8213 = vst [vmem:[#allocation14_spill] sm:$0xff] %v6943_v9 }
 0x260   :  { %8211 = vst [vmem:[#allocation27_spill] sm:$0xff] %v6921_v4  ;;  %v4183_v53 = vpop.eup %4182  ;;  %4188 = vpow2.f32 %v1519_v23  ;;  %v2207_v6 = vadd.f32 1.0, %v6917_v32  ;;  %v2287_v8 = vmul.f32 1.6666666, %v2247_v11  ;;  %v2208_v63 = vadd.f32 1.0, %v6928_v7  ;;  %v8217_v23 = vld [vmem:[#allocation32_spill] sm:$0xff] }
 0x261   :  { %v4185_v57 = vpop.eup %4184  ;;  %v6948_v4 = vmul.f32 %v2326_v29, %v6600_v41  ;;  %v2288_v15 = vmul.f32 1.6666666, %v2248_v1  ;;  %v1271_v50 = vmul.f32 1.7320508, %v1231_v18  ;;  %v6950_v46 = vand.u32 2147483647, %v670_v20  ;;  %v6968_v9 = vpop.f32.mrf.mxu0 }
 0x262   :  { %v1272_v2 = vmul.f32 1.7320508, %v1232_v19  ;;  %v6952_v25 = vand.u32 2147483647, %v671_v31  ;;  %v2537_v24 = vmul.f32 1.442695, %v2479_v5  ;;  %v2440_v43 = vadd.f32 %v2400_v62, %v8216_v39 }
 0x263   :  { %8214 = vst [vmem:[#allocation81_spill] sm:$0xff] %v6950_v46  ;;  %v1345_v48 = vmul.f32 %v1305_v60, %v8217_v23  ;;  %v6957_v11 = vmul.f32 1.4285715, %v6779_v52  ;;  %v2243_v28 = vmul.f32 %v6902_v44, %v6902_v44  ;;  %v2244_v41 = vmul.f32 %v6910_v33, %v6910_v33  ;;  %v8219_v29 = vld [vmem:[#allocation33_spill] sm:$0xff]  ;;  %v8221_v19 = vld [vmem:[#allocation11_spill] sm:$0xff]  ;;  %v8222_v60 = vld [vmem:[#allocation92_spill] sm:$0xff] }
 0x264   :  { %8215 = vst [vmem:[#allocation137_spill] sm:$0xff] %v6952_v25  ;;  %v1346_v1 = vmul.f32 %v1306_v35, %v8219_v29  ;;  %v8220_v18 = vld [vmem:[#allocation9_spill] sm:$0xff]  ;;  %v1336_v31 = vmul.f32 %v1296_v61, %v8221_v19  ;;  %v2480_v5 = vsub.f32 0.0, %v2440_v43  ;;  %v2327_v39 = vadd.f32 %v2287_v8, %v2207_v6  ;;  %v6974_v61 = vpop.f32.mrf.mxu3  ;;  %v8224_v43 = vld [vmem:[#allocation123_spill] sm:$0xff] }
 0x265   :  { %8218 = vst [vmem:[#allocation122_spill] sm:$0xff] %v6957_v11  ;;  %v1335_v20 = vmul.f32 %v1295_v0, %v8220_v18  ;;  %v4187_v42 = vpop.eup %4186  ;;  %v2328_v62 = vadd.f32 %v2288_v15, %v2208_v63  ;;  %v1431_v23 = vadd.f32 %v8222_v60, %v1271_v50  ;;  %v1221_v52 = vmul.f32 2.0, %v6950_v46  ;;  %v6972_v0 = vpop.f32.mrf.mxu2  ;;  %4033 = vmatmul.msk.f32.gmra.mxu2 %vm744_vm1, %v8224_v43 }
 0x266   :  { %v4189_v55 = vpop.eup %4188  ;;  %v1432_v11 = vadd.f32 %v8223_v49, %v1272_v2  ;;  %v1222_v26 = vmul.f32 2.0, %v6952_v25  ;;  %4190 = vpow2.f32 %v2537_v24  ;;  %v2539_v35 = vmul.f32 1.442695, %v2480_v5  ;;  %4053 = vmatmul.msk.f32.gmra.mxu3 %vm744_vm1, %v8224_v43  ;;  %v627_v18 = vpop.permute.xlu1 %626 }
 0x267   :  { %v6980_v6 = vmul.f32 %v4183_v53, %v1345_v48  ;;  %v6982_v8 = vmul.f32 %v4185_v57, %v1346_v1  ;;  %v6984_v63 = vmul.f32 1.6666666, %v2243_v28  ;;  %v6986_v49 = vmul.f32 1.6666666, %v2244_v41  ;;  %v6995_v53 = vpop.f32.mrf.mxu1  ;;  %v8229_v41 = vld [vmem:[#allocation87_spill] sm:$0xff] }
 0x268   :  { %v6988_v15 = vmul.f32 %v4187_v42, %v1335_v20  ;;  %v1311_v24 = vadd.f32 1.0, %v1271_v50  ;;  %v1312_v29 = vadd.f32 1.0, %v1272_v2  ;;  %4192 = vpow2.f32 %v2539_v35  ;;  %8227 = vst [vmem:[#allocation33_spill] sm:$0xff] %v6995_v53  ;;  %v8230_v20 = vld [vmem:[#allocation50_spill] sm:$0xff]  ;;  %v8232_v35 = vld [vmem:[#allocation107_spill] sm:$0xff] }
 0x269   :  { %8225 = vst [vmem:[#allocation104_spill] sm:$0xff] %v6980_v6  ;;  %v6990_v19 = vmul.f32 %v4189_v55, %v1336_v31  ;;  %v6993_v5 = vmul.f32 %v2327_v39, %v6691_v51  ;;  %v1471_v60 = vsub.f32 0.0, %v1431_v23  ;;  %v1261_v48 = vmul.f32 1.7320508, %v1221_v52  ;;  %v8242_v6 = vld [vmem:[#allocation138_spill] sm:$0xff] }
 0x26a   :  { %8226 = vst [vmem:[#allocation32_spill] sm:$0xff] %v6982_v8  ;;  %v6998_v57 = vmul.f32 %v2328_v62, %v6693_v37  ;;  %v1472_v28 = vsub.f32 0.0, %v1432_v11  ;;  %v7001_v42 = vmul.f32 1.4285715, %v6904_v27  ;;  %v1262_v50 = vmul.f32 1.7320508, %v1222_v26 }
 0x26b   :  { %v7004_v2 = vmul.f32 1.4285715, %v6906_v12  ;;  %v676_v55 = vsub.f32 %v627_v18, %v5873_v22  ;;  %v2161_v51 = vmul.f32 2.236068, %v6562_v54  ;;  %v2401_v52 = vmul.f32 %v6809_v17, %v8229_v41  ;;  %v8231_v37 = vld [vmem:[#allocation51_spill] sm:$0xff]  ;;  %v8233_v27 = vld [vmem:[#allocation148_spill] sm:$0xff] }
 0x26c   :  { %v4191_v1 = vpop.eup %4190  ;;  %v7011_v31 = vmul.f32 %v1311_v24, %v8230_v20  ;;  %v7014_v11 = vmul.f32 %v1312_v29, %v8231_v37  ;;  %v677_v39 = vsub.f32 %v627_v18, %v5875_v30  ;;  %v2162_v26 = vmul.f32 2.236068, %v6565_v40  ;;  %v8234_v41 = vld [vmem:[#allocation151_spill] sm:$0xff]  ;;  %v8235_v24 = vld [vmem:[#allocation41_spill] sm:$0xff]  ;;  %v7025_v37 = vpop.f32.mrf.mxu3  ;;  %v8236_v30 = vld [vmem:[#allocation48_spill] sm:$0xff] }
 0x26d   :  { %8228 = vst [vmem:[#allocation9_spill] sm:$0xff] %v7004_v2  ;;  %v1549_v62 = vmul.f32 1.442695, %v1471_v60  ;;  %v1301_v23 = vadd.f32 1.0, %v1261_v48  ;;  %v2599_v22 = vmul.f32 %v4191_v1, %v8232_v35  ;;  %v2441_v43 = vadd.f32 %v2401_v52, %v2161_v51  ;;  %v7023_v29 = vpop.f32.mrf.mxu2  ;;  %4034 = vmatmul.msk.f32.gmra.mxu2 %vm744_vm1, %v8236_v30  ;;  %v8237_v40 = vld [vmem:[#allocation5_spill] sm:$0xff] }
 0x26e   :  { %v4193_v54 = vpop.eup %4192  ;;  %v1551_v12 = vmul.f32 1.442695, %v1472_v28  ;;  %v1421_v17 = vadd.f32 %v8233_v27, %v1261_v48  ;;  %v1422_v8 = vadd.f32 %v8234_v41, %v1262_v50  ;;  %v2402_v20 = vmul.f32 %v6832_v14, %v8235_v24  ;;  %4054 = vmatmul.msk.f32.gmra.mxu3 %vm744_vm1, %v8236_v30  ;;  %v8239_v60 = vld [vmem:[#allocation53_spill] sm:$0xff]  ;;  %v7037_v41 = vpop.f32.mrf.mxu0 }
 0x26f   :  { %v7032_v18 = vadd.f32 %v2599_v22, %v8237_v40  ;;  %v2600_v27 = vmul.f32 %v4193_v54, %v8239_v60  ;;  %v7035_v48 = vand.u32 2147483647, %v676_v55  ;;  %v2201_v28 = vadd.f32 1.0, %v2161_v51  ;;  %8241 = vst [vmem:[#allocation93_spill] sm:$0xff] %v7037_v41  ;;  %v8244_v40 = vld [vmem:[#allocation18_spill] sm:$0xff] }
 0x270   :  { %v1302_v14 = vadd.f32 1.0, %v1262_v50  ;;  %v2129_v52 = vmul.f32 1.4285715, %v6950_v46  ;;  %v2481_v1 = vsub.f32 0.0, %v2441_v43  ;;  %v2442_v35 = vadd.f32 %v2402_v20, %v2162_v26  ;;  %v7049_v20 = vpop.f32.mrf.mxu1 }
 0x271   :  { %8238 = vst [vmem:[#allocation11_spill] sm:$0xff] %v7032_v18  ;;  %4194 = vpow2.f32 %v1549_v62  ;;  %v2130_v24 = vmul.f32 1.4285715, %v6952_v25  ;;  %v7042_v30 = vadd.f32 %v2600_v27, %v8242_v6  ;;  %v2202_v22 = vadd.f32 1.0, %v2162_v26  ;;  %v8246_v27 = vld [vmem:[#allocation45_spill] sm:$0xff] }
 0x272   :  { %8240 = vst [vmem:[#allocation92_spill] sm:$0xff] %v7035_v48  ;;  %v7045_v18 = vmul.f32 %v1301_v23, %v8244_v40  ;;  %v1461_v55 = vsub.f32 0.0, %v1421_v17  ;;  %v2541_v54 = vmul.f32 1.442695, %v2481_v1  ;;  %v2482_v51 = vsub.f32 0.0, %v2442_v35  ;;  %v8247_v23 = vld [vmem:[#allocation19_spill] sm:$0xff] }
 0x273   :  { %8243 = vst [vmem:[#allocation123_spill] sm:$0xff] %v7042_v30  ;;  %4196 = vpow2.f32 %v1551_v12  ;;  %v1462_v60 = vsub.f32 0.0, %v1422_v8  ;;  %v1227_v50 = vmul.f32 2.0, %v7035_v48  ;;  %v2321_v43 = vadd.f32 %v6606_v21, %v2201_v28  ;;  %v8249_v8 = vld [vmem:[#allocation85_spill] sm:$0xff] }
 0x274   :  { %8245 = vst [vmem:[#allocation50_spill] sm:$0xff] %v7049_v20  ;;  %4198 = vpow2.f32 %v2541_v54  ;;  %v2543_v62 = vmul.f32 1.442695, %v2482_v51  ;;  %v2163_v6 = vmul.f32 2.236068, %v6902_v44  ;;  %v2403_v26 = vmul.f32 %v6881_v47, %v8246_v27  ;;  %v7065_v44 = vpop.f32.mrf.mxu3  ;;  %v8250_v47 = vld [vmem:[#allocation115_spill] sm:$0xff] }
 0x275   :  { %v7055_v40 = vmul.f32 %v1302_v14, %v8247_v23  ;;  %v7057_v17 = vand.u32 2147483647, %v677_v39  ;;  %v2322_v12 = vadd.f32 %v6608_v13, %v2202_v22  ;;  %v2404_v1 = vmul.f32 %v6883_v16, %v8249_v8  ;;  %v7063_v54 = vpop.f32.mrf.mxu2  ;;  %4035 = vmatmul.msk.f32.gmra.mxu2 %vm744_vm1, %v8250_v47  ;;  %v8251_v16 = vld [vmem:[#allocation30_spill] sm:$0xff] }
 0x276   :  { %v2249_v21 = vmul.f32 %v2129_v52, %v2129_v52  ;;  %4200 = vpow2.f32 %v2543_v62  ;;  %v2443_v28 = vadd.f32 %v2403_v26, %v2163_v6  ;;  %v2164_v35 = vmul.f32 2.236068, %v6910_v33  ;;  %4055 = vmatmul.msk.f32.gmra.mxu3 %vm744_vm1, %v8250_v47  ;;  %v8252_v8 = vld [vmem:[#allocation98_spill] sm:$0xff]  ;;  %v7080_v20 = vpop.f32.mrf.mxu0 }
 0x277   :  { %8248 = vst [vmem:[#allocation51_spill] sm:$0xff] %v7057_v17  ;;  %v4195_v39 = vpop.eup %4194  ;;  %v1529_v13 = vmul.f32 1.442695, %v1461_v55  ;;  %v7071_v14 = vmul.f32 1.7320508, %v1227_v50  ;;  %v2361_v22 = vmul.f32 %v2321_v43, %v8251_v16  ;;  %v2203_v51 = vadd.f32 1.0, %v2163_v6 }
 0x278   :  { %v1531_v62 = vmul.f32 1.442695, %v1462_v60  ;;  %v7074_v26 = vmul.f32 2.236068, %v2129_v52  ;;  %v2250_v33 = vmul.f32 %v2130_v24, %v2130_v24  ;;  %v2483_v23 = vsub.f32 0.0, %v2443_v28  ;;  %8253 = vst [vmem:[#allocation107_spill] sm:$0xff] %v7080_v20 }
 0x279   :  { %v4197_v25 = vpop.eup %4196  ;;  %v7076_v46 = vmul.f32 2.236068, %v2130_v24  ;;  %v1228_v30 = vmul.f32 2.0, %v7057_v17  ;;  %v2362_v27 = vmul.f32 %v2322_v12, %v8252_v8  ;;  %v2444_v47 = vadd.f32 %v2404_v1, %v2164_v35  ;;  %v8254_v52 = vld [vmem:[#allocation80_spill] sm:$0xff]  ;;  %v8255_v8 = vld [vmem:[#allocation49_spill] sm:$0xff] }
 0x27a   :  { %v4199_v55 = vpop.eup %4198  ;;  %v2209_v50 = vadd.f32 1.0, %v7074_v26  ;;  %v2289_v43 = vmul.f32 1.6666666, %v2249_v21  ;;  %v2545_v6 = vmul.f32 1.442695, %v2483_v23  ;;  %v2204_v60 = vadd.f32 1.0, %v2164_v35 }
 0x27b   :  { %v1427_v16 = vadd.f32 %v8254_v52, %v7071_v14  ;;  %v2601_v28 = vmul.f32 %v4199_v55, %v2361_v22  ;;  %v2323_v24 = vadd.f32 %v6984_v63, %v2203_v51  ;;  %v2484_v41 = vsub.f32 0.0, %v2444_v47  ;;  %v7094_v52 = vpop.f32.mrf.mxu1  ;;  %v8256_v51 = vld [vmem:[#allocation52_spill] sm:$0xff]  ;;  %v8258_v55 = vld [vmem:[#allocation65_spill] sm:$0xff] }
 0x27c   :  { %v4201_v2 = vpop.eup %4200  ;;  %v2210_v53 = vadd.f32 1.0, %v7076_v46  ;;  %v2290_v12 = vmul.f32 1.6666666, %v2250_v33  ;;  %4202 = vpow2.f32 %v2545_v6  ;;  %v2405_v1 = vmul.f32 %v6932_v58, %v8255_v8  ;;  %v7102_v58 = vpop.f32.mrf.mxu3 }
 0x27d   :  { %v7089_v20 = vmul.f32 1.7320508, %v1228_v30  ;;  %v7092_v21 = vadd.f32 %v2601_v28, %v6661_v36  ;;  %v2602_v35 = vmul.f32 %v4201_v2, %v2362_v27  ;;  %v2547_v23 = vmul.f32 1.442695, %v2484_v41  ;;  %v7100_v47 = vpop.f32.mrf.mxu2  ;;  %v8257_v2 = vld [vmem:[#allocation129_spill] sm:$0xff] }
 0x27e   :  { %4204 = vpow2.f32 %v1529_v13  ;;  %v2324_v63 = vadd.f32 %v6986_v49, %v2204_v60  ;;  %v2445_v22 = vadd.f32 %v2405_v1, %v6821_v3  ;;  %v2406_v33 = vmul.f32 %v6934_v56, %v8256_v51  ;;  %v8259_v60 = vld [vmem:[#allocation142_spill] sm:$0xff] }
 0x27f   :  { %v1467_v30 = vsub.f32 0.0, %v1427_v16  ;;  %v7105_v36 = vadd.f32 %v2602_v35, %v6674_v34  ;;  %v2363_v41 = vmul.f32 %v2323_v24, %v8257_v2  ;;  %4206 = vpow2.f32 %v2547_v23  ;;  %v8260_v24 = vld [vmem:[#allocation73_spill] sm:$0xff]  ;;  %v8261_v23 = vld [vmem:[#allocation143_spill] sm:$0xff] }
 0x280   :  { %4208 = vpow2.f32 %v1531_v62  ;;  %v2329_v27 = vadd.f32 %v2289_v43, %v2209_v50  ;;  %v2485_v13 = vsub.f32 0.0, %v2445_v22  ;;  %v2446_v49 = vadd.f32 %v2406_v33, %v6841_v38 }
 0x281   :  { %v7110_v3 = vmul.f32 %v4195_v39, %v7011_v31  ;;  %v2330_v56 = vadd.f32 %v2290_v12, %v2210_v53  ;;  %v1428_v6 = vadd.f32 %v8258_v55, %v7089_v20  ;;  %v2407_v16 = vmul.f32 %v6972_v0, %v8259_v60  ;;  %v7124_v12 = vpop.f32.mrf.mxu0  ;;  %v8263_v55 = vld [vmem:[#allocation7_spill] sm:$0xff] }
 0x282   :  { %v4203_v34 = vpop.eup %4202  ;;  %v7117_v28 = vmul.f32 1.4285715, %v7035_v48  ;;  %v2364_v62 = vmul.f32 %v2324_v63, %v8260_v24  ;;  %v2549_v50 = vmul.f32 1.442695, %v2485_v13  ;;  %v2486_v43 = vsub.f32 0.0, %v2446_v49  ;;  %v8262_v13 = vld [vmem:[#allocation26_spill] sm:$0xff] }
 0x283   :  { %v7121_v38 = vmul.f32 %v4197_v25, %v7014_v11  ;;  %v1541_v31 = vmul.f32 1.442695, %v1467_v30  ;;  %v2603_v39 = vmul.f32 %v4203_v34, %v2363_v41  ;;  %v2447_v53 = vadd.f32 %v2407_v16, %v6917_v32  ;;  %v7154_v34 = vpop.f32.mrf.mxu1 }
 0x284   :  { %v4205_v1 = vpop.eup %4204  ;;  %v7127_v0 = vmul.f32 %v2329_v27, %v6782_v45  ;;  %4210 = vpow2.f32 %v2549_v50  ;;  %v2551_v35 = vmul.f32 1.442695, %v2486_v43  ;;  %v2408_v63 = vmul.f32 %v6974_v61, %v8261_v23  ;;  %v7143_v61 = vpop.f32.mrf.mxu3  ;;  %v8265_v50 = vld [vmem:[#allocation147_spill] sm:$0xff] }
 0x285   :  { %v4207_v22 = vpop.eup %4206  ;;  %v7132_v33 = vmul.f32 %v2330_v56, %v6784_v59  ;;  %v1468_v25 = vsub.f32 0.0, %v1428_v6  ;;  %v7135_v11 = vadd.f32 %v2603_v39, %v6988_v15  ;;  %v2487_v32 = vsub.f32 0.0, %v2447_v53  ;;  %v7141_v27 = vpop.f32.mrf.mxu2 }
 0x286   :  { %v4209_v30 = vpop.eup %4208  ;;  %v7138_v2 = vmul.f32 1.4285715, %v7057_v17  ;;  %v2604_v45 = vmul.f32 %v4207_v22, %v2364_v62  ;;  %4212 = vpow2.f32 %v2551_v35  ;;  %v2448_v41 = vadd.f32 %v2408_v63, %v6928_v7  ;;  %v8264_v62 = vld [vmem:[#allocation61_spill] sm:$0xff] }
 0x287   :  { %v1307_v59 = vadd.f32 1.0, %v7071_v14  ;;  %4214 = vpow2.f32 %v1541_v31  ;;  %v2251_v15 = vmul.f32 %v8262_v13, %v8262_v13  ;;  %v2553_v49 = vmul.f32 1.442695, %v2487_v32 }
 0x288   :  { %v2171_v56 = vmul.f32 2.236068, %v8262_v13  ;;  %v2252_v6 = vmul.f32 %v8263_v55, %v8263_v55  ;;  %v7152_v16 = vadd.f32 %v2604_v45, %v6990_v19  ;;  %v2488_v7 = vsub.f32 0.0, %v2448_v41 }
 0x289   :  { %v1543_v24 = vmul.f32 1.442695, %v1468_v25  ;;  %4216 = vpow2.f32 %v2553_v49  ;;  %v2409_v14 = vmul.f32 %v7023_v29, %v8264_v62  ;;  %v2410_v43 = vmul.f32 %v7025_v37, %v8265_v50  ;;  %v8266_v49 = vld [vmem:[#allocation125_spill] sm:$0xff] }
 0x28a   :  { %v4211_v31 = vpop.eup %4210  ;;  %v1308_v39 = vadd.f32 1.0, %v7089_v20  ;;  %v2211_v53 = vadd.f32 1.0, %v2171_v56  ;;  %v2172_v35 = vmul.f32 2.236068, %v8263_v55  ;;  %v2555_v63 = vmul.f32 1.442695, %v2488_v7 }
 0x28b   :  { %v2291_v19 = vmul.f32 1.6666666, %v2251_v15  ;;  %v2605_v22 = vmul.f32 %v4211_v31, %v6892_v10  ;;  %v2449_v32 = vadd.f32 %v2409_v14, %v7074_v26  ;;  %v2450_v25 = vadd.f32 %v2410_v43, %v7076_v46  ;;  %v7175_v26 = vpop.f32.mrf.mxu0  ;;  %v8267_v46 = vld [vmem:[#allocation38_spill] sm:$0xff]  ;;  %v8268_v14 = vld [vmem:[#allocation39_spill] sm:$0xff] }
 0x28c   :  { %v4213_v45 = vpop.eup %4212  ;;  %v7166_v29 = vmul.f32 %v4205_v1, %v7045_v18  ;;  %v2212_v41 = vadd.f32 1.0, %v2172_v35  ;;  %v2292_v37 = vmul.f32 1.6666666, %v2252_v6  ;;  %4218 = vpow2.f32 %v2555_v63 }
 0x28d   :  { %v4215_v13 = vpop.eup %4214  ;;  %v7169_v20 = vmul.f32 %v4209_v30, %v7055_v40  ;;  %v7172_v55 = vadd.f32 %v2605_v22, %v8266_v49  ;;  %v2606_v10 = vmul.f32 %v4213_v45, %v6948_v4  ;;  %v2489_v15 = vsub.f32 0.0, %v2449_v32  ;;  %v7181_v6 = vpop.f32.mrf.mxu2  ;;  %v8269_v30 = vld [vmem:[#allocation13_spill] sm:$0xff]  ;;  %v8271_v22 = vld [vmem:[#allocation40_spill] sm:$0xff] }
 0x28e   :  { %v1347_v7 = vmul.f32 %v1307_v59, %v8267_v46  ;;  %v7179_v18 = vmul.f32 %v1308_v39, %v8268_v14  ;;  %4220 = vpow2.f32 %v1543_v24  ;;  %v2490_v1 = vsub.f32 0.0, %v2450_v25  ;;  %v7188_v32 = vpop.f32.mrf.mxu3  ;;  %v8272_v59 = vld [vmem:[#allocation42_spill] sm:$0xff] }
 0x28f   :  { %v4217_v43 = vpop.eup %4216  ;;  %v2331_v40 = vadd.f32 %v2291_v19, %v2211_v53  ;;  %v7184_v31 = vadd.f32 %v2606_v10, %v8269_v30  ;;  %v2557_v63 = vmul.f32 1.442695, %v2489_v15  ;;  %v2411_v4 = vmul.f32 %v7063_v54, %v8271_v22  ;;  %v8273_v19 = vld [vmem:[#allocation132_spill] sm:$0xff]  ;;  %v8274_v54 = vld [vmem:[#allocation122_spill] sm:$0xff]  ;;  %v7203_v30 = vpop.f32.mrf.mxu1 }
 0x290   :  { %v2332_v45 = vadd.f32 %v2292_v37, %v2212_v41  ;;  %v2253_v39 = vmul.f32 %v8272_v59, %v8272_v59  ;;  %v2607_v24 = vmul.f32 %v4217_v43, %v6993_v5  ;;  %v2559_v25 = vmul.f32 1.442695, %v2490_v1  ;;  %v8275_v41 = vld [vmem:[#allocation17_spill] sm:$0xff]  ;;  %v8277_v5 = vld [vmem:[#allocation16_spill] sm:$0xff] }
 0x291   :  { %8270 = vst [vmem:[#allocation148_spill] sm:$0xff] %v7184_v31  ;;  %v2173_v49 = vmul.f32 2.236068, %v8272_v59  ;;  %4222 = vpow2.f32 %v2557_v63  ;;  %v2451_v53 = vadd.f32 %v2411_v4, %v2171_v56  ;;  %v2412_v10 = vmul.f32 %v7065_v44, %v8273_v19  ;;  %v8278_v44 = vld [vmem:[#allocation96_spill] sm:$0xff]  ;;  %v8283_v31 = vld [vmem:[#allocation155_spill] sm:$0xff] }
 0x292   :  { %v4219_v15 = vpop.eup %4218  ;;  %v7196_v46 = vmul.f32 %v4215_v13, %v1347_v7  ;;  %v2254_v14 = vmul.f32 %v8274_v54, %v8274_v54  ;;  %v7201_v37 = vadd.f32 %v2607_v24, %v8275_v41  ;;  %4224 = vpow2.f32 %v2559_v25  ;;  %v8279_v25 = vld [vmem:[#allocation44_spill] sm:$0xff] }
 0x293   :  { %v2371_v1 = vmul.f32 %v2331_v40, %v8277_v5  ;;  %v2608_v43 = vmul.f32 %v4219_v15, %v6998_v57  ;;  %v2491_v56 = vsub.f32 0.0, %v2451_v53  ;;  %v2452_v63 = vadd.f32 %v2412_v10, %v2172_v35  ;;  %v8281_v53 = vld [vmem:[#allocation63_spill] sm:$0xff] }
 0x294   :  { %8276 = vst [vmem:[#allocation151_spill] sm:$0xff] %v7201_v37  ;;  %v7207_v4 = vpop.eup %4220  ;;  %v2372_v13 = vmul.f32 %v2332_v45, %v8278_v44  ;;  %v2213_v7 = vadd.f32 1.0, %v2173_v49  ;;  %v2293_v59 = vmul.f32 1.6666666, %v2253_v39  ;;  %v2174_v17 = vmul.f32 2.236068, %v8274_v54 }
 0x295   :  { %v2255_v24 = vmul.f32 %v7117_v28, %v7117_v28  ;;  %v7214_v41 = vadd.f32 %v2608_v43, %v8279_v25  ;;  %v2561_v48 = vmul.f32 1.442695, %v2491_v56  ;;  %v2492_v40 = vsub.f32 0.0, %v2452_v63  ;;  %v7219_v45 = vpop.f32.mrf.mxu2  ;;  %v8282_v44 = vld [vmem:[#allocation64_spill] sm:$0xff]  ;;  %v7225_v56 = vpop.f32.mrf.mxu0 }
 0x296   :  { %v2214_v5 = vadd.f32 1.0, %v2174_v17  ;;  %v2294_v57 = vmul.f32 1.6666666, %v2254_v14  ;;  %v2175_v35 = vmul.f32 2.236068, %v7117_v28  ;;  %v2413_v10 = vmul.f32 %v7100_v47, %v8281_v53  ;;  %v7230_v37 = vpop.f32.mrf.mxu3 }
 0x297   :  { %8280 = vst [vmem:[#allocation48_spill] sm:$0xff] %v7214_v41  ;;  %v4223_v39 = vpop.eup %4222  ;;  %v2256_v15 = vmul.f32 %v7138_v2, %v7138_v2  ;;  %4226 = vpow2.f32 %v2561_v48  ;;  %v2563_v54 = vmul.f32 1.442695, %v2492_v40  ;;  %v2414_v43 = vmul.f32 %v7102_v58, %v8282_v44 }
 0x298   :  { %v4225_v63 = vpop.eup %4224  ;;  %v2215_v14 = vadd.f32 1.0, %v2175_v35  ;;  %v2176_v28 = vmul.f32 2.236068, %v7138_v2  ;;  %v2609_v25 = vmul.f32 %v4223_v39, %v7127_v0  ;;  %v2453_v47 = vadd.f32 %v2413_v10, %v2173_v49 }
 0x299   :  { %v2295_v53 = vmul.f32 1.6666666, %v2255_v24  ;;  %v2610_v41 = vmul.f32 %v4225_v63, %v7132_v33  ;;  %4228 = vpow2.f32 %v2563_v54  ;;  %v2454_v19 = vadd.f32 %v2414_v43, %v2174_v17  ;;  %v8285_v17 = vld [vmem:[#allocation75_spill] sm:$0xff]  ;;  %v8287_v43 = vld [vmem:[#allocation76_spill] sm:$0xff] }
 0x29a   :  { %v2333_v48 = vadd.f32 %v2293_v59, %v2213_v7  ;;  %v2216_v40 = vadd.f32 1.0, %v2176_v28  ;;  %v7233_v58 = vadd.f32 %v2609_v25, %v7166_v29  ;;  %v2493_v44 = vsub.f32 0.0, %v2453_v47  ;;  %v8286_v7 = vld [vmem:[#allocation79_spill] sm:$0xff]  ;;  %v7245_v29 = vpop.f32.mrf.mxu1 }
 0x29b   :  { %v2296_v22 = vmul.f32 1.6666666, %v2256_v15  ;;  %v2257_v2 = vmul.f32 %v8283_v31, %v8283_v31  ;;  %v7238_v0 = vadd.f32 %v2610_v41, %v7169_v20  ;;  %v2494_v49 = vsub.f32 0.0, %v2454_v19 }
 0x29c   :  { %v2177_v33 = vmul.f32 2.236068, %v8283_v31  ;;  %v2565_v24 = vmul.f32 1.442695, %v2493_v44  ;;  %v2415_v10 = vmul.f32 %v7141_v27, %v8285_v17  ;;  %v2416_v59 = vmul.f32 %v7143_v61, %v8286_v7  ;;  %v8288_v17 = vld [vmem:[#allocation116_spill] sm:$0xff] }
 0x29d   :  { %8284 = vst [vmem:[#allocation5_spill] sm:$0xff] %v7238_v0  ;;  %v4227_v39 = vpop.eup %4226  ;;  %v2334_v15 = vadd.f32 %v2294_v57, %v2214_v5  ;;  %v2335_v54 = vadd.f32 %v2295_v53, %v2215_v14  ;;  %v2258_v63 = vmul.f32 %v8287_v43, %v8287_v43  ;;  %v2567_v20 = vmul.f32 1.442695, %v2494_v49  ;;  %v7249_v44 = vpop.f32.mrf.mxu2  ;;  %v8289_v14 = vld [vmem:[#allocation46_spill] sm:$0xff] }
 0x29e   :  { %v2217_v41 = vadd.f32 1.0, %v2177_v33  ;;  %v2611_v19 = vmul.f32 %v4227_v39, %v2371_v1  ;;  %4230 = vpow2.f32 %v2565_v24  ;;  %v2455_v31 = vadd.f32 %v2415_v10, %v2175_v35  ;;  %v7256_v35 = vpop.f32.mrf.mxu0  ;;  %v8290_v10 = vld [vmem:[#allocation14_spill] sm:$0xff] }
 0x29f   :  { %v4229_v25 = vpop.eup %4228  ;;  %v2297_v27 = vmul.f32 1.6666666, %v2257_v2  ;;  %v2178_v47 = vmul.f32 2.236068, %v8287_v43  ;;  %4232 = vpow2.f32 %v2567_v20  ;;  %v2456_v61 = vadd.f32 %v2416_v59, %v2176_v28  ;;  %v8291_v43 = vld [vmem:[#allocation154_spill] sm:$0xff] }
 0x2a0   :  { %v2336_v7 = vadd.f32 %v2296_v22, %v2216_v40  ;;  %v7253_v5 = vadd.f32 %v2611_v19, %v8288_v17  ;;  %v2612_v57 = vmul.f32 %v4229_v25, %v2372_v13  ;;  %v2495_v53 = vsub.f32 0.0, %v2455_v31 }
 0x2a1   :  { %v2373_v49 = vmul.f32 %v2333_v48, %v8289_v14  ;;  %v2218_v0 = vadd.f32 1.0, %v2178_v47  ;;  %v2298_v1 = vmul.f32 1.6666666, %v2258_v63  ;;  %v2496_v24 = vsub.f32 0.0, %v2456_v61  ;;  %v8293_v48 = vld [vmem:[#allocation135_spill] sm:$0xff]  ;;  %v7268_v63 = vpop.f32.mrf.mxu3 }
 0x2a2   :  { %v1588_v2 = vmul.f32 %v7207_v4, %v7179_v18  ;;  %v2374_v39 = vmul.f32 %v2334_v15, %v8290_v10  ;;  %v7262_v28 = vadd.f32 %v2612_v57, %v8291_v43  ;;  %v2569_v22 = vmul.f32 1.442695, %v2495_v53  ;;  %v8294_v18 = vld [vmem:[#allocation33_spill] sm:$0xff]  ;;  %v8295_v15 = vld [vmem:[#allocation136_spill] sm:$0xff]  ;;  %v7277_v10 = vpop.f32.mrf.mxu1 }
 0x2a3   :  { %v2337_v40 = vadd.f32 %v2297_v27, %v2217_v41  ;;  %v2259_v13 = vmul.f32 %v7001_v42, %v7001_v42  ;;  %v2571_v17 = vmul.f32 1.442695, %v2496_v24  ;;  %v2417_v59 = vmul.f32 %v7181_v6, %v8293_v48  ;;  %v8296_v57 = vld [vmem:[#allocation9_spill] sm:$0xff] }
 0x2a4   :  { %8292 = vst [vmem:[#allocation53_spill] sm:$0xff] %v7262_v28  ;;  %v4231_v20 = vpop.eup %4230  ;;  %v2375_v19 = vmul.f32 %v2335_v54, %v6968_v9  ;;  %v2376_v4 = vmul.f32 %v2336_v7, %v8294_v18  ;;  %4234 = vpow2.f32 %v2569_v22  ;;  %v2418_v31 = vmul.f32 %v7188_v32, %v8295_v15  ;;  %v8297_v7 = vld [vmem:[#allocation93_spill] sm:$0xff]  ;;  %v8303_v18 = vld [vmem:[#allocation70_spill] sm:$0xff] }
 0x2a5   :  { %v4233_v25 = vpop.eup %4232  ;;  %v2338_v41 = vadd.f32 %v2298_v1, %v2218_v0  ;;  %v2179_v27 = vmul.f32 2.236068, %v7001_v42  ;;  %v2613_v61 = vmul.f32 %v4231_v20, %v2373_v49  ;;  %4236 = vpow2.f32 %v2571_v17  ;;  %v7279_v9 = vpop.f32.mrf.mxu2  ;;  %v8298_v0 = vld [vmem:[#allocation104_spill] sm:$0xff] }
 0x2a6   :  { %v2260_v6 = vmul.f32 %v8296_v57, %v8296_v57  ;;  %v2614_v53 = vmul.f32 %v4233_v25, %v2374_v39  ;;  %v2457_v14 = vadd.f32 %v2417_v59, %v2177_v33  ;;  %v2458_v24 = vadd.f32 %v2418_v31, %v2178_v47  ;;  %v8300_v49 = vld [vmem:[#allocation32_spill] sm:$0xff]  ;;  %v7297_v15 = vpop.f32.mrf.mxu0 }
 0x2a7   :  { %v2377_v54 = vmul.f32 %v2337_v40, %v8297_v7  ;;  %v2299_v43 = vmul.f32 1.6666666, %v2259_v13  ;;  %v2180_v32 = vmul.f32 2.236068, %v8296_v57  ;;  %v7284_v1 = vadd.f32 %v2613_v61, %v8298_v0  ;;  %v8302_v47 = vld [vmem:[#allocation112_spill] sm:$0xff]  ;;  %v8304_v57 = vld [vmem:[#allocation91_spill] sm:$0xff] }
 0x2a8   :  { %v2219_v42 = vadd.f32 1.0, %v2179_v27  ;;  %v7287_v22 = vadd.f32 %v2614_v53, %v8300_v49  ;;  %v2497_v17 = vsub.f32 0.0, %v2457_v14  ;;  %v2498_v39 = vsub.f32 0.0, %v2458_v24  ;;  %v8305_v14 = vld [vmem:[#allocation6_spill] sm:$0xff] }
 0x2a9   :  { %8299 = vst [vmem:[#allocation138_spill] sm:$0xff] %v7284_v1  ;;  %v2220_v33 = vadd.f32 1.0, %v2180_v32  ;;  %v3169_v59 = vmul.f32 2.236068, %v8302_v47  ;;  %v3249_v20 = vmul.f32 %v8302_v47, %v8302_v47  ;;  %v2419_v40 = vmul.f32 %v7219_v45, %v8303_v18  ;;  %v3072_v1 = vpop.f32.mrf.mxu3 }
 0x2aa   :  { %8301 = vst [vmem:[#allocation18_spill] sm:$0xff] %v7287_v22  ;;  %v4235_v13 = vpop.eup %4234  ;;  %v2300_v31 = vmul.f32 1.6666666, %v2260_v6  ;;  %v2573_v25 = vmul.f32 1.442695, %v2497_v17  ;;  %v2420_v7 = vmul.f32 %v7230_v37, %v8304_v57  ;;  %v3250_v47 = vmul.f32 %v8305_v14, %v8305_v14  ;;  %v8307_v57 = vld [vmem:[#allocation50_spill] sm:$0xff] }
 0x2ab   :  { %v2575_v61 = vmul.f32 1.442695, %v2498_v39  ;;  %v4237_v53 = vpop.eup %4236  ;;  %v3209_v0 = vadd.f32 1.0, %v3169_v59  ;;  %v3170_v24 = vmul.f32 2.236068, %v8305_v14  ;;  %v2615_v49 = vmul.f32 %v4235_v13, %v2375_v19  ;;  %v8309_v14 = vld [vmem:[#allocation88_spill] sm:$0xff] }
 0x2ac   :  { %v2459_v22 = vadd.f32 %v2419_v40, %v2179_v27  ;;  %v2616_v45 = vmul.f32 %v4237_v53, %v2376_v4  ;;  %4238 = vpow2.f32 %v2573_v25  ;;  %v2460_v6 = vadd.f32 %v2420_v7, %v2180_v32  ;;  %v7311_v25 = vpop.f32.mrf.mxu1 }
 0x2ad   :  { %v3289_v17 = vmul.f32 1.6666666, %v3249_v20  ;;  %v7302_v39 = vadd.f32 %v2615_v49, %v7196_v46  ;;  %4240 = vpow2.f32 %v2575_v61  ;;  %v2378_v18 = vmul.f32 %v2338_v41, %v8307_v57  ;;  %v7307_v40 = vpop.f32.mrf.mxu2  ;;  %v8310_v46 = vld [vmem:[#allocation105_spill] sm:$0xff]  ;;  %v8312_v41 = vld [vmem:[#allocation55_spill] sm:$0xff] }
 0x2ae   :  { %v2499_v37 = vsub.f32 0.0, %v2459_v22  ;;  %v2339_v48 = vadd.f32 %v2299_v43, %v2219_v42  ;;  %v7305_v19 = vadd.f32 %v2616_v45, %v1588_v2  ;;  %v2500_v27 = vsub.f32 0.0, %v2460_v6  ;;  %v8311_v61 = vld [vmem:[#allocation29_spill] sm:$0xff]  ;;  %v8313_v43 = vld [vmem:[#allocation35_spill] sm:$0xff] }
 0x2af   :  { %8306 = vst [vmem:[#allocation19_spill] sm:$0xff] %v7302_v39  ;;  %v2340_v13 = vadd.f32 %v2300_v31, %v2220_v33  ;;  %v3210_v28 = vadd.f32 1.0, %v3170_v24  ;;  %v3251_v4 = vmul.f32 %v8309_v14, %v8309_v14  ;;  %v7315_v22 = vadd.f32 %v8311_v61, %v8310_v46  ;;  %v8314_v42 = vld [vmem:[#allocation97_spill] sm:$0xff]  ;;  %v8315_v49 = vld [vmem:[#allocation107_spill] sm:$0xff] }
 0x2b0   :  { %8308 = vst [vmem:[#allocation115_spill] sm:$0xff] %v7305_v19  ;;  %v2577_v32 = vmul.f32 1.442695, %v2499_v37  ;;  %v2579_v20 = vmul.f32 1.442695, %v2500_v27  ;;  %v3409_v2 = vmul.f32 %v7249_v44, %v8312_v41  ;;  %v7321_v57 = vadd.f32 %v8314_v42, %v8313_v43  ;;  %v8316_v37 = vld [vmem:[#allocation56_spill] sm:$0xff] }
 0x2b1   :  { %v3329_v33 = vadd.f32 %v3289_v17, %v3209_v0  ;;  %v3290_v31 = vmul.f32 1.6666666, %v3250_v47  ;;  %v3171_v7 = vmul.f32 2.236068, %v8309_v14  ;;  %v2379_v45 = vmul.f32 %v2339_v48, %v8315_v49  ;;  %v8317_v44 = vld [vmem:[#allocation146_spill] sm:$0xff]  ;;  %v3075_v47 = vpop.f32.mrf.mxu3  ;;  %v7335_v49 = vpop.f32.mrf.mxu0 }
 0x2b2   :  { %4242 = vpow2.f32 %v2577_v32  ;;  %v4239_v53 = vpop.eup %4238  ;;  %v3449_v6 = vadd.f32 %v3409_v2, %v3169_v59  ;;  %v3410_v27 = vmul.f32 %v7268_v63, %v8316_v37  ;;  %v3172_v41 = vmul.f32 2.236068, %v8317_v44  ;;  %v8318_v2 = vld [vmem:[#allocation109_spill] sm:$0xff]  ;;  %v8320_v19 = vld [vmem:[#allocation90_spill] sm:$0xff] }
 0x2b3   :  { %4244 = vpow2.f32 %v2579_v20  ;;  %v4241_v46 = vpop.eup %4240  ;;  %v3211_v61 = vadd.f32 1.0, %v3171_v7  ;;  %v3252_v43 = vmul.f32 %v8317_v44, %v8317_v44  ;;  %v2617_v0 = vmul.f32 %v4239_v53, %v2377_v54 }
 0x2b4   :  { %v3291_v17 = vmul.f32 1.6666666, %v3251_v4  ;;  %v2618_v14 = vmul.f32 %v4241_v46, %v2378_v18  ;;  %v3489_v32 = vsub.f32 0.0, %v3449_v6  ;;  %v3450_v42 = vadd.f32 %v3410_v27, %v3170_v24  ;;  %v8322_v6 = vld [vmem:[#allocation89_spill] sm:$0xff] }
 0x2b5   :  { %v2380_v48 = vmul.f32 %v2340_v13, %v7094_v52  ;;  %v3369_v59 = vmul.f32 %v3329_v33, %v7124_v12  ;;  %v3330_v20 = vadd.f32 %v3290_v31, %v3210_v28  ;;  %v7333_v63 = vadd.f32 %v2617_v0, %v8318_v2  ;;  %v7340_v4 = vpop.f32.mrf.mxu2  ;;  %v8323_v12 = vld [vmem:[#allocation59_spill] sm:$0xff]  ;;  %v8324_v13 = vld [vmem:[#allocation60_spill] sm:$0xff] }
 0x2b6   :  { %v3212_v37 = vadd.f32 1.0, %v3172_v41  ;;  %v7338_v39 = vadd.f32 %v2618_v14, %v8320_v19  ;;  %v3529_v54 = vmul.f32 1.442695, %v3489_v32  ;;  %v3490_v53 = vsub.f32 0.0, %v3450_v42 }
 0x2b7   :  { %8319 = vst [vmem:[#allocation30_spill] sm:$0xff] %v7333_v63  ;;  %v3292_v24 = vmul.f32 1.6666666, %v3252_v43  ;;  %v3253_v52 = vmul.f32 %v8322_v6, %v8322_v6  ;;  %v3411_v28 = vmul.f32 %v7279_v9, %v8323_v12  ;;  %v3412_v33 = vmul.f32 %v3072_v1, %v8324_v13  ;;  %v8325_v43 = vld [vmem:[#allocation10_spill] sm:$0xff]  ;;  %v7354_v9 = vpop.f32.mrf.mxu1 }
 0x2b8   :  { %8321 = vst [vmem:[#allocation98_spill] sm:$0xff] %v7338_v39  ;;  %v4243_v18 = vpop.eup %4242  ;;  %v3331_v27 = vadd.f32 %v3291_v17, %v3211_v61  ;;  %4246 = vpow2.f32 %v3529_v54  ;;  %v3531_v19 = vmul.f32 1.442695, %v3490_v53  ;;  %v3370_v44 = vmul.f32 %v3330_v20, %v7154_v34 }
 0x2b9   :  { %v4245_v31 = vpop.eup %4244  ;;  %v2619_v46 = vmul.f32 %v4243_v18, %v2379_v45  ;;  %v3173_v0 = vmul.f32 2.236068, %v8322_v6  ;;  %v3451_v32 = vadd.f32 %v3411_v28, %v3171_v7  ;;  %v3254_v42 = vmul.f32 %v8325_v43, %v8325_v43  ;;  %v3078_v20 = vpop.f32.mrf.mxu3  ;;  %v8329_v28 = vld [vmem:[#allocation103_spill] sm:$0xff] }
 0x2ba   :  { %v2620_v14 = vmul.f32 %v4245_v31, %v2380_v48  ;;  %4248 = vpow2.f32 %v3531_v19  ;;  %v3452_v1 = vadd.f32 %v3412_v33, %v3172_v41  ;;  %v3332_v61 = vadd.f32 %v3292_v24, %v3212_v37  ;;  %v8330_v41 = vld [vmem:[#allocation113_spill] sm:$0xff]  ;;  %v8331_v31 = vld [vmem:[#allocation66_spill] sm:$0xff] }
 0x2bb   :  { %v7352_v2 = vadd.f32 %v2619_v46, %v7110_v3  ;;  %v3174_v45 = vmul.f32 2.236068, %v8325_v43  ;;  %v3491_v34 = vsub.f32 0.0, %v3451_v32  ;;  %v3371_v7 = vmul.f32 %v3331_v27, %v7175_v26  ;;  %v8328_v3 = vld [vmem:[#allocation127_spill] sm:$0xff]  ;;  %v8333_v32 = vld [vmem:[#allocation37_spill] sm:$0xff]  ;;  %v8334_v43 = vld [vmem:[#allocation24_spill] sm:$0xff] }
 0x2bc   :  { %v7358_v17 = vadd.f32 %v2620_v14, %v7121_v38  ;;  %v3213_v48 = vadd.f32 1.0, %v3173_v0  ;;  %v3293_v54 = vmul.f32 1.6666666, %v3253_v52  ;;  %v3492_v53 = vsub.f32 0.0, %v3452_v1  ;;  %v8332_v52 = vld [vmem:[#allocation28_spill] sm:$0xff]  ;;  %v7374_v14 = vpop.f32.mrf.mxu0 }
 0x2bd   :  { %8326 = vst [vmem:[#allocation80_spill] sm:$0xff] %v7352_v2  ;;  %v3214_v18 = vadd.f32 1.0, %v3174_v45  ;;  %v3255_v6 = vmul.f32 %v8328_v3, %v8328_v3  ;;  %v3533_v12 = vmul.f32 1.442695, %v3491_v34  ;;  %v7365_v37 = vadd.f32 %v8330_v41, %v8329_v28  ;;  %v7370_v27 = vpop.f32.mrf.mxu2 }
 0x2be   :  { %8327 = vst [vmem:[#allocation49_spill] sm:$0xff] %v7358_v17  ;;  %v4247_v24 = vpop.eup %4246  ;;  %v3294_v13 = vmul.f32 1.6666666, %v3254_v42  ;;  %v3175_v38 = vmul.f32 2.236068, %v8328_v3  ;;  %v3413_v26 = vmul.f32 %v7307_v40, %v8331_v31  ;;  %v3256_v46 = vmul.f32 %v8332_v52, %v8332_v52  ;;  %v8335_v3 = vld [vmem:[#allocation67_spill] sm:$0xff] }
 0x2bf   :  { %v3535_v33 = vmul.f32 1.442695, %v3492_v53  ;;  %v3609_v19 = vmul.f32 %v4247_v24, %v3369_v59  ;;  %4250 = vpow2.f32 %v3533_v12  ;;  %v7378_v1 = vadd.f32 %v8334_v43, %v8333_v32 }
 0x2c0   :  { %v4249_v42 = vpop.eup %4248  ;;  %v3215_v34 = vadd.f32 1.0, %v3175_v38  ;;  %v3453_v53 = vadd.f32 %v3413_v26, %v3173_v0  ;;  %v3414_v28 = vmul.f32 %v3075_v47, %v8335_v3  ;;  %v3295_v40 = vmul.f32 1.6666666, %v3255_v6  ;;  %v8336_v26 = vld [vmem:[#allocation149_spill] sm:$0xff]  ;;  %v7387_v6 = vpop.f32.mrf.mxu1 }
 0x2c1   :  { %4252 = vpow2.f32 %v3535_v33  ;;  %v3176_v41 = vmul.f32 2.236068, %v8332_v52  ;;  %v3649_v31 = vadd.f32 %v3609_v19, %v7315_v22  ;;  %v3610_v17 = vmul.f32 %v4249_v42, %v3370_v44  ;;  %v3081_v0 = vpop.f32.mrf.mxu3  ;;  %v8337_v44 = vld [vmem:[#allocation152_spill] sm:$0xff]  ;;  %v8338_v19 = vld [vmem:[#allocation133_spill] sm:$0xff]  ;;  %v8342_v42 = vld [vmem:[#allocation150_spill] sm:$0xff] }
 0x2c2   :  { %v3372_v59 = vmul.f32 %v3332_v61, %v7203_v30  ;;  %v3333_v12 = vadd.f32 %v3293_v54, %v3213_v48  ;;  %v3493_v24 = vsub.f32 0.0, %v3453_v53  ;;  %v3454_v2 = vadd.f32 %v3414_v28, %v3174_v45  ;;  %v8339_v54 = vld [vmem:[#allocation71_spill] sm:$0xff] }
 0x2c3   :  { %v3334_v39 = vadd.f32 %v3294_v13, %v3214_v18  ;;  %v3216_v32 = vadd.f32 1.0, %v3176_v41  ;;  %v3296_v43 = vmul.f32 1.6666666, %v3256_v46  ;;  %3689 = vst [vmem:[#allocation2] sm:$0xff] %v3649_v31  ;;  %v3650_v33 = vadd.f32 %v3610_v17, %v7321_v57  ;;  %v8340_v17 = vld [vmem:[#allocation130_spill] sm:$0xff]  ;;  %v8341_v18 = vld [vmem:[#allocation8_spill] sm:$0xff] }
 0x2c4   :  { %v3257_v47 = vmul.f32 %v8336_v26, %v8336_v26  ;;  %v3537_v52 = vmul.f32 1.442695, %v3493_v24  ;;  %v3494_v22 = vsub.f32 0.0, %v3454_v2  ;;  %v7391_v30 = vadd.f32 %v8338_v19, %v8337_v44  ;;  %v8343_v24 = vld [vmem:[#allocation72_spill] sm:$0xff]  ;;  %v8344_v44 = vld [vmem:[#allocation77_spill] sm:$0xff]  ;;  %v7407_v63 = vpop.f32.mrf.mxu0 }
 0x2c5   :  { %v4251_v61 = vpop.eup %4250  ;;  %v3335_v45 = vadd.f32 %v3295_v40, %v3215_v34  ;;  %v3177_v48 = vmul.f32 2.236068, %v8336_v26  ;;  %3690 = vst [vmem:[#allocation2 + $0x8] sm:$0xff] %v3650_v33  ;;  %v3415_v57 = vmul.f32 %v7340_v4, %v8339_v54  ;;  %v7398_v13 = vadd.f32 %v8341_v18, %v8340_v17  ;;  %v3007_v28 = vpop.f32.mrf.mxu2  ;;  %v8345_v17 = vld [vmem:[#allocation62_spill] sm:$0xff] }
 0x2c6   :  { %v3258_v2 = vmul.f32 %v8342_v42, %v8342_v42  ;;  %v3611_v53 = vmul.f32 %v4251_v61, %v3371_v7  ;;  %4254 = vpow2.f32 %v3537_v52  ;;  %v3539_v3 = vmul.f32 1.442695, %v3494_v22 }
 0x2c7   :  { %v4253_v46 = vpop.eup %4252  ;;  %v3217_v31 = vadd.f32 1.0, %v3177_v48  ;;  %v3455_v40 = vadd.f32 %v3415_v57, %v3175_v38  ;;  %v3416_v33 = vmul.f32 %v3078_v20, %v8343_v24  ;;  %v3297_v26 = vmul.f32 1.6666666, %v3257_v47  ;;  %v8346_v57 = vld [vmem:[#allocation83_spill] sm:$0xff] }
 0x2c8   :  { %v3612_v34 = vmul.f32 %v4253_v46, %v3372_v59  ;;  %v3178_v4 = vmul.f32 2.236068, %v8342_v42  ;;  %v3651_v19 = vadd.f32 %v3611_v53, %v8344_v44  ;;  %4256 = vpow2.f32 %v3539_v3  ;;  %v8347_v42 = vld [vmem:[#allocation84_spill] sm:$0xff]  ;;  %v8348_v3 = vld [vmem:[#allocation145_spill] sm:$0xff] }
 0x2c9   :  { %v3373_v54 = vmul.f32 %v3333_v12, %v7225_v56  ;;  %v3495_v7 = vsub.f32 0.0, %v3455_v40  ;;  %v3456_v52 = vadd.f32 %v3416_v33, %v3176_v41  ;;  %v3374_v22 = vmul.f32 %v3334_v39, %v7245_v29  ;;  %v3084_v12 = vpop.f32.mrf.mxu3  ;;  %v8350_v39 = vld [vmem:[#allocation134_spill] sm:$0xff] }
 0x2ca   :  { %v3652_v18 = vadd.f32 %v3612_v34, %v8345_v17  ;;  %v3336_v59 = vadd.f32 %v3296_v43, %v3216_v32  ;;  %v3218_v38 = vadd.f32 1.0, %v3178_v4  ;;  %v3298_v61 = vmul.f32 1.6666666, %v3258_v2  ;;  %3691 = vst [vmem:[#allocation2 + $0x10] sm:$0xff] %v3651_v19  ;;  %v8349_v34 = vld [vmem:[#allocation140_spill] sm:$0xff]  ;;  %v7420_v19 = vpop.f32.mrf.mxu1 }
 0x2cb   :  { %v3541_v20 = vmul.f32 1.442695, %v3495_v7  ;;  %v3496_v47 = vsub.f32 0.0, %v3456_v52  ;;  %v3417_v46 = vmul.f32 %v7370_v27, %v8346_v57  ;;  %v3418_v56 = vmul.f32 %v3081_v0, %v8347_v42  ;;  %v8351_v52 = vld [vmem:[#allocation31_spill] sm:$0xff] }
 0x2cc   :  { %3692 = vst [vmem:[#allocation2 + $0x18] sm:$0xff] %v3652_v18  ;;  %v4255_v53 = vpop.eup %4254  ;;  %v2592_v40 = vmul.f32 %v8349_v34, %v8348_v3  ;;  %v3375_v41 = vmul.f32 %v3335_v45, %v7256_v35  ;;  %v3337_v29 = vadd.f32 %v3297_v26, %v3217_v31  ;;  %v3259_v32 = vmul.f32 %v8350_v39, %v8350_v39  ;;  %v7438_v34 = vpop.f32.mrf.mxu0 }
 0x2cd   :  { %v3613_v43 = vmul.f32 %v4255_v53, %v3373_v54  ;;  %4258 = vpow2.f32 %v3541_v20  ;;  %v3543_v2 = vmul.f32 1.442695, %v3496_v47  ;;  %v3457_v24 = vadd.f32 %v3417_v46, %v3177_v48  ;;  %v3010_v18 = vpop.f32.mrf.mxu2  ;;  %v8354_v47 = vld [vmem:[#allocation69_spill] sm:$0xff]  ;;  %v8356_v53 = vld [vmem:[#allocation68_spill] sm:$0xff] }
 0x2ce   :  { %v4257_v33 = vpop.eup %4256  ;;  %v3376_v27 = vmul.f32 %v3336_v59, %v7277_v10  ;;  %v3338_v44 = vadd.f32 %v3298_v61, %v3218_v38  ;;  %v3179_v0 = vmul.f32 2.236068, %v8350_v39  ;;  %v3458_v17 = vadd.f32 %v3418_v56, %v3178_v4  ;;  %v8352_v38 = vld [vmem:[#allocation20_spill] sm:$0xff]  ;;  %v8353_v61 = vld [vmem:[#allocation139_spill] sm:$0xff] }
 0x2cf   :  { %v3653_v35 = vadd.f32 %v3613_v43, %v7365_v37  ;;  %v3614_v45 = vmul.f32 %v4257_v33, %v3374_v22  ;;  %4260 = vpow2.f32 %v3543_v2  ;;  %v3497_v31 = vsub.f32 0.0, %v3457_v24 }
 0x2d0   :  { %v3377_v26 = vmul.f32 %v3337_v29, %v7297_v15  ;;  %v3219_v54 = vadd.f32 1.0, %v3179_v0  ;;  %v3299_v7 = vmul.f32 1.6666666, %v3259_v32  ;;  %v3498_v48 = vsub.f32 0.0, %v3458_v17  ;;  %v8355_v15 = vld [vmem:[#allocation99_spill] sm:$0xff] }
 0x2d1   :  { %v3180_v20 = vmul.f32 2.236068, %v8351_v52  ;;  %v3260_v10 = vmul.f32 %v8351_v52, %v8351_v52  ;;  %3693 = vst [vmem:[#allocation2 + $0x20] sm:$0xff] %v3653_v35  ;;  %v3654_v59 = vadd.f32 %v3614_v45, %v7378_v1  ;;  %v3545_v4 = vmul.f32 1.442695, %v3497_v31  ;;  %v8357_v1 = vld [vmem:[#allocation111_spill] sm:$0xff]  ;;  %v3087_v39 = vpop.f32.mrf.mxu3 }
 0x2d2   :  { %v3261_v37 = vmul.f32 %v8352_v38, %v8352_v38  ;;  %v3547_v22 = vmul.f32 1.442695, %v3498_v48  ;;  %v7432_v57 = vadd.f32 %v8354_v47, %v8353_v61  ;;  %v3419_v46 = vmul.f32 %v3007_v28, %v8355_v15  ;;  %v8358_v35 = vld [vmem:[#allocation100_spill] sm:$0xff]  ;;  %v7449_v15 = vpop.f32.mrf.mxu1 }
 0x2d3   :  { %v4259_v42 = vpop.eup %4258  ;;  %v3181_v56 = vmul.f32 2.236068, %v8352_v38  ;;  %v3262_v3 = vmul.f32 %v8356_v53, %v8356_v53  ;;  %3694 = vst [vmem:[#allocation2 + $0x28] sm:$0xff] %v3654_v59  ;;  %4262 = vpow2.f32 %v3545_v4  ;;  %v7441_v29 = vadd.f32 %v2592_v40, %v8357_v1 }
 0x2d4   :  { %v3220_v32 = vadd.f32 1.0, %v3180_v20  ;;  %v3615_v43 = vmul.f32 %v4259_v42, %v3375_v41  ;;  %4264 = vpow2.f32 %v3547_v22  ;;  %v3459_v2 = vadd.f32 %v3419_v46, %v3179_v0  ;;  %v8359_v22 = vld [vmem:[#allocation131_spill] sm:$0xff]  ;;  %v8360_v46 = vld [vmem:[#allocation144_spill] sm:$0xff] }
 0x2d5   :  { %v4261_v24 = vpop.eup %4260  ;;  %v3300_v28 = vmul.f32 1.6666666, %v3260_v10  ;;  %v3221_v33 = vadd.f32 1.0, %v3181_v56  ;;  %v3182_v17 = vmul.f32 2.236068, %v8356_v53  ;;  %v3420_v45 = vmul.f32 %v3084_v12, %v8358_v35  ;;  %v3013_v4 = vpop.f32.mrf.mxu2  ;;  %v8361_v53 = vld [vmem:[#allocation94_spill] sm:$0xff] }
 0x2d6   :  { %v3301_v31 = vmul.f32 1.6666666, %v3261_v37  ;;  %v3655_v48 = vadd.f32 %v3615_v43, %v7391_v30  ;;  %v3616_v52 = vmul.f32 %v4261_v24, %v3376_v27  ;;  %v3499_v59 = vsub.f32 0.0, %v3459_v2 }
 0x2d7   :  { %v3378_v40 = vmul.f32 %v3338_v44, %v7311_v25  ;;  %v3222_v38 = vadd.f32 1.0, %v3182_v17  ;;  %v3302_v61 = vmul.f32 1.6666666, %v3262_v3  ;;  %v3460_v41 = vadd.f32 %v3420_v45, %v3180_v20  ;;  %v8362_v3 = vld [vmem:[#allocation95_spill] sm:$0xff]  ;;  %v8363_v45 = vld [vmem:[#allocation108_spill] sm:$0xff] }
 0x2d8   :  { %v3145_v0 = vmul.f32 1.1111112, %v8359_v22  ;;  %v3339_v47 = vadd.f32 %v3299_v7, %v3219_v54  ;;  %3695 = vst [vmem:[#allocation2 + $0x30] sm:$0xff] %v3655_v48  ;;  %v3656_v10 = vadd.f32 %v3616_v52, %v7398_v13  ;;  %v3549_v12 = vmul.f32 1.442695, %v3499_v59  ;;  %v7460_v52 = vpop.f32.mrf.mxu0  ;;  %v8367_v22 = vld [vmem:[#allocation34_spill] sm:$0xff] }
 0x2d9   :  { %v4263_v37 = vpop.eup %4262  ;;  %v3146_v30 = vmul.f32 1.1111112, %v8360_v46  ;;  %v3340_v27 = vadd.f32 %v3300_v28, %v3220_v32  ;;  %v3500_v42 = vsub.f32 0.0, %v3460_v41  ;;  %v3421_v1 = vmul.f32 %v3010_v18, %v8361_v53  ;;  %v3090_v24 = vpop.f32.mrf.mxu3  ;;  %v8364_v28 = vld [vmem:[#allocation114_spill] sm:$0xff] }
 0x2da   :  { %v4265_v25 = vpop.eup %4264  ;;  %v3341_v44 = vadd.f32 %v3301_v31, %v3221_v33  ;;  %3696 = vst [vmem:[#allocation2 + $0x38] sm:$0xff] %v3656_v10  ;;  %v3617_v20 = vmul.f32 %v4263_v37, %v3377_v26  ;;  %4266 = vpow2.f32 %v3549_v12  ;;  %v3422_v54 = vmul.f32 %v3087_v39, %v8362_v3  ;;  %v8365_v31 = vld [vmem:[#allocation57_spill] sm:$0xff]  ;;  %v8368_v46 = vld [vmem:[#allocation106_spill] sm:$0xff] }
 0x2db   :  { %v3342_v7 = vadd.f32 %v3302_v61, %v3222_v38  ;;  %v3618_v43 = vmul.f32 %v4265_v25, %v3378_v40  ;;  %v3551_v13 = vmul.f32 1.442695, %v3500_v42  ;;  %v3461_v2 = vadd.f32 %v3421_v1, %v3181_v56  ;;  %v8366_v40 = vld [vmem:[#allocation54_spill] sm:$0xff] }
 0x2dc   :  { %v3379_v35 = vmul.f32 %v3339_v47, %v7335_v49  ;;  %v3263_v32 = vmul.f32 %v8363_v45, %v8363_v45  ;;  %v3657_v48 = vadd.f32 %v3617_v20, %v8364_v28  ;;  %v3462_v18 = vadd.f32 %v3422_v54, %v3182_v17 }
 0x2dd   :  { %v3380_v33 = vmul.f32 %v3340_v27, %v7354_v9  ;;  %v3658_v26 = vadd.f32 %v3618_v43, %v8365_v31  ;;  %4268 = vpow2.f32 %v3551_v13  ;;  %v3501_v39 = vsub.f32 0.0, %v3461_v2  ;;  %v3016_v61 = vpop.f32.mrf.mxu2  ;;  %v8370_v31 = vld [vmem:[#allocation128_spill] sm:$0xff] }
 0x2de   :  { %v3381_v59 = vmul.f32 %v3341_v44, %v7374_v14  ;;  %v3183_v56 = vmul.f32 2.236068, %v8363_v45  ;;  %v3184_v49 = vmul.f32 2.236068, %v8366_v40  ;;  %3697 = vst [vmem:[#allocation2 + $0x40] sm:$0xff] %v3657_v48  ;;  %v3502_v38 = vsub.f32 0.0, %v3462_v18  ;;  %v7470_v44 = vpop.f32.mrf.mxu1 }
 0x2df   :  { %v3382_v41 = vmul.f32 %v3342_v7, %v7387_v6  ;;  %v3264_v9 = vmul.f32 %v8366_v40, %v8366_v40  ;;  %3698 = vst [vmem:[#allocation2 + $0x48] sm:$0xff] %v3658_v26  ;;  %v3553_v17 = vmul.f32 1.442695, %v3501_v39  ;;  %v3423_v47 = vmul.f32 %v3013_v4, %v8367_v22  ;;  %v8372_v22 = vld [vmem:[#allocation118_spill] sm:$0xff] }
 0x2e0   :  { %v4267_v10 = vpop.eup %4266  ;;  %v3223_v12 = vadd.f32 1.0, %v3183_v56  ;;  %v3303_v37 = vmul.f32 1.6666666, %v3263_v32  ;;  %v3555_v14 = vmul.f32 1.442695, %v3502_v38  ;;  %v3424_v27 = vmul.f32 %v3090_v24, %v8368_v46 }
 0x2e1   :  { %v3265_v42 = vmul.f32 %v3145_v0, %v3145_v0  ;;  %v3266_v53 = vmul.f32 %v3146_v30, %v3146_v30  ;;  %v3619_v1 = vmul.f32 %v4267_v10, %v3379_v35  ;;  %4270 = vpow2.f32 %v3553_v17  ;;  %v3093_v13 = vpop.f32.mrf.mxu3 }
 0x2e2   :  { %v3185_v25 = vmul.f32 2.236068, %v3145_v0  ;;  %4272 = vpow2.f32 %v3555_v14  ;;  %v3463_v6 = vadd.f32 %v3423_v47, %v3183_v56  ;;  %v3464_v20 = vadd.f32 %v3424_v27, %v3184_v49  ;;  %v8369_v0 = vld [vmem:[#allocation117_spill] sm:$0xff] }
 0x2e3   :  { %v4269_v3 = vpop.eup %4268  ;;  %v3224_v54 = vadd.f32 1.0, %v3184_v49  ;;  %v3304_v7 = vmul.f32 1.6666666, %v3264_v9  ;;  %v3186_v4 = vmul.f32 2.236068, %v3146_v30  ;;  %v3659_v43 = vadd.f32 %v3619_v1, %v7432_v57  ;;  %v8371_v57 = vld [vmem:[#allocation121_spill] sm:$0xff]  ;;  %v7479_v9 = vpop.f32.mrf.mxu0 }
 0x2e4   :  { %v3225_v2 = vadd.f32 1.0, %v3185_v25  ;;  %v3620_v45 = vmul.f32 %v4269_v3, %v3380_v33  ;;  %v3503_v24 = vsub.f32 0.0, %v3463_v6  ;;  %v3504_v32 = vsub.f32 0.0, %v3464_v20  ;;  %v8375_v3 = vld [vmem:[#allocation124_spill] sm:$0xff] }
 0x2e5   :  { %v3305_v28 = vmul.f32 1.6666666, %v3265_v42  ;;  %v3226_v35 = vadd.f32 1.0, %v3186_v4  ;;  %v3306_v48 = vmul.f32 1.6666666, %v3266_v53  ;;  %3699 = vst [vmem:[#allocation2 + $0x50] sm:$0xff] %v3659_v43  ;;  %v3425_v18 = vmul.f32 %v3016_v61, %v8369_v0  ;;  %v3019_v30 = vpop.f32.mrf.mxu2 }
 0x2e6   :  { %v3150_v26 = vmul.f32 1.1111112, %v8370_v31  ;;  %v3660_v39 = vadd.f32 %v3620_v45, %v7441_v29  ;;  %v3557_v56 = vmul.f32 1.442695, %v3503_v24  ;;  %v3559_v40 = vmul.f32 1.442695, %v3504_v32 }
 0x2e7   :  { %v4271_v49 = vpop.eup %4270  ;;  %v7477_v38 = vmul.f32 1.1111112, %v8371_v57  ;;  %v3343_v33 = vadd.f32 %v3303_v37, %v3223_v12  ;;  %v3465_v17 = vadd.f32 %v3425_v18, %v3185_v25  ;;  %v3426_v47 = vmul.f32 %v3093_v13, %v8372_v22  ;;  %v8373_v61 = vld [vmem:[#allocation78_spill] sm:$0xff]  ;;  %v8374_v12 = vld [vmem:[#allocation101_spill] sm:$0xff]  ;;  %v8377_v32 = vld [vmem:[#allocation36_spill] sm:$0xff] }
 0x2e8   :  { %v4273_v10 = vpop.eup %4272  ;;  %v3344_v14 = vadd.f32 %v3304_v7, %v3224_v54  ;;  %v3267_v46 = vmul.f32 %v8373_v61, %v8373_v61  ;;  %3700 = vst [vmem:[#allocation2 + $0x58] sm:$0xff] %v3660_v39  ;;  %v3621_v29 = vmul.f32 %v4271_v49, %v3381_v59  ;;  %4274 = vpow2.f32 %v3557_v56  ;;  %v8376_v43 = vld [vmem:[#allocation22_spill] sm:$0xff] }
 0x2e9   :  { %v3345_v27 = vadd.f32 %v3305_v28, %v3225_v2  ;;  %v3346_v42 = vadd.f32 %v3306_v48, %v3226_v35  ;;  %v3622_v53 = vmul.f32 %v4273_v10, %v3382_v41  ;;  %4276 = vpow2.f32 %v3559_v40  ;;  %v3096_v13 = vpop.f32.mrf.mxu3  ;;  %v7492_v41 = vpop.f32.mrf.mxu1  ;;  %v8378_v48 = vld [vmem:[#allocation23_spill] sm:$0xff] }
 0x2ea   :  { %v3187_v1 = vmul.f32 2.236068, %v8373_v61  ;;  %v3661_v37 = vadd.f32 %v3621_v29, %v8374_v12  ;;  %v3505_v6 = vsub.f32 0.0, %v3465_v17  ;;  %v3466_v25 = vadd.f32 %v3426_v47, %v3186_v4  ;;  %v8380_v61 = vld [vmem:[#allocation47_spill] sm:$0xff] }
 0x2eb   :  { %v3383_v20 = vmul.f32 %v3343_v33, %v7407_v63  ;;  %v3188_v54 = vmul.f32 2.236068, %v8375_v3  ;;  %v3268_v7 = vmul.f32 %v8375_v3, %v8375_v3  ;;  %v3662_v59 = vadd.f32 %v3622_v53, %v8376_v43  ;;  %v8381_v53 = vld [vmem:[#allocation120_spill] sm:$0xff] }
 0x2ec   :  { %v3384_v2 = vmul.f32 %v3344_v14, %v7420_v19  ;;  %3701 = vst [vmem:[#allocation2 + $0x60] sm:$0xff] %v3661_v37  ;;  %v3561_v45 = vmul.f32 1.442695, %v3505_v6  ;;  %v3506_v24 = vsub.f32 0.0, %v3466_v25  ;;  %v3427_v28 = vmul.f32 %v3019_v30, %v8377_v32  ;;  %v8379_v30 = vld [vmem:[#allocation25_spill] sm:$0xff]  ;;  %v7501_v14 = vpop.f32.mrf.mxu0 }
 0x2ed   :  { %v3385_v4 = vmul.f32 %v3345_v27, %v7438_v34  ;;  %v3386_v63 = vmul.f32 %v3346_v42, %v7449_v15  ;;  %v3227_v35 = vadd.f32 1.0, %v3187_v1  ;;  %3702 = vst [vmem:[#allocation2 + $0x68] sm:$0xff] %v3662_v59  ;;  %v3428_v0 = vmul.f32 %v3096_v13, %v8378_v48  ;;  %v3022_v56 = vpop.f32.mrf.mxu2  ;;  %v8383_v13 = vld [vmem:[#allocation41_spill] sm:$0xff] }
 0x2ee   :  { %v4275_v18 = vpop.eup %4274  ;;  %v3307_v31 = vmul.f32 1.6666666, %v3267_v46  ;;  %4278 = vpow2.f32 %v3561_v45  ;;  %v3563_v39 = vmul.f32 1.442695, %v3506_v24  ;;  %v3467_v19 = vadd.f32 %v3427_v28, %v3187_v1  ;;  %v8384_v28 = vld [vmem:[#allocation43_spill] sm:$0xff] }
 0x2ef   :  { %v4277_v40 = vpop.eup %4276  ;;  %v3228_v49 = vadd.f32 1.0, %v3188_v54  ;;  %v3308_v57 = vmul.f32 1.6666666, %v3268_v7  ;;  %v3623_v33 = vmul.f32 %v4275_v18, %v3383_v20  ;;  %v3468_v17 = vadd.f32 %v3428_v0, %v3188_v54  ;;  %v8382_v20 = vld [vmem:[#allocation87_spill] sm:$0xff] }
 0x2f0   :  { %v3269_v34 = vmul.f32 %v8379_v30, %v8379_v30  ;;  %v3624_v22 = vmul.f32 %v4277_v40, %v3384_v2  ;;  %4280 = vpow2.f32 %v3563_v39  ;;  %v3507_v15 = vsub.f32 0.0, %v3467_v19 }
 0x2f1   :  { %v3189_v47 = vmul.f32 2.236068, %v8379_v30  ;;  %v3270_v10 = vmul.f32 %v3150_v26, %v3150_v26  ;;  %v3663_v46 = vadd.f32 %v3623_v33, %v8380_v61  ;;  %v3508_v29 = vsub.f32 0.0, %v3468_v17  ;;  %v3099_v54 = vpop.f32.mrf.mxu3  ;;  %v7510_v18 = vpop.f32.mrf.mxu1 }
 0x2f2   :  { %v3347_v27 = vadd.f32 %v3307_v31, %v3227_v35  ;;  %v3190_v42 = vmul.f32 2.236068, %v3150_v26  ;;  %v3664_v1 = vadd.f32 %v3624_v22, %v8381_v53  ;;  %v3565_v12 = vmul.f32 1.442695, %v3507_v15  ;;  %v8387_v22 = vld [vmem:[#allocation27_spill] sm:$0xff] }
 0x2f3   :  { %v3348_v37 = vadd.f32 %v3308_v57, %v3228_v49  ;;  %v3229_v6 = vadd.f32 1.0, %v3189_v47  ;;  %3703 = vst [vmem:[#allocation2 + $0x70] sm:$0xff] %v3663_v46  ;;  %v3567_v25 = vmul.f32 1.442695, %v3508_v29  ;;  %v3429_v3 = vmul.f32 %v3022_v56, %v8382_v20  ;;  %v8385_v56 = vld [vmem:[#allocation82_spill] sm:$0xff] }
 0x2f4   :  { %v4279_v7 = vpop.eup %4278  ;;  %v3309_v43 = vmul.f32 1.6666666, %v3269_v34  ;;  %v3230_v59 = vadd.f32 1.0, %v3190_v42  ;;  %3704 = vst [vmem:[#allocation2 + $0x78] sm:$0xff] %v3664_v1  ;;  %4282 = vpow2.f32 %v3565_v12  ;;  %v3430_v2 = vmul.f32 %v3099_v54, %v8383_v13  ;;  %v8386_v57 = vld [vmem:[#allocation58_spill] sm:$0xff]  ;;  %v7519_v1 = vpop.f32.mrf.mxu0 }
 0x2f5   :  { %v3310_v45 = vmul.f32 1.6666666, %v3270_v10  ;;  %v3625_v24 = vmul.f32 %v4279_v7, %v3385_v4  ;;  %4284 = vpow2.f32 %v3567_v25  ;;  %v3469_v26 = vadd.f32 %v3429_v3, %v3189_v47  ;;  %v3025_v39 = vpop.f32.mrf.mxu2  ;;  %v8388_v10 = vld [vmem:[#allocation45_spill] sm:$0xff] }
 0x2f6   :  { %v4281_v32 = vpop.eup %4280  ;;  %v3152_v35 = vmul.f32 1.1111112, %v8384_v28  ;;  %v3387_v48 = vmul.f32 %v3347_v27, %v7460_v52  ;;  %v3191_v0 = vmul.f32 2.236068, %v7477_v38  ;;  %v3470_v31 = vadd.f32 %v3430_v2, %v3190_v42  ;;  %v8390_v3 = vld [vmem:[#allocation85_spill] sm:$0xff] }
 0x2f7   :  { %v3271_v19 = vmul.f32 %v7477_v38, %v7477_v38  ;;  %v3665_v40 = vadd.f32 %v3625_v24, %v8385_v56  ;;  %v3626_v49 = vmul.f32 %v4281_v32, %v3386_v63  ;;  %v3509_v4 = vsub.f32 0.0, %v3469_v26  ;;  %v8392_v26 = vld [vmem:[#allocation123_spill] sm:$0xff] }
 0x2f8   :  { %v3154_v33 = vmul.f32 1.1111112, %v8386_v57  ;;  %v3388_v17 = vmul.f32 %v3348_v37, %v7470_v44  ;;  %v3349_v30 = vadd.f32 %v3309_v43, %v3229_v6  ;;  %v3510_v34 = vsub.f32 0.0, %v3470_v31  ;;  %v8389_v6 = vld [vmem:[#allocation126_spill] sm:$0xff] }
 0x2f9   :  { %v3350_v52 = vadd.f32 %v3310_v45, %v3230_v59  ;;  %3705 = vst [vmem:[#allocation2 + $0x80] sm:$0xff] %v3665_v40  ;;  %v3666_v15 = vadd.f32 %v3626_v49, %v8387_v22  ;;  %v3569_v47 = vmul.f32 1.442695, %v3509_v4  ;;  %v3431_v61 = vmul.f32 %v3025_v39, %v8388_v10  ;;  %v3102_v37 = vpop.f32.mrf.mxu3  ;;  %v8391_v59 = vld [vmem:[#allocation11_spill] sm:$0xff]  ;;  %v7530_v56 = vpop.f32.mrf.mxu1  ;;  %v8393_v4 = vld [vmem:[#allocation110_spill] sm:$0xff] }
 0x2fa   :  { %v4283_v46 = vpop.eup %4282  ;;  %v3231_v29 = vadd.f32 1.0, %v3191_v0  ;;  %v3192_v38 = vmul.f32 2.236068, %v3152_v35  ;;  %v3272_v27 = vmul.f32 %v3152_v35, %v3152_v35  ;;  %v3571_v42 = vmul.f32 1.442695, %v3510_v34 }
 0x2fb   :  { %v4285_v63 = vpop.eup %4284  ;;  %v3311_v53 = vmul.f32 1.6666666, %v3271_v19  ;;  %3706 = vst [vmem:[#allocation2 + $0x88] sm:$0xff] %v3666_v15  ;;  %v3627_v44 = vmul.f32 %v4283_v46, %v3387_v48  ;;  %4286 = vpow2.f32 %v3569_v47  ;;  %v3471_v12 = vadd.f32 %v3431_v61, %v3191_v0 }
 0x2fc   :  { %v3273_v25 = vmul.f32 %v8389_v6, %v8389_v6  ;;  %v3628_v20 = vmul.f32 %v4285_v63, %v3388_v17  ;;  %4288 = vpow2.f32 %v3571_v42  ;;  %v3432_v54 = vmul.f32 %v3102_v37, %v8390_v3 }
 0x2fd   :  { %v3389_v7 = vmul.f32 %v3349_v30, %v7479_v9  ;;  %v3193_v43 = vmul.f32 2.236068, %v8389_v6  ;;  %v3667_v13 = vadd.f32 %v3627_v44, %v8391_v59  ;;  %v3511_v2 = vsub.f32 0.0, %v3471_v12  ;;  %v3028_v35 = vpop.f32.mrf.mxu2  ;;  %v8394_v12 = vld [vmem:[#allocation21_spill] sm:$0xff] }
 0x2fe   :  { %v3232_v45 = vadd.f32 1.0, %v3192_v38  ;;  %v3312_v24 = vmul.f32 1.6666666, %v3272_v27  ;;  %v3668_v32 = vadd.f32 %v3628_v20, %v8392_v26  ;;  %v3472_v28 = vadd.f32 %v3432_v54, %v3192_v38  ;;  %v2797_v27 = vpop.f32.mrf.mxu0 }
 0x2ff   :  { %v3390_v48 = vmul.f32 %v3350_v52, %v7492_v41  ;;  %v3351_v0 = vadd.f32 %v3311_v53, %v3231_v29  ;;  %3707 = vst [vmem:[#allocation2 + $0x90] sm:$0xff] %v3667_v13  ;;  %v3573_v31 = vmul.f32 1.442695, %v3511_v2  ;;  %v3433_v39 = vmul.f32 %v3028_v35, %v8255_v8 }
 0x300   :  { %v3233_v19 = vadd.f32 1.0, %v3193_v43  ;;  %v3313_v9 = vmul.f32 1.6666666, %v3273_v25  ;;  %3708 = vst [vmem:[#allocation2 + $0x98] sm:$0xff] %v3668_v32  ;;  %v3512_v40 = vsub.f32 0.0, %v3472_v28  ;;  %v3352_v34 = vadd.f32 %v3312_v24, %v3232_v45  ;;  %v8395_v32 = vld [vmem:[#allocation81_spill] sm:$0xff] }
 0x301   :  { %v4287_v49 = vpop.eup %4286  ;;  %v3155_v57 = vmul.f32 1.1111112, %v8393_v4  ;;  %4290 = vpow2.f32 %v3573_v31  ;;  %v3473_v17 = vadd.f32 %v3433_v39, %v3193_v43  ;;  %v3194_v22 = vmul.f32 2.236068, %v3154_v33  ;;  %v3105_v61 = vpop.f32.mrf.mxu3 }
 0x302   :  { %v4289_v30 = vpop.eup %4288  ;;  %v3629_v41 = vmul.f32 %v4287_v49, %v3389_v7  ;;  %v3575_v52 = vmul.f32 1.442695, %v3512_v40  ;;  %v3391_v15 = vmul.f32 %v3351_v0, %v7501_v14  ;;  %v3274_v47 = vmul.f32 %v3154_v33, %v3154_v33  ;;  %v2874_v2 = vpop.f32.mrf.mxu1 }
 0x303   :  { %v3630_v8 = vmul.f32 %v4289_v30, %v3390_v48  ;;  %v3513_v10 = vsub.f32 0.0, %v3473_v17  ;;  %v3353_v46 = vadd.f32 %v3313_v9, %v3233_v19  ;;  %v3434_v38 = vmul.f32 %v3105_v61, %v8256_v51 }
 0x304   :  { %v3669_v29 = vadd.f32 %v3629_v41, %v7092_v21  ;;  %4292 = vpow2.f32 %v3575_v52  ;;  %v3195_v42 = vmul.f32 2.236068, %v3155_v57  ;;  %v3275_v63 = vmul.f32 %v3155_v57, %v3155_v57  ;;  %v8396_v41 = vld [vmem:[#allocation137_spill] sm:$0xff] }
 0x305   :  { %v3670_v53 = vadd.f32 %v3630_v8, %v7105_v36  ;;  %v3577_v44 = vmul.f32 1.442695, %v3513_v10  ;;  %v3156_v37 = vmul.f32 1.1111112, %v8394_v12  ;;  %v3392_v14 = vmul.f32 %v3352_v34, %v7510_v18  ;;  %v3031_v6 = vpop.f32.mrf.mxu2 }
 0x306   :  { %3709 = vst [vmem:[#allocation2 + $0xa0] sm:$0xff] %v3669_v29  ;;  %v3474_v33 = vadd.f32 %v3434_v38, %v3194_v22  ;;  %v3234_v20 = vadd.f32 1.0, %v3194_v22  ;;  %v3314_v3 = vmul.f32 1.6666666, %v3274_v47  ;;  %v3435_v21 = vmul.f32 %v3031_v6, %v8259_v60  ;;  %v2800_v30 = vpop.f32.mrf.mxu0  ;;  %v8397_v29 = vld [vmem:[#allocation74_spill] sm:$0xff] }
 0x307   :  { %v4291_v25 = vpop.eup %4290  ;;  %3710 = vst [vmem:[#allocation2 + $0xa8] sm:$0xff] %v3670_v53  ;;  %4294 = vpow2.f32 %v3577_v44  ;;  %v3393_v7 = vmul.f32 %v3353_v46, %v7519_v1  ;;  %v3235_v36 = vadd.f32 1.0, %v3195_v42  ;;  %v3315_v43 = vmul.f32 1.6666666, %v3275_v63 }
 0x308   :  { %v3631_v51 = vmul.f32 %v4291_v25, %v3391_v15  ;;  %v3514_v54 = vsub.f32 0.0, %v3474_v33  ;;  %v3475_v59 = vadd.f32 %v3435_v21, %v3195_v42  ;;  %v3196_v18 = vmul.f32 2.236068, %v3156_v37  ;;  %v8398_v33 = vld [vmem:[#allocation148_spill] sm:$0xff] }
 0x309   :  { %v3276_v45 = vmul.f32 %v3156_v37, %v3156_v37  ;;  %v3157_v28 = vmul.f32 1.1111112, %v8395_v32  ;;  %v3354_v35 = vadd.f32 %v3314_v3, %v3234_v20  ;;  %v3108_v60 = vpop.f32.mrf.mxu3  ;;  %v3355_v39 = vadd.f32 %v3315_v43, %v3235_v36  ;;  %v8400_v43 = vld [vmem:[#allocation12_spill] sm:$0xff] }
 0x30a   :  { %v4293_v13 = vpop.eup %4292  ;;  %v3671_v24 = vadd.f32 %v3631_v51, %v7135_v11  ;;  %v3579_v26 = vmul.f32 1.442695, %v3514_v54  ;;  %v3515_v0 = vsub.f32 0.0, %v3475_v59  ;;  %v3436_v1 = vmul.f32 %v3108_v60, %v8261_v23 }
 0x30b   :  { %v3632_v48 = vmul.f32 %v4293_v13, %v3392_v14  ;;  %v3236_v40 = vadd.f32 1.0, %v3196_v18  ;;  %v3316_v49 = vmul.f32 1.6666666, %v3276_v45  ;;  %v3394_v17 = vmul.f32 %v3354_v35, %v7530_v56  ;;  %v8402_v35 = vld [vmem:[#allocation119_spill] sm:$0xff] }
 0x30c   :  { %3711 = vst [vmem:[#allocation2 + $0xb0] sm:$0xff] %v3671_v24  ;;  %4296 = vpow2.f32 %v3579_v26  ;;  %v3581_v9 = vmul.f32 1.442695, %v3515_v0  ;;  %v3476_v11 = vadd.f32 %v3436_v1, %v3196_v18  ;;  %v3197_v34 = vmul.f32 2.236068, %v3157_v28  ;;  %v8401_v18 = vld [vmem:[#allocation151_spill] sm:$0xff] }
 0x30d   :  { %v4295_v31 = vpop.eup %4294  ;;  %v3672_v19 = vadd.f32 %v3632_v48, %v7152_v16  ;;  %v3034_v57 = vpop.f32.mrf.mxu2  ;;  %v3158_v23 = vmul.f32 1.1111112, %v8396_v41  ;;  %v3277_v52 = vmul.f32 %v3157_v28, %v3157_v28  ;;  %v3395_v10 = vmul.f32 %v3355_v39, %v2797_v27 }
 0x30e   :  { %v3633_v4 = vmul.f32 %v4295_v31, %v3393_v7  ;;  %4298 = vpow2.f32 %v3581_v9  ;;  %v3437_v22 = vmul.f32 %v3034_v57, %v8264_v62  ;;  %v3516_v16 = vsub.f32 0.0, %v3476_v11  ;;  %v2877_v62 = vpop.f32.mrf.mxu1  ;;  %v8399_v7 = vld [vmem:[#allocation40_spill] sm:$0xff]  ;;  %v2803_v32 = vpop.f32.mrf.mxu0 }
 0x30f   :  { %3712 = vst [vmem:[#allocation2 + $0xb8] sm:$0xff] %v3672_v19  ;;  %v3356_v61 = vadd.f32 %v3316_v49, %v3236_v40  ;;  %v3159_v56 = vmul.f32 1.1111112, %v8397_v29  ;;  %v3237_v38 = vadd.f32 1.0, %v3197_v34  ;;  %v3317_v44 = vmul.f32 1.6666666, %v3277_v52 }
 0x310   :  { %v3673_v15 = vadd.f32 %v3633_v4, %v7172_v55  ;;  %v3477_v47 = vadd.f32 %v3437_v22, %v3197_v34  ;;  %v3583_v46 = vmul.f32 1.442695, %v3516_v16  ;;  %v3198_v12 = vmul.f32 2.236068, %v3158_v23  ;;  %v8403_v49 = vld [vmem:[#allocation132_spill] sm:$0xff] }
 0x311   :  { %v3111_v53 = vpop.f32.mrf.mxu3  ;;  %v3278_v14 = vmul.f32 %v3158_v23, %v3158_v23  ;;  %v3396_v25 = vmul.f32 %v3356_v61, %v2874_v2  ;;  %v3199_v51 = vmul.f32 2.236068, %v3159_v56  ;;  %v3279_v54 = vmul.f32 %v3159_v56, %v3159_v56  ;;  %v8404_v34 = vld [vmem:[#allocation48_spill] sm:$0xff]  ;;  %v8406_v61 = vld [vmem:[#allocation15_spill] sm:$0xff] }
 0x312   :  { %v4297_v8 = vpop.eup %4296  ;;  %3713 = vst [vmem:[#allocation2 + $0xc0] sm:$0xff] %v3673_v15  ;;  %v3517_v63 = vsub.f32 0.0, %v3477_v47  ;;  %4300 = vpow2.f32 %v3583_v46  ;;  %v3438_v37 = vmul.f32 %v3111_v53, %v8265_v50  ;;  %v3160_v59 = vmul.f32 1.1111112, %v8400_v43  ;;  %v8409_v43 = vld [vmem:[#allocation5_spill] sm:$0xff] }
 0x313   :  { %v3634_v42 = vmul.f32 %v4297_v8, %v3394_v17  ;;  %v3357_v13 = vadd.f32 %v3317_v44, %v3237_v38  ;;  %v3238_v24 = vadd.f32 1.0, %v3198_v12  ;;  %v3318_v26 = vmul.f32 1.6666666, %v3278_v14 }
 0x314   :  { %v4299_v55 = vpop.eup %4298  ;;  %v3585_v27 = vmul.f32 1.442695, %v3517_v63  ;;  %v3478_v3 = vadd.f32 %v3438_v37, %v3198_v12  ;;  %v3161_v48 = vmul.f32 1.1111112, %v8402_v35  ;;  %v3239_v60 = vadd.f32 1.0, %v3199_v51  ;;  %v8407_v37 = vld [vmem:[#allocation92_spill] sm:$0xff] }
 0x315   :  { %v3674_v6 = vadd.f32 %v3634_v42, %v8398_v33  ;;  %v3635_v20 = vmul.f32 %v4299_v55, %v3395_v10  ;;  %v3037_v21 = vpop.f32.mrf.mxu2  ;;  %v3319_v1 = vmul.f32 1.6666666, %v3279_v54  ;;  %v3397_v9 = vmul.f32 %v3357_v13, %v2800_v30  ;;  %v8405_v10 = vld [vmem:[#allocation63_spill] sm:$0xff] }
 0x316   :  { %4302 = vpow2.f32 %v3585_v27  ;;  %v3439_v36 = vmul.f32 %v3037_v21, %v8399_v7  ;;  %v3518_v45 = vsub.f32 0.0, %v3478_v3  ;;  %v3200_v40 = vmul.f32 2.236068, %v3160_v59  ;;  %v2880_v23 = vpop.f32.mrf.mxu1 }
 0x317   :  { %3714 = vst [vmem:[#allocation2 + $0xc8] sm:$0xff] %v3674_v6  ;;  %v3675_v50 = vadd.f32 %v3635_v20, %v8401_v18  ;;  %v3358_v57 = vadd.f32 %v3318_v26, %v3238_v24  ;;  %v3280_v17 = vmul.f32 %v3160_v59, %v3160_v59  ;;  %v3359_v47 = vadd.f32 %v3319_v1, %v3239_v60  ;;  %v2806_v6 = vpop.f32.mrf.mxu0 }
 0x318   :  { %v3479_v28 = vadd.f32 %v3439_v36, %v3199_v51  ;;  %v4301_v2 = vpop.eup %4300  ;;  %v3587_v0 = vmul.f32 1.442695, %v3518_v45  ;;  %v3201_v8 = vmul.f32 2.236068, %v3161_v48  ;;  %v3162_v46 = vmul.f32 1.1111112, %v8406_v61 }
 0x319   :  { %3715 = vst [vmem:[#allocation2 + $0xd0] sm:$0xff] %v3675_v50  ;;  %v3636_v31 = vmul.f32 %v4301_v2, %v3396_v25  ;;  %v3114_v19 = vpop.f32.mrf.mxu3  ;;  %v3281_v29 = vmul.f32 %v3161_v48, %v3161_v48  ;;  %v3398_v42 = vmul.f32 %v3358_v57, %v2877_v62  ;;  %v3240_v63 = vadd.f32 1.0, %v3200_v40  ;;  %v8411_v2 = vld [vmem:[#allocation51_spill] sm:$0xff] }
 0x31a   :  { %v3519_v39 = vsub.f32 0.0, %v3479_v28  ;;  %4304 = vpow2.f32 %v3587_v0  ;;  %v3440_v4 = vmul.f32 %v3114_v19, %v8403_v49  ;;  %v3320_v53 = vmul.f32 1.6666666, %v3280_v17  ;;  %v8412_v49 = vld [vmem:[#allocation102_spill] sm:$0xff] }
 0x31b   :  { %v3676_v22 = vadd.f32 %v3636_v31, %v8404_v34  ;;  %v3163_v55 = vmul.f32 1.1111112, %v8407_v37  ;;  %v3399_v33 = vmul.f32 %v3359_v47, %v2803_v32  ;;  %v3241_v27 = vadd.f32 1.0, %v3201_v8  ;;  %v8410_v32 = vld [vmem:[#allocation75_spill] sm:$0xff] }
 0x31c   :  { %v4303_v11 = vpop.eup %4302  ;;  %v3589_v41 = vmul.f32 1.442695, %v3519_v39  ;;  %v3480_v15 = vadd.f32 %v3440_v4, %v3200_v40  ;;  %v3321_v21 = vmul.f32 1.6666666, %v3281_v29  ;;  %v3202_v51 = vmul.f32 2.236068, %v3162_v46 }
 0x31d   :  { %v3637_v52 = vmul.f32 %v4303_v11, %v3397_v9  ;;  %v3040_v16 = vpop.f32.mrf.mxu2  ;;  %3716 = vst [vmem:[#allocation2 + $0xd8] sm:$0xff] %v3676_v22  ;;  %v3360_v7 = vadd.f32 %v3320_v53, %v3240_v63  ;;  %v3282_v36 = vmul.f32 %v3162_v46, %v3162_v46  ;;  %v3203_v24 = vmul.f32 2.236068, %v3163_v55  ;;  %v8415_v53 = vld [vmem:[#allocation135_spill] sm:$0xff] }
 0x31e   :  { %4306 = vpow2.f32 %v3589_v41  ;;  %v3441_v30 = vmul.f32 %v3040_v16, %v8405_v10  ;;  %v3520_v38 = vsub.f32 0.0, %v3480_v15  ;;  %v3283_v26 = vmul.f32 %v3163_v55, %v3163_v55  ;;  %v2883_v0 = vpop.f32.mrf.mxu1  ;;  %v8413_v16 = vld [vmem:[#allocation79_spill] sm:$0xff] }
 0x31f   :  { %v3677_v56 = vadd.f32 %v3637_v52, %v7233_v58  ;;  %v8408_v58 = vld [vmem:[#allocation64_spill] sm:$0xff]  ;;  %v3164_v35 = vmul.f32 1.1111112, %v8411_v2  ;;  %v3361_v48 = vadd.f32 %v3321_v21, %v3241_v27  ;;  %v3400_v31 = vmul.f32 %v3360_v7, %v2880_v23  ;;  %v8420_v2 = vld [vmem:[#allocation18_spill] sm:$0xff] }
 0x320   :  { %v3481_v44 = vadd.f32 %v3441_v30, %v3201_v8  ;;  %v4305_v12 = vpop.eup %4304  ;;  %v3591_v14 = vmul.f32 1.442695, %v3520_v38  ;;  %v3242_v39 = vadd.f32 1.0, %v3202_v51  ;;  %v3322_v19 = vmul.f32 1.6666666, %v3282_v36  ;;  %v2809_v8 = vpop.f32.mrf.mxu0  ;;  %v8414_v30 = vld [vmem:[#allocation53_spill] sm:$0xff] }
 0x321   :  { %3717 = vst [vmem:[#allocation2 + $0xe0] sm:$0xff] %v3677_v56  ;;  %v3638_v25 = vmul.f32 %v4305_v12, %v3398_v42  ;;  %v3117_v3 = vpop.f32.mrf.mxu3  ;;  %v3165_v4 = vmul.f32 1.1111112, %v8412_v49  ;;  %v3243_v57 = vadd.f32 1.0, %v3203_v24  ;;  %v3323_v17 = vmul.f32 1.6666666, %v3283_v26 }
 0x322   :  { %v3521_v20 = vsub.f32 0.0, %v3481_v44  ;;  %4308 = vpow2.f32 %v3591_v14  ;;  %v3442_v54 = vmul.f32 %v3117_v3, %v8408_v58  ;;  %v3401_v52 = vmul.f32 %v3361_v48, %v2806_v6  ;;  %v8416_v12 = vld [vmem:[#allocation153_spill] sm:$0xff]  ;;  %v8417_v14 = vld [vmem:[#allocation138_spill] sm:$0xff] }
 0x323   :  { %v3678_v59 = vadd.f32 %v3638_v25, %v8409_v43  ;;  %v3204_v15 = vmul.f32 2.236068, %v3164_v35  ;;  %v3362_v23 = vadd.f32 %v3322_v19, %v3242_v39  ;;  %v3284_v10 = vmul.f32 %v3164_v35, %v3164_v35  ;;  %v8422_v49 = vld [vmem:[#allocation86_spill] sm:$0xff] }
 0x324   :  { %v4307_v62 = vpop.eup %4306  ;;  %v3593_v13 = vmul.f32 1.442695, %v3521_v20  ;;  %v3482_v50 = vadd.f32 %v3442_v54, %v3202_v51  ;;  %v3205_v42 = vmul.f32 2.236068, %v3165_v4  ;;  %v3285_v63 = vmul.f32 %v3165_v4, %v3165_v4  ;;  %v8418_v51 = vld [vmem:[#allocation141_spill] sm:$0xff] }
 0x325   :  { %v3639_v18 = vmul.f32 %v4307_v62, %v3399_v33  ;;  %v3043_v45 = vpop.f32.mrf.mxu2  ;;  %3718 = vst [vmem:[#allocation2 + $0xe8] sm:$0xff] %v3678_v59  ;;  %v3166_v37 = vmul.f32 1.1111112, %v8416_v12  ;;  %v3363_v55 = vadd.f32 %v3323_v17, %v3243_v57  ;;  %v3402_v27 = vmul.f32 %v3362_v23, %v2883_v0  ;;  %v8423_v57 = vld [vmem:[#allocation19_spill] sm:$0xff] }
 0x326   :  { %4310 = vpow2.f32 %v3593_v13  ;;  %v3443_v28 = vmul.f32 %v3043_v45, %v8410_v32  ;;  %v3522_v1 = vsub.f32 0.0, %v3482_v50  ;;  %v3244_v25 = vadd.f32 1.0, %v3204_v15  ;;  %v2886_v54 = vpop.f32.mrf.mxu1  ;;  %v8419_v45 = vld [vmem:[#allocation136_spill] sm:$0xff] }
 0x327   :  { %v3679_v60 = vadd.f32 %v3639_v18, %v7253_v5  ;;  %v3324_v20 = vmul.f32 1.6666666, %v3284_v10  ;;  %v3167_v58 = vmul.f32 1.1111112, %v8418_v51  ;;  %v3245_v7 = vadd.f32 1.0, %v3205_v42 }
 0x328   :  { %v3483_v9 = vadd.f32 %v3443_v28, %v3203_v24  ;;  %v4309_v40 = vpop.eup %4308  ;;  %v3595_v11 = vmul.f32 1.442695, %v3522_v1  ;;  %v3325_v36 = vmul.f32 1.6666666, %v3285_v63  ;;  %v3403_v18 = vmul.f32 %v3363_v55, %v2809_v8 }
 0x329   :  { %3719 = vst [vmem:[#allocation2 + $0xf0] sm:$0xff] %v3679_v60  ;;  %v3640_v34 = vmul.f32 %v4309_v40, %v3400_v31  ;;  %v3120_v41 = vpop.f32.mrf.mxu3  ;;  %v3206_v50 = vmul.f32 2.236068, %v3166_v37  ;;  %v3364_v32 = vadd.f32 %v3324_v20, %v3244_v25  ;;  %v3286_v28 = vmul.f32 %v3166_v37, %v3166_v37  ;;  %v2812_v31 = vpop.f32.mrf.mxu0 }
 0x32a   :  { %v3523_v22 = vsub.f32 0.0, %v3483_v9  ;;  %4312 = vpow2.f32 %v3595_v11  ;;  %v3444_v5 = vmul.f32 %v3120_v41, %v8413_v16  ;;  %v3365_v39 = vadd.f32 %v3325_v36, %v3245_v7  ;;  %v8421_v9 = vld [vmem:[#allocation70_spill] sm:$0xff] }
 0x32b   :  { %v3680_v61 = vadd.f32 %v3640_v34, %v8414_v30  ;;  %v3207_v19 = vmul.f32 2.236068, %v3167_v58  ;;  %v3168_v4 = vmul.f32 1.1111112, %v8422_v49  ;;  %v3287_v11 = vmul.f32 %v3167_v58, %v3167_v58 }
 0x32c   :  { %v4311_v47 = vpop.eup %4310  ;;  %v3597_v46 = vmul.f32 1.442695, %v3523_v22  ;;  %v3484_v56 = vadd.f32 %v3444_v5, %v3204_v15  ;;  %v3404_v22 = vmul.f32 %v3364_v32, %v2886_v54  ;;  %v3246_v41 = vadd.f32 1.0, %v3206_v50 }
 0x32d   :  { %v3641_v29 = vmul.f32 %v4311_v47, %v3401_v52  ;;  %v3046_v38 = vpop.f32.mrf.mxu2  ;;  %3720 = vst [vmem:[#allocation2 + $0xf8] sm:$0xff] %v3680_v61  ;;  %v3326_v52 = vmul.f32 1.6666666, %v3286_v28  ;;  %v3405_v47 = vmul.f32 %v3365_v39, %v2812_v31  ;;  %v3247_v23 = vadd.f32 1.0, %v3207_v19 }
 0x32e   :  { %4314 = vpow2.f32 %v3597_v46  ;;  %v3445_v44 = vmul.f32 %v3046_v38, %v8415_v53  ;;  %v3524_v6 = vsub.f32 0.0, %v3484_v56  ;;  %v2889_v61 = vpop.f32.mrf.mxu1  ;;  %v3327_v46 = vmul.f32 1.6666666, %v3287_v11  ;;  %v8424_v56 = vld [vmem:[#allocation91_spill] sm:$0xff] }
 0x32f   :  { %v3681_v33 = vadd.f32 %v3641_v29, %v8417_v14  ;;  %v3208_v29 = vmul.f32 2.236068, %v3168_v4  ;;  %v3366_v63 = vadd.f32 %v3326_v52, %v3246_v41  ;;  %v3288_v53 = vmul.f32 %v3168_v4, %v3168_v4 }
 0x330   :  { %v3485_v3 = vadd.f32 %v3445_v44, %v3205_v42  ;;  %v4313_v21 = vpop.eup %4312  ;;  %v3599_v62 = vmul.f32 1.442695, %v3524_v6  ;;  %v8425_v44 = vld [vmem:[#allocation115_spill] sm:$0xff]  ;;  %v8426_v6 = vld [vmem:[#allocation30_spill] sm:$0xff] }
 0x331   :  { %3721 = vst [vmem:[#allocation2 + $0x100] sm:$0xff] %v3681_v33  ;;  %v3642_v43 = vmul.f32 %v4313_v21, %v3402_v27  ;;  %v3123_v13 = vpop.f32.mrf.mxu3  ;;  %v3367_v33 = vadd.f32 %v3327_v46, %v3247_v23  ;;  %v3406_v20 = vmul.f32 %v3366_v63, %v2889_v61  ;;  %v3248_v21 = vadd.f32 1.0, %v3208_v29 }
 0x332   :  { %v3525_v59 = vsub.f32 0.0, %v3485_v3  ;;  %4316 = vpow2.f32 %v3599_v62  ;;  %v3446_v24 = vmul.f32 %v3123_v13, %v8419_v45  ;;  %v2815_v3 = vpop.f32.mrf.mxu0  ;;  %v3328_v51 = vmul.f32 1.6666666, %v3288_v53  ;;  %v8428_v45 = vld [vmem:[#allocation80_spill] sm:$0xff] }
 0x333   :  { %v3682_v35 = vadd.f32 %v3642_v43, %v8420_v2  ;;  %v3407_v7 = vmul.f32 %v3367_v33, %v2815_v3  ;;  %v8429_v2 = vld [vmem:[#allocation49_spill] sm:$0xff] }
 0x334   :  { %v4315_v26 = vpop.eup %4314  ;;  %v3601_v48 = vmul.f32 1.442695, %v3525_v59  ;;  %v3486_v60 = vadd.f32 %v3446_v24, %v3206_v50  ;;  %v3368_v43 = vadd.f32 %v3328_v51, %v3248_v21  ;;  %v8427_v59 = vld [vmem:[#allocation98_spill] sm:$0xff] }
 0x335   :  { %v3643_v0 = vmul.f32 %v4315_v26, %v3403_v18  ;;  %v3049_v1 = vpop.f32.mrf.mxu2  ;;  %3722 = vst [vmem:[#allocation2 + $0x108] sm:$0xff] %v3682_v35 }
 0x336   :  { %4318 = vpow2.f32 %v3601_v48  ;;  %v3447_v40 = vmul.f32 %v3049_v1, %v8421_v9  ;;  %v3526_v34 = vsub.f32 0.0, %v3486_v60  ;;  %v2892_v18 = vpop.f32.mrf.mxu1 }
 0x337   :  { %v3683_v17 = vadd.f32 %v3643_v0, %v8423_v57  ;;  %v3408_v26 = vmul.f32 %v3368_v43, %v2892_v18 }
 0x338   :  { %v3487_v15 = vadd.f32 %v3447_v40, %v3207_v19  ;;  %v4317_v16 = vpop.eup %4316  ;;  %v3603_v5 = vmul.f32 1.442695, %v3526_v34 }
 0x339   :  { %3723 = vst [vmem:[#allocation2 + $0x110] sm:$0xff] %v3683_v17  ;;  %v3644_v8 = vmul.f32 %v4317_v16, %v3404_v22  ;;  %v3126_v30 = vpop.f32.mrf.mxu3 }
 0x33a   :  { %v3527_v10 = vsub.f32 0.0, %v3487_v15  ;;  %4320 = vpow2.f32 %v3603_v5  ;;  %v3448_v38 = vmul.f32 %v3126_v30, %v8424_v56 }
 0x33b   :  { %v3684_v12 = vadd.f32 %v3644_v8, %v8425_v44 }
 0x33c   :  { %v4319_v42 = vpop.eup %4318  ;;  %v3605_v37 = vmul.f32 1.442695, %v3527_v10  ;;  %v3488_v14 = vadd.f32 %v3448_v38, %v3208_v29 }
 0x33d   :  { %v3645_v55 = vmul.f32 %v4319_v42, %v3405_v47  ;;  %3724 = vst [vmem:[#allocation2 + $0x118] sm:$0xff] %v3684_v12 }
 0x33e   :  { %4322 = vpow2.f32 %v3605_v37  ;;  %v3528_v25 = vsub.f32 0.0, %v3488_v14 }
 0x33f   :  { %v3685_v27 = vadd.f32 %v3645_v55, %v8426_v6 }
 0x340   :  { %v4321_v58 = vpop.eup %4320  ;;  %v3607_v54 = vmul.f32 1.442695, %v3528_v25 }
 0x341   :  { %3725 = vst [vmem:[#allocation2 + $0x120] sm:$0xff] %v3685_v27  ;;  %v3646_v62 = vmul.f32 %v4321_v58, %v3406_v20 }
 0x342   :  { %4324 = vpow2.f32 %v3607_v54 }
 0x343   :  { %v3686_v13 = vadd.f32 %v3646_v62, %v8427_v59 }
 0x344   :  { %v4323_v36 = vpop.eup %4322 }
 0x345   :  { %v3647_v50 = vmul.f32 %v4323_v36, %v3407_v7  ;;  %3726 = vst [vmem:[#allocation2 + $0x128] sm:$0xff] %v3686_v13 }
 0x347   :  { %v3687_v24 = vadd.f32 %v3647_v50, %v8428_v45 }
 0x348   :  { %v4325_v32 = vpop.eup %4324 }
 0x349   :  { %3727 = vst [vmem:[#allocation2 + $0x130] sm:$0xff] %v3687_v24  ;;  %v3648_v28 = vmul.f32 %v4325_v32, %v3408_v26 }
 0x34b   :  { %v3688_v35 = vadd.f32 %v3648_v28, %v8429_v2 }
 0x34d   :  { %3728 = vst [vmem:[#allocation2 + $0x138] sm:$0xff] %v3688_v35 }
 0x34e   :  { %3741 = dma.vmem_to_hbm [thread:$0]  %s3734_s11, 5120, %s3736_s14, [#allocation3], %s4360_s15, %s4360_s15, %s4361_s16  }
 0x34f   :  { %4350 = dma.done.wait [#allocation3], 5120  }
 0x350   :  { %4351 = vsyncadd [#allocation3], 4294962176 }
 0x351   :  { %3746 = vsyncpa [#allocation3], 1 }

</bundles_post_ra>
